<compile_context>
chip_gen: v5e
topology: v5e:2x2
jax: 0.10.0
libtpu: 0.0.40
codegen_flags: <defaults>
</compile_context>

<pallas_src>
import jax
import jax.numpy as jnp
from jax import lax
from jax.experimental import pallas as pl
from jax.experimental.pallas import tpu as pltpu


# ----------------------------------------------------------------------------
# Fused forward kernel
# ----------------------------------------------------------------------------
def _net_fwd_kernel(x_ref, t1_ref, bt1_ref, t2_ref, bt2_ref,
                    w3_ref, b3_ref, w4_ref, b4_ref, o_ref):
    tb = x_ref.shape[0]
    f32 = jnp.float32

    # ---- conv1 (1->10, k=5): ONE banded GEMM -------------------------------
    # rows = (n, oh) ; K = kh*28 + w_in (140) ; cols = dw*128 + pw*10 + co
    rows1 = x_ref[...].reshape(tb * 24, 140).astype(t1_ref.dtype)
    acc1 = jnp.dot(rows1, t1_ref[...],
                   preferred_element_type=f32) + bt1_ref[...]   # (tb*24, 256) f32

    # ---- maxpool 2x2 + relu (128-lane-aligned halves -> free vreg select) --
    a = jnp.maximum(acc1[:, :128], acc1[:, 128:])               # max over dw
    a = a.reshape(tb, 12, 2, 128)                               # rows -> (n, ph, dh)
    a = jnp.maximum(a[:, :, 0], a[:, :, 1])                     # max over dh
    p1 = jnp.maximum(a, 0.0)                                    # (tb, 12, 128) f32

    # ---- conv2 (10->20, k=5): ONE K=640 GEMM (Dropout2d == identity) -------
    # Lane-aligned im2row over kh: each kh window is a full 128-lane block.
    p1c = p1.astype(t2_ref.dtype)
    rows2 = jnp.concatenate(
        [p1c[:, kh:kh + 8, :].reshape(tb * 8, 128) for kh in range(5)],
        axis=-1)                                                # (tb*8, 640)
    acc2 = jnp.dot(rows2, t2_ref[...],
                   preferred_element_type=f32) + bt2_ref[...]   # (tb*8, 256) f32

    # ---- maxpool 2x2 + relu -------------------------------------------------
    b = jnp.maximum(acc2[:, :128], acc2[:, 128:])               # max over dw
    b = b.reshape(tb, 4, 2, 128)                                # rows -> (n, ph, dh)
    b = jnp.maximum(b[:, :, 0], b[:, :, 1])                     # max over dh
    p2 = jnp.maximum(b, 0.0)                                    # (tb, 4, 128) f32

    # ---- fc1 (320->50, padded K=4x128, N=64) + relu.  The flatten matches
    #      x.view(-1, 320): fc1 columns were reordered to (h, w, c) and split
    #      per spatial row h on the host, so no in-kernel relayout is needed.
    p2c = p2.astype(w3_ref.dtype)
    h = b3_ref[...]                                             # (1, 64) f32 bias
    for hh in range(4):
        h = h + jnp.dot(p2c[:, hh, :], w3_ref[hh],
                        preferred_element_type=f32)
    h = jnp.maximum(h, 0.0)                                     # (tb, 64) f32
    # TODO(synk): training-mode Dropout2d / F.dropout would need
    # pltpu.prng_seed + pltpu.prng_random_bits masks; eval mode is identity.

    # ---- fc2 (50->10, lane-padded to 128) + log_softmax ---------------------
    logits = jnp.dot(h.astype(w4_ref.dtype), w4_ref[...],
                     preferred_element_type=f32) + b4_ref[...]  # (tb, 128)
    m = jnp.max(logits, axis=-1, keepdims=True)
    lse = jnp.log(jnp.sum(jnp.exp(logits - m), axis=-1, keepdims=True)) + m
    o_ref[...] = (logits - lse).astype(o_ref.dtype)


# ----------------------------------------------------------------------------
# Host-side one-time weight repacking (tiny, folded into jit)
# ----------------------------------------------------------------------------
def _band_weights_conv1(conv1_w):
    """(10,1,5,5) -> T1 (140, 256): rows kh*28 + w_in, cols dw*128 + pw*10+co."""
    w = jnp.transpose(conv1_w[:, 0], (1, 2, 0))               # (kh, kw, co)
    w_in = jnp.arange(28)[:, None]
    ow = jnp.arange(24)[None, :]
    kw = w_in - ow
    t = jnp.where(((kw >= 0) & (kw < 5))[None, :, :, None],
                  w[:, jnp.clip(kw, 0, 4), :], 0.0)           # (5,28,24,10) [kh,w_in,ow,co]
    t = t.reshape(5, 28, 12, 2, 10)                           # ow -> (pw, dw)
    t = jnp.transpose(t, (0, 1, 3, 2, 4))                     # [kh, w_in, dw, pw, co]
    t = t.reshape(5, 28, 2, 120)
    t = jnp.pad(t, ((0, 0), (0, 0), (0, 0), (0, 8)))          # 120 -> 128 per half
    return t.reshape(140, 256)


def _band_weights_conv2(conv2_w):
    """(20,10,5,5) -> T2 (640, 256): rows kh*128 + w_in*10+c, cols dw*128+pw*20+co."""
    w = jnp.transpose(conv2_w, (2, 3, 1, 0))                  # (kh, kw, c, co)
    w_in = jnp.arange(12)[:, None]
    ow = jnp.arange(8)[None, :]
    kw = w_in - ow
    t = jnp.where(((kw >= 0) & (kw < 5))[None, :, :, None, None],
                  w[:, jnp.clip(kw, 0, 4), :, :], 0.0)        # (5,12,8,10,20) [kh,w_in,ow,c,co]
    t = jnp.transpose(t, (0, 1, 3, 2, 4))                     # [kh, w_in, c, ow, co]
    t = t.reshape(5, 12, 10, 4, 2, 20)                        # ow -> (pw, dw)
    t = jnp.transpose(t, (0, 1, 2, 4, 3, 5))                  # [kh, w_in, c, dw, pw, co]
    t = t.reshape(5, 120, 2, 80)
    t = jnp.pad(t, ((0, 0), (0, 8), (0, 0), (0, 48)))         # K 120->128, cols 80->128
    return t.reshape(640, 256)


def prepare_params(params, use_bf16=False):
    cdt = jnp.bfloat16 if use_bf16 else jnp.float32

    t1 = _band_weights_conv1(params["conv1_w"])               # (140, 256)
    bt1_half = jnp.pad(jnp.tile(params["conv1_b"], 12), (0, 8))
    bt1 = jnp.concatenate([bt1_half, bt1_half]).reshape(1, 256)

    t2 = _band_weights_conv2(params["conv2_w"])               # (640, 256)
    bt2_half = jnp.pad(jnp.tile(params["conv2_b"], 4), (0, 48))
    bt2 = jnp.concatenate([bt2_half, bt2_half]).reshape(1, 256)

    # fc1: reorder columns from PyTorch's (c, h, w) flatten to (h, w, c), split
    # per spatial row h, and pad K 80->128 / N 50->64 with zeros.
    w3 = (params["fc1_w"].reshape(50, 20, 4, 4)
          .transpose(2, 3, 1, 0).reshape(4, 80, 50))          # (h, w*20+c, out)
    w3 = jnp.pad(w3, ((0, 0), (0, 48), (0, 14)))              # (4, 128, 64)
    b3 = jnp.pad(params["fc1_b"], (0, 14)).reshape(1, 64)

    # fc2 padded to 64 input / 128 output lanes; pad-lane bias = -1e30 so
    # log_softmax ignores them and the HBM store is unmasked / lane-dense.
    w4 = jnp.zeros((64, 128), jnp.float32).at[:50, :10].set(params["fc2_w"].T)
    b4 = jnp.full((1, 128), -1e30, jnp.float32).at[:, :10].set(
        params["fc2_b"].reshape(1, 10))

    return (t1.astype(cdt), bt1.astype(jnp.float32),
            t2.astype(cdt), bt2.astype(jnp.float32),
            w3.astype(cdt), b3.astype(jnp.float32),
            w4.astype(cdt), b4.astype(jnp.float32))


# ----------------------------------------------------------------------------
# Wrapper
# ----------------------------------------------------------------------------
def _round_up(a, b):
    return -(-a // b) * b


def _choose_batch_tile(n, batch_tile):
    """Batch tile: large enough to amortize per-step overhead / fill the MXU
    M-dim, capped so small batches are not over-padded, and chosen so the
    "parallel" grid axis has >= 2 steps whenever possible (v7x has 2 TCs)."""
    bt = max(8, _round_up(batch_tile, 8))
    steps = max(1, -(-n // bt))
    if steps == 1 and n > 8:
        steps = 2
    return _round_up(-(-n // steps), 8)


def _full_spec(a):
    nd = a.ndim
    return pl.BlockSpec(a.shape, lambda i, _nd=nd: (0,) * _nd)


def net_forward(x, params, *, batch_tile=256, use_bf16=False):
    """x: (N, 1, 28, 28) float32 NCHW -> (N, 10) log-probabilities."""
    n = x.shape[0]
    assert x.shape[1:] == (1, 28, 28), x.shape
    weights = prepare_params(params, use_bf16=use_bf16)
    compute_dtype = weights[0].dtype

    tb = _choose_batch_tile(n, batch_tile)
    n_pad = _round_up(n, tb)

    xs = x.reshape(n, 28, 28).astype(jnp.float32)
    if n_pad != n:
        xs = jnp.pad(xs, ((0, n_pad - n), (0, 0), (0, 0)))
    # Host-side im2row over kh: cols = kh*28 + w  ->  (n_pad, 24, 140).
    xs = jnp.concatenate([xs[:, kh:kh + 24, :] for kh in range(5)], axis=-1)
    xs = xs.astype(compute_dtype)

    flops_per_img = 2 * (24 * 140 * 256 + 8 * 640 * 256 + 4 * 128 * 64 + 64 * 128)
    w_bytes = int(sum(w.size * w.dtype.itemsize for w in weights))
    cost = pl.CostEstimate(
        flops=flops_per_img * n_pad,
        transcendentals=128 * n_pad,
        bytes_accessed=n_pad * (24 * 140 * xs.dtype.itemsize + 128 * 4) + w_bytes,
    )

    out = pl.pallas_call(
        _net_fwd_kernel,
        out_shape=jax.ShapeDtypeStruct((n_pad, 128), jnp.float32),
        grid=(n_pad // tb,),
        in_specs=[pl.BlockSpec((tb, 24, 140), lambda i: (i, 0, 0))]
                 + [_full_spec(w) for w in weights],
        out_specs=pl.BlockSpec((tb, 128), lambda i: (i, 0)),
        compiler_params=pltpu.CompilerParams(
            dimension_semantics=("parallel",),
            vmem_limit_bytes=48 * 1024 * 1024,
        ),
        cost_estimate=cost,
    )(xs, *weights)
    return out[:n, :10]


# ----------------------------------------------------------------------------
# Pure-JAX reference (same eval-mode semantics) and parameter init
# ----------------------------------------------------------------------------
def net_forward_ref(x, params):
    dn = ("NCHW", "OIHW", "NCHW")
    y = lax.conv_general_dilated(x, params["conv1_w"], (1, 1), "VALID",
                                 dimension_numbers=dn)
    y = y + params["conv1_b"][None, :, None, None]
    y = lax.reduce_window(y, -jnp.inf, lax.max, (1, 1, 2, 2), (1, 1, 2, 2), "VALID")
    y = jnp.maximum(y, 0.0)
    y = lax.conv_general_dilated(y, params["conv2_w"], (1, 1), "VALID",
                                 dimension_numbers=dn)
    y = y + params["conv2_b"][None, :, None, None]
    y = lax.reduce_window(y, -jnp.inf, lax.max, (1, 1, 2, 2), (1, 1, 2, 2), "VALID")
    y = jnp.maximum(y, 0.0)
    h = y.reshape(y.shape[0], 320)
    h = jnp.maximum(h @ params["fc1_w"].T + params["fc1_b"], 0.0)
    logits = h @ params["fc2_w"].T + params["fc2_b"]
    return jax.nn.log_softmax(logits, axis=-1)


def init_params(key):
    ks = jax.random.split(key, 8)

    def u(k, shape, fan_in):
        bound = 1.0 / jnp.sqrt(float(fan_in))
        return jax.random.uniform(k, shape, jnp.float32, -bound, bound)

    return {
        "conv1_w": u(ks[0], (10, 1, 5, 5), 1 * 5 * 5),
        "conv1_b": u(ks[1], (10,), 1 * 5 * 5),
        "conv2_w": u(ks[2], (20, 10, 5, 5), 10 * 5 * 5),
        "conv2_b": u(ks[3], (20,), 10 * 5 * 5),
        "fc1_w":   u(ks[4], (50, 320), 320),
        "fc1_b":   u(ks[5], (50,), 320),
        "fc2_w":   u(ks[6], (10, 50), 50),
        "fc2_b":   u(ks[7], (10,), 50),
    }


# ----------------------------------------------------------------------------
if __name__ == "__main__":
    key = jax.random.PRNGKey(0)
    pkey, xkey, x2key = jax.random.split(key, 3)
    params = init_params(pkey)

    fwd = jax.jit(net_forward)

    # Small-batch check (28x28 is fixed by the module's 320-wide flatten).
    x = jax.random.normal(xkey, (2, 1, 28, 28), dtype=jnp.float32)
    out = jax.block_until_ready(fwd(x, params))
    assert out.shape == (2, 10)
    assert bool(jnp.all(jnp.isfinite(out)))
    row_sums = jnp.exp(out).sum(axis=1)          # log_softmax self-consistency
    assert bool(jnp.all(jnp.abs(row_sums - 1.0) < 1e-4))
    ref = net_forward_ref(x, params)
    max_err = float(jnp.max(jnp.abs(out - ref)))
    assert max_err < 1e-3, f"kernel vs reference mismatch: {max_err}"

    # Second small shape exercises batch padding and a multi-step parallel grid.
    x2 = jax.random.normal(x2key, (20, 1, 28, 28), dtype=jnp.float32)
    out2 = jax.block_until_ready(fwd(x2, params))
    ref2 = net_forward_ref(x2, params)
    assert out2.shape == (20, 10)
    max_err2 = float(jnp.max(jnp.abs(out2 - ref2)))
    assert max_err2 < 1e-3, f"kernel vs reference mismatch: {max_err2}"

    print("KERNEL_OK")
</pallas_src>

<mosaic_0001>
module attributes {stable_mosaic.version = 11 : i64} {
  func.func @_net_fwd_kernel(%arg0: i32, %arg1: memref<8x24x140xf32, #tpu.memory_space<vmem>>, %arg2: memref<140x256xf32, #tpu.memory_space<vmem>>, %arg3: memref<1x256xf32, #tpu.memory_space<vmem>>, %arg4: memref<640x256xf32, #tpu.memory_space<vmem>>, %arg5: memref<1x256xf32, #tpu.memory_space<vmem>>, %arg6: memref<4x128x64xf32, #tpu.memory_space<vmem>>, %arg7: memref<1x64xf32, #tpu.memory_space<vmem>>, %arg8: memref<64x128xf32, #tpu.memory_space<vmem>>, %arg9: memref<1x128xf32, #tpu.memory_space<vmem>>, %arg10: memref<8x128xf32, #tpu.memory_space<vmem>>) attributes {dimension_semantics = [#tpu.dimension_semantics<parallel>], iteration_bounds = array<i64: 1>, scalar_prefetch = 0 : i64, scratch_operands = 0 : i64, tpu.core_type = #tpu.core_type<tc>, window_params = [{transform_indices = @transform_0, window_bounds = array<i64: 8, 24, 140>}, {pipeline_mode = #tpu.pipeline_mode<synchronous>, transform_indices = @transform_1, window_bounds = array<i64: 140, 256>}, {pipeline_mode = #tpu.pipeline_mode<synchronous>, transform_indices = @transform_2, window_bounds = array<i64: 1, 256>}, {pipeline_mode = #tpu.pipeline_mode<synchronous>, transform_indices = @transform_3, window_bounds = array<i64: 640, 256>}, {pipeline_mode = #tpu.pipeline_mode<synchronous>, transform_indices = @transform_4, window_bounds = array<i64: 1, 256>}, {pipeline_mode = #tpu.pipeline_mode<synchronous>, transform_indices = @transform_5, window_bounds = array<i64: 4, 128, 64>}, {pipeline_mode = #tpu.pipeline_mode<synchronous>, transform_indices = @transform_6, window_bounds = array<i64: 1, 64>}, {pipeline_mode = #tpu.pipeline_mode<synchronous>, transform_indices = @transform_7, window_bounds = array<i64: 64, 128>}, {pipeline_mode = #tpu.pipeline_mode<synchronous>, transform_indices = @transform_8, window_bounds = array<i64: 1, 128>}, {transform_indices = @transform_9, window_bounds = array<i64: 8, 128>}]} {
    %c0 = arith.constant 0 : index
    %c0_0 = arith.constant 0 : index
    %c0_1 = arith.constant 0 : index
    %0 = vector.load %arg1[%c0, %c0_0, %c0_1] : memref<8x24x140xf32, #tpu.memory_space<vmem>>, vector<8x24x140xf32>
    %1 = vector.shape_cast %0 : vector<8x24x140xf32> to vector<192x140xf32>
    %c0_2 = arith.constant 0 : index
    %c0_3 = arith.constant 0 : index
    %2 = vector.load %arg2[%c0_2, %c0_3] : memref<140x256xf32, #tpu.memory_space<vmem>>, vector<140x256xf32>
    %cst = arith.constant dense<0.000000e+00> : vector<192x256xf32>
    %3 = tpu.matmul %1, %2, %cst {dimension_numbers = #tpu.dot_dimension_numbers<[1], [0], [0], [1], [0, 0, 1, 1], [], []>} : vector<192x140xf32>, vector<140x256xf32>, vector<192x256xf32> -> vector<192x256xf32>
    %c0_4 = arith.constant 0 : index
    %c0_5 = arith.constant 0 : index
    %4 = vector.load %arg3[%c0_4, %c0_5] : memref<1x256xf32, #tpu.memory_space<vmem>>, vector<1x256xf32>
    %5 = vector.broadcast %4 : vector<1x256xf32> to vector<192x256xf32>
    %6 = arith.addf %3, %5 : vector<192x256xf32>
    %7 = vector.extract_strided_slice %6 {offsets = [0, 0], sizes = [192, 128], strides = [1, 1]} : vector<192x256xf32> to vector<192x128xf32>
    %8 = vector.extract_strided_slice %6 {offsets = [0, 128], sizes = [192, 128], strides = [1, 1]} : vector<192x256xf32> to vector<192x128xf32>
    %9 = arith.maximumf %7, %8 : vector<192x128xf32>
    %10 = vector.shape_cast %9 : vector<192x128xf32> to vector<8x12x2x128xf32>
    %11 = vector.extract_strided_slice %10 {offsets = [0, 0, 0, 0], sizes = [8, 12, 1, 128], strides = [1, 1, 1, 1]} : vector<8x12x2x128xf32> to vector<8x12x1x128xf32>
    %12 = vector.shape_cast %11 : vector<8x12x1x128xf32> to vector<8x12x128xf32>
    %13 = vector.extract_strided_slice %10 {offsets = [0, 0, 1, 0], sizes = [8, 12, 1, 128], strides = [1, 1, 1, 1]} : vector<8x12x2x128xf32> to vector<8x12x1x128xf32>
    %14 = vector.shape_cast %13 : vector<8x12x1x128xf32> to vector<8x12x128xf32>
    %15 = arith.maximumf %12, %14 : vector<8x12x128xf32>
    %cst_6 = arith.constant 0.000000e+00 : f32
    %16 = vector.broadcast %cst_6 : f32 to vector<8x12x128xf32>
    %17 = arith.maximumf %15, %16 : vector<8x12x128xf32>
    %18 = vector.extract_strided_slice %17 {offsets = [0, 0, 0], sizes = [8, 8, 128], strides = [1, 1, 1]} : vector<8x12x128xf32> to vector<8x8x128xf32>
    %19 = vector.shape_cast %18 : vector<8x8x128xf32> to vector<64x128xf32>
    %20 = vector.extract_strided_slice %17 {offsets = [0, 1, 0], sizes = [8, 8, 128], strides = [1, 1, 1]} : vector<8x12x128xf32> to vector<8x8x128xf32>
    %21 = vector.shape_cast %20 : vector<8x8x128xf32> to vector<64x128xf32>
    %22 = vector.extract_strided_slice %17 {offsets = [0, 2, 0], sizes = [8, 8, 128], strides = [1, 1, 1]} : vector<8x12x128xf32> to vector<8x8x128xf32>
    %23 = vector.shape_cast %22 : vector<8x8x128xf32> to vector<64x128xf32>
    %24 = vector.extract_strided_slice %17 {offsets = [0, 3, 0], sizes = [8, 8, 128], strides = [1, 1, 1]} : vector<8x12x128xf32> to vector<8x8x128xf32>
    %25 = vector.shape_cast %24 : vector<8x8x128xf32> to vector<64x128xf32>
    %26 = vector.extract_strided_slice %17 {offsets = [0, 4, 0], sizes = [8, 8, 128], strides = [1, 1, 1]} : vector<8x12x128xf32> to vector<8x8x128xf32>
    %27 = vector.shape_cast %26 : vector<8x8x128xf32> to vector<64x128xf32>
    %28 = tpu.concatenate %19, %21, %23, %25, %27 in 1 : vector<64x128xf32>, vector<64x128xf32>, vector<64x128xf32>, vector<64x128xf32>, vector<64x128xf32> -> vector<64x640xf32>
    %c0_7 = arith.constant 0 : index
    %c0_8 = arith.constant 0 : index
    %29 = vector.load %arg4[%c0_7, %c0_8] : memref<640x256xf32, #tpu.memory_space<vmem>>, vector<640x256xf32>
    %cst_9 = arith.constant dense<0.000000e+00> : vector<64x256xf32>
    %30 = tpu.matmul %28, %29, %cst_9 {dimension_numbers = #tpu.dot_dimension_numbers<[1], [0], [0], [1], [0, 0, 1, 1], [], []>} : vector<64x640xf32>, vector<640x256xf32>, vector<64x256xf32> -> vector<64x256xf32>
    %c0_10 = arith.constant 0 : index
    %c0_11 = arith.constant 0 : index
    %31 = vector.load %arg5[%c0_10, %c0_11] : memref<1x256xf32, #tpu.memory_space<vmem>>, vector<1x256xf32>
    %32 = vector.broadcast %31 : vector<1x256xf32> to vector<64x256xf32>
    %33 = arith.addf %30, %32 : vector<64x256xf32>
    %34 = vector.extract_strided_slice %33 {offsets = [0, 0], sizes = [64, 128], strides = [1, 1]} : vector<64x256xf32> to vector<64x128xf32>
    %35 = vector.extract_strided_slice %33 {offsets = [0, 128], sizes = [64, 128], strides = [1, 1]} : vector<64x256xf32> to vector<64x128xf32>
    %36 = arith.maximumf %34, %35 : vector<64x128xf32>
    %37 = vector.shape_cast %36 : vector<64x128xf32> to vector<8x4x2x128xf32>
    %38 = vector.extract_strided_slice %37 {offsets = [0, 0, 0, 0], sizes = [8, 4, 1, 128], strides = [1, 1, 1, 1]} : vector<8x4x2x128xf32> to vector<8x4x1x128xf32>
    %39 = vector.shape_cast %38 : vector<8x4x1x128xf32> to vector<8x4x128xf32>
    %40 = vector.extract_strided_slice %37 {offsets = [0, 0, 1, 0], sizes = [8, 4, 1, 128], strides = [1, 1, 1, 1]} : vector<8x4x2x128xf32> to vector<8x4x1x128xf32>
    %41 = vector.shape_cast %40 : vector<8x4x1x128xf32> to vector<8x4x128xf32>
    %42 = arith.maximumf %39, %41 : vector<8x4x128xf32>
    %cst_12 = arith.constant 0.000000e+00 : f32
    %43 = vector.broadcast %cst_12 : f32 to vector<8x4x128xf32>
    %44 = arith.maximumf %42, %43 : vector<8x4x128xf32>
    %c0_13 = arith.constant 0 : index
    %c0_14 = arith.constant 0 : index
    %45 = vector.load %arg7[%c0_13, %c0_14] : memref<1x64xf32, #tpu.memory_space<vmem>>, vector<1x64xf32>
    %46 = vector.extract_strided_slice %44 {offsets = [0, 0, 0], sizes = [8, 1, 128], strides = [1, 1, 1]} : vector<8x4x128xf32> to vector<8x1x128xf32>
    %47 = vector.shape_cast %46 : vector<8x1x128xf32> to vector<8x128xf32>
    %c0_15 = arith.constant 0 : index
    %c0_16 = arith.constant 0 : index
    %c0_17 = arith.constant 0 : index
    %48 = vector.load %arg6[%c0_15, %c0_16, %c0_17] : memref<4x128x64xf32, #tpu.memory_space<vmem>>, vector<1x128x64xf32>
    %49 = vector.shape_cast %48 : vector<1x128x64xf32> to vector<128x64xf32>
    %cst_18 = arith.constant dense<0.000000e+00> : vector<8x64xf32>
    %50 = tpu.matmul %47, %49, %cst_18 {dimension_numbers = #tpu.dot_dimension_numbers<[1], [0], [0], [1], [0, 0, 1, 1], [], []>} : vector<8x128xf32>, vector<128x64xf32>, vector<8x64xf32> -> vector<8x64xf32>
    %51 = vector.broadcast %45 : vector<1x64xf32> to vector<8x64xf32>
    %52 = arith.addf %51, %50 : vector<8x64xf32>
    %53 = vector.extract_strided_slice %44 {offsets = [0, 1, 0], sizes = [8, 1, 128], strides = [1, 1, 1]} : vector<8x4x128xf32> to vector<8x1x128xf32>
    %54 = vector.shape_cast %53 : vector<8x1x128xf32> to vector<8x128xf32>
    %c1 = arith.constant 1 : index
    %c0_19 = arith.constant 0 : index
    %c0_20 = arith.constant 0 : index
    %55 = vector.load %arg6[%c1, %c0_19, %c0_20] : memref<4x128x64xf32, #tpu.memory_space<vmem>>, vector<1x128x64xf32>
    %56 = vector.shape_cast %55 : vector<1x128x64xf32> to vector<128x64xf32>
    %cst_21 = arith.constant dense<0.000000e+00> : vector<8x64xf32>
    %57 = tpu.matmul %54, %56, %cst_21 {dimension_numbers = #tpu.dot_dimension_numbers<[1], [0], [0], [1], [0, 0, 1, 1], [], []>} : vector<8x128xf32>, vector<128x64xf32>, vector<8x64xf32> -> vector<8x64xf32>
    %58 = arith.addf %52, %57 : vector<8x64xf32>
    %59 = vector.extract_strided_slice %44 {offsets = [0, 2, 0], sizes = [8, 1, 128], strides = [1, 1, 1]} : vector<8x4x128xf32> to vector<8x1x128xf32>
    %60 = vector.shape_cast %59 : vector<8x1x128xf32> to vector<8x128xf32>
    %c2 = arith.constant 2 : index
    %c0_22 = arith.constant 0 : index
    %c0_23 = arith.constant 0 : index
    %61 = vector.load %arg6[%c2, %c0_22, %c0_23] : memref<4x128x64xf32, #tpu.memory_space<vmem>>, vector<1x128x64xf32>
    %62 = vector.shape_cast %61 : vector<1x128x64xf32> to vector<128x64xf32>
    %cst_24 = arith.constant dense<0.000000e+00> : vector<8x64xf32>
    %63 = tpu.matmul %60, %62, %cst_24 {dimension_numbers = #tpu.dot_dimension_numbers<[1], [0], [0], [1], [0, 0, 1, 1], [], []>} : vector<8x128xf32>, vector<128x64xf32>, vector<8x64xf32> -> vector<8x64xf32>
    %64 = arith.addf %58, %63 : vector<8x64xf32>
    %65 = vector.extract_strided_slice %44 {offsets = [0, 3, 0], sizes = [8, 1, 128], strides = [1, 1, 1]} : vector<8x4x128xf32> to vector<8x1x128xf32>
    %66 = vector.shape_cast %65 : vector<8x1x128xf32> to vector<8x128xf32>
    %c3 = arith.constant 3 : index
    %c0_25 = arith.constant 0 : index
    %c0_26 = arith.constant 0 : index
    %67 = vector.load %arg6[%c3, %c0_25, %c0_26] : memref<4x128x64xf32, #tpu.memory_space<vmem>>, vector<1x128x64xf32>
    %68 = vector.shape_cast %67 : vector<1x128x64xf32> to vector<128x64xf32>
    %cst_27 = arith.constant dense<0.000000e+00> : vector<8x64xf32>
    %69 = tpu.matmul %66, %68, %cst_27 {dimension_numbers = #tpu.dot_dimension_numbers<[1], [0], [0], [1], [0, 0, 1, 1], [], []>} : vector<8x128xf32>, vector<128x64xf32>, vector<8x64xf32> -> vector<8x64xf32>
    %70 = arith.addf %64, %69 : vector<8x64xf32>
    %cst_28 = arith.constant 0.000000e+00 : f32
    %71 = vector.broadcast %cst_28 : f32 to vector<8x64xf32>
    %72 = arith.maximumf %70, %71 : vector<8x64xf32>
    %c0_29 = arith.constant 0 : index
    %c0_30 = arith.constant 0 : index
    %73 = vector.load %arg8[%c0_29, %c0_30] : memref<64x128xf32, #tpu.memory_space<vmem>>, vector<64x128xf32>
    %cst_31 = arith.constant dense<0.000000e+00> : vector<8x128xf32>
    %74 = tpu.matmul %72, %73, %cst_31 {dimension_numbers = #tpu.dot_dimension_numbers<[1], [0], [0], [1], [0, 0, 1, 1], [], []>} : vector<8x64xf32>, vector<64x128xf32>, vector<8x128xf32> -> vector<8x128xf32>
    %c0_32 = arith.constant 0 : index
    %c0_33 = arith.constant 0 : index
    %75 = vector.load %arg9[%c0_32, %c0_33] : memref<1x128xf32, #tpu.memory_space<vmem>>, vector<1x128xf32>
    %76 = vector.broadcast %75 : vector<1x128xf32> to vector<8x128xf32>
    %77 = arith.addf %74, %76 : vector<8x128xf32>
    %cst_34 = arith.constant dense<0xFF800000> : vector<8xf32>
    %78 = vector.multi_reduction <maximumf>, %77, %cst_34 [1] : vector<8x128xf32> to vector<8xf32>
    %79 = vector.shape_cast %78 : vector<8xf32> to vector<8x1xf32>
    %80 = vector.broadcast %79 : vector<8x1xf32> to vector<8x128xf32>
    %81 = arith.subf %77, %80 : vector<8x128xf32>
    %82 = math.exp %81 : vector<8x128xf32>
    %cst_35 = arith.constant dense<0.000000e+00> : vector<8xf32>
    %83 = vector.multi_reduction <add>, %82, %cst_35 [1] : vector<8x128xf32> to vector<8xf32>
    %84 = vector.shape_cast %83 : vector<8xf32> to vector<8x1xf32>
    %85 = math.log %84 : vector<8x1xf32>
    %86 = arith.addf %85, %79 : vector<8x1xf32>
    %87 = vector.broadcast %86 : vector<8x1xf32> to vector<8x128xf32>
    %88 = arith.subf %77, %87 : vector<8x128xf32>
    %c0_36 = arith.constant 0 : index
    %c0_37 = arith.constant 0 : index
    %89 = vector.load %arg10[%c0_36, %c0_37] : memref<8x128xf32, #tpu.memory_space<vmem>>, vector<8x128xf32>
    tpu.vector_store %arg10[%c0_36, %c0_37], %88 {strides = array<i32>} : memref<8x128xf32, #tpu.memory_space<vmem>>, vector<8x128xf32>,
    return
  }
  func.func @transform_0(%arg0: i32) -> (i32, i32, i32) {
    %c0_i32 = arith.constant 0 : i32
    %c0_i32_0 = arith.constant 0 : i32
    %c0_i32_1 = arith.constant 0 : i32
    return %arg0, %c0_i32, %c0_i32_0 : i32, i32, i32
  }
  func.func @transform_1(%arg0: i32) -> (i32, i32) {
    %c0_i32 = arith.constant 0 : i32
    %c0_i32_0 = arith.constant 0 : i32
    %c0_i32_1 = arith.constant 0 : i32
    return %c0_i32, %c0_i32_0 : i32, i32
  }
  func.func @transform_2(%arg0: i32) -> (i32, i32) {
    %c0_i32 = arith.constant 0 : i32
    %c0_i32_0 = arith.constant 0 : i32
    %c0_i32_1 = arith.constant 0 : i32
    return %c0_i32, %c0_i32_0 : i32, i32
  }
  func.func @transform_3(%arg0: i32) -> (i32, i32) {
    %c0_i32 = arith.constant 0 : i32
    %c0_i32_0 = arith.constant 0 : i32
    %c0_i32_1 = arith.constant 0 : i32
    return %c0_i32, %c0_i32_0 : i32, i32
  }
  func.func @transform_4(%arg0: i32) -> (i32, i32) {
    %c0_i32 = arith.constant 0 : i32
    %c0_i32_0 = arith.constant 0 : i32
    %c0_i32_1 = arith.constant 0 : i32
    return %c0_i32, %c0_i32_0 : i32, i32
  }
  func.func @transform_5(%arg0: i32) -> (i32, i32, i32) {
    %c0_i32 = arith.constant 0 : i32
    %c0_i32_0 = arith.constant 0 : i32
    %c0_i32_1 = arith.constant 0 : i32
    %c0_i32_2 = arith.constant 0 : i32
    return %c0_i32, %c0_i32_0, %c0_i32_1 : i32, i32, i32
  }
  func.func @transform_6(%arg0: i32) -> (i32, i32) {
    %c0_i32 = arith.constant 0 : i32
    %c0_i32_0 = arith.constant 0 : i32
    %c0_i32_1 = arith.constant 0 : i32
    return %c0_i32, %c0_i32_0 : i32, i32
  }
  func.func @transform_7(%arg0: i32) -> (i32, i32) {
    %c0_i32 = arith.constant 0 : i32
    %c0_i32_0 = arith.constant 0 : i32
    %c0_i32_1 = arith.constant 0 : i32
    return %c0_i32, %c0_i32_0 : i32, i32
  }
  func.func @transform_8(%arg0: i32) -> (i32, i32) {
    %c0_i32 = arith.constant 0 : i32
    %c0_i32_0 = arith.constant 0 : i32
    %c0_i32_1 = arith.constant 0 : i32
    return %c0_i32, %c0_i32_0 : i32, i32
  }
  func.func @transform_9(%arg0: i32) -> (i32, i32) {
    %c0_i32 = arith.constant 0 : i32
    %c0_i32_0 = arith.constant 0 : i32
    return %arg0, %c0_i32 : i32, i32
  }
}

</mosaic_0001>

<bundles_post_ra>
// kernel: tile.13
= control target key start
LH: loop header
LB: loop body
LE: loop exit
PB: predicated region body
PF: predicated region fallthrough
CT: control target
= control target key end

     0   :  { %s28_s0 = inlined_call_operand.vmem [shape: f32[10], index: 0, kind: input, shape index: {}]   ;;  %s29_s1 = inlined_call_operand.vmem [shape: f32[12,10], index: 1, kind: output, shape index: {}]  }
   0x1   :  { %v4_v0 = vld [vmem:[%s28_s0] ss:$0 sm:$0xff] }
   0x2   :  { %5 = vst [vmem:[%s29_s1] sm:$0xff] %v4_v0 }
   0x3   :  { %8 = vst [vmem:[%s29_s1 + $0x8] sm:$0xff] %v4_v0 }

// kernel: tile.14
= control target key start
LH: loop header
LB: loop body
LE: loop exit
PB: predicated region body
PF: predicated region fallthrough
CT: control target
= control target key end

     0   :  { %s99_s10 = smov 110   ;;  %s100_s11 = smov 90   ;;  %vm3_vm0 = vcmask 80896   ;;  %vm9_vm1 = vcmask 982896   ;;  %vm15_vm2 = vcmask 900896   ;;  %vm21_vm3 = vcmask 818896   ;;  %s159_s0 = inlined_call_operand.vmem [shape: f32[12,10], index: 0, kind: input, shape index: {}]   ;;  %s160_s1 = inlined_call_operand.vmem [shape: f32[120], index: 1, kind: output, shape index: {}]  }
   0x1   :  { %v77_v0 = vld [vmem:[%s159_s0 + $0xb] sm:$0x1]   ;;  %v79_v1 = vld [vmem:[%s159_s0 + $0x9] sm:$0x1]   ;;  %v81_v2 = vld [vmem:[%s159_s0 + $0x7] sm:$0x1]  }
   0x2   :  { %7 = vrot.lane.b32.xlu0 %v77_v0, %s99_s10  ;;  %19 = vrot.lane.b32.xlu1 %v79_v1, %s100_s11  ;;  %s101_s14 = smov 70   ;;  %v78_v3 = vld [vmem:[%s159_s0 + $0xa] sm:$0x1]   ;;  %v80_v4 = vld [vmem:[%s159_s0 + $0x8] sm:$0x1]   ;;  %s102_s19 = smov 100  }
   0x3   :  { %31 = vrot.lane.b32.xlu2 %v81_v2, %s101_s14  ;;  %s103_s20 = smov 80   ;;  %v82_v5 = vld [vmem:[%s159_s0 + $0x6] sm:$0x1]   ;;  %s104_s23 = smov 60   ;;  %v83_v6 = vld [vmem:[%s159_s0 + $0x5] sm:$0x1]  }
   0x4   :  { %v84_v7 = vld [vmem:[%s159_s0 + $0x4] sm:$0x1]   ;;  %s105_s28 = smov 50   ;;  %s106_s29 = smov 40   ;;  %v85_v8 = vld [vmem:[%s159_s0 + $0x3] sm:$0x1]  }
   0x5   :  { %s107_s3 = smov 30   ;;  %v86_v9 = vld [vmem:[%s159_s0 + $0x2] sm:$0x1]   ;;  %v87_v10 = vld [vmem:[%s159_s0 + $0x1] sm:$0x1]   ;;  %s108_s8 = smov 20  }
   0x6   :  { %s109_s9 = smov 10   ;;  %v2_v11 = vld [vmem:[%s159_s0] sm:$0x1]   ;;  %vm27_vm4 = vcmask 736896   ;;  %vm33_vm5 = vcmask 654896   ;;  %vm39_vm6 = vcmask 572896  }
   0x7   :  { %4 = vst.msk [vmem:[#allocation0] sm:$0x1] %vm3_vm0, %v2_v11   ;;  %vm45_vm7 = vcmask 490896   ;;  %vm51_vm8 = vcmask 408896   ;;  %vm57_vm9 = vcmask 326896   ;;  %vm63_vm10 = vcmask 244896  }
   0x8   :  { %vm69_vm11 = vcmask 162896  }
   0xa   :  { %13 = vrot.lane.b32.xlu0 %v78_v3, %s102_s19  ;;  %25 = vrot.lane.b32.xlu1 %v80_v4, %s103_s20 }
   0xb   :  { %37 = vrot.lane.b32.xlu2 %v82_v5, %s104_s23 }
  0x12   :  { %43 = vrot.lane.b32.xlu0 %v83_v6, %s105_s28  ;;  %49 = vrot.lane.b32.xlu1 %v84_v7, %s106_s29 }
  0x13   :  { %55 = vrot.lane.b32.xlu2 %v85_v8, %s107_s3 }
  0x1a   :  { %61 = vrot.lane.b32.xlu0 %v86_v9, %s108_s8  ;;  %67 = vrot.lane.b32.xlu1 %v87_v10, %s109_s9 }
  0x5d   :  { %v32_v12 = vpop.permute.xlu2 %31  }
  0x65   :  { %v38_v13 = vpop.permute.xlu2 %37  }
  0x6d   :  { %v56_v14 = vpop.permute.xlu2 %55  }
  0x74   :  { %v8_v15 = vpop.permute.xlu0 %7   ;;  %v20_v16 = vpop.permute.xlu1 %19  }
  0x75   :  { %10 = vst.msk [vmem:[#allocation0] sm:$0x1] %vm9_vm1, %v8_v15  }
  0x7c   :  { %v14_v17 = vpop.permute.xlu0 %13   ;;  %v26_v18 = vpop.permute.xlu1 %25  }
  0x7d   :  { %16 = vst.msk [vmem:[#allocation0] sm:$0x1] %vm15_vm2, %v14_v17  }
  0x7e   :  { %22 = vst.msk [vmem:[#allocation0] sm:$0x1] %vm21_vm3, %v20_v16  }
  0x7f   :  { %28 = vst.msk [vmem:[#allocation0] sm:$0x1] %vm27_vm4, %v26_v18  }
  0x80   :  { %34 = vst.msk [vmem:[#allocation0] sm:$0x1] %vm33_vm5, %v32_v12  }
  0x81   :  { %40 = vst.msk [vmem:[#allocation0] sm:$0x1] %vm39_vm6, %v38_v13  }
  0x84   :  { %v44_v19 = vpop.permute.xlu0 %43   ;;  %v50_v20 = vpop.permute.xlu1 %49  }
  0x85   :  { %46 = vst.msk [vmem:[#allocation0] sm:$0x1] %vm45_vm7, %v44_v19  }
  0x86   :  { %52 = vst.msk [vmem:[#allocation0] sm:$0x1] %vm51_vm8, %v50_v20  }
  0x87   :  { %58 = vst.msk [vmem:[#allocation0] sm:$0x1] %vm57_vm9, %v56_v14  }
  0x8c   :  { %v62_v21 = vpop.permute.xlu0 %61   ;;  %v68_v22 = vpop.permute.xlu1 %67  }
  0x8d   :  { %64 = vst.msk [vmem:[#allocation0] sm:$0x1] %vm63_vm10, %v62_v21  }
  0x8e   :  { %70 = vst.msk [vmem:[#allocation0] sm:$0x1] %vm69_vm11, %v68_v22  }
  0x95   :  { %v73_v23 = vld [vmem:[#allocation0] sm:$0x1] }
  0x96   :  { %76 = vst [vmem:[%s160_s1] sm:$0x1] %v73_v23 }

// kernel: tile.18
= control target key start
LH: loop header
LB: loop body
LE: loop exit
PB: predicated region body
PF: predicated region fallthrough
CT: control target
= control target key end

     0   :  { %s22_s0 = inlined_call_operand.vmem [shape: f32[20], index: 0, kind: input, shape index: {}]   ;;  %s23_s1 = inlined_call_operand.vmem [shape: f32[4,20], index: 1, kind: output, shape index: {}]  }
   0x1   :  { %v4_v0 = vld [vmem:[%s22_s0] ss:$0 sm:$0xff] }
   0x2   :  { %5 = vst [vmem:[%s23_s1] sm:$0xf] %v4_v0 }

// kernel: tile.19
= control target key start
LH: loop header
LB: loop body
LE: loop exit
PB: predicated region body
PF: predicated region fallthrough
CT: control target
= control target key end

     0   :  { %s37_s8 = smov 20   ;;  %s38_s9 = smov 40   ;;  %vm7_vm0 = vcmask 162816   ;;  %vm13_vm1 = vcmask 654816   ;;  %vm19_vm2 = vcmask 490816   ;;  %vm25_vm3 = vcmask 326816   ;;  %s55_s0 = inlined_call_operand.vmem [shape: f32[4,20], index: 0, kind: input, shape index: {}]   ;;  %s56_s1 = inlined_call_operand.vmem [shape: f32[80], index: 1, kind: output, shape index: {}]  }
   0x1   :  { %v4_v0 = vld [vmem:[%s55_s0] sm:$0xf]  ;;  %s36_s0 = smov 60  }
   0x2   :  { %5 = vst [vmem:[#allocation1] sm:$0xf] %v4_v0 }
   0x9   :  { %v10_v1 = vld [vmem:[#allocation1 + $0x3] sm:$0x1]   ;;  %v22_v2 = vld [vmem:[#allocation1 + $0x1] sm:$0x1]   ;;  %v16_v3 = vld [vmem:[#allocation1 + $0x2] sm:$0x1]  }
   0xa   :  { %11 = vrot.lane.b32.xlu0 %v10_v1, %s36_s0  ;;  %23 = vrot.lane.b32.xlu1 %v22_v2, %s37_s8  ;;  %v6_v4 = vld [vmem:[#allocation1] sm:$0x1]  }
   0xb   :  { %8 = vst.msk [vmem:[#allocation0] sm:$0x1] %vm7_vm0, %v6_v4  }
  0x12   :  { %17 = vrot.lane.b32.xlu0 %v16_v3, %s38_s9 }
  0x7c   :  { %v12_v5 = vpop.permute.xlu0 %11   ;;  %v24_v6 = vpop.permute.xlu1 %23  }
  0x7d   :  { %14 = vst.msk [vmem:[#allocation0] sm:$0x1] %vm13_vm1, %v12_v5  }
  0x84   :  { %v18_v7 = vpop.permute.xlu0 %17  }
  0x85   :  { %20 = vst.msk [vmem:[#allocation0] sm:$0x1] %vm19_vm2, %v18_v7  }
  0x86   :  { %26 = vst.msk [vmem:[#allocation0] sm:$0x1] %vm25_vm3, %v24_v6  }
  0x8d   :  { %v29_v8 = vld [vmem:[#allocation0] sm:$0x1] }
  0x8e   :  { %32 = vst [vmem:[%s56_s1] sm:$0x1] %v29_v8 }

// kernel: net_forward.1
= control target key start
LH: loop header
LB: loop body
LE: loop exit
PB: predicated region body
PF: predicated region fallthrough
CT: control target
= control target key end

     0   :  { %vm195_vm0 = vcmask 1043456   ;;  %vm122_vm1 = vcmask 97280   ;;  %vm1358_vm2 = vcmask 1041409   ;;  %vm1360_vm3 = vcmask 1042434   ;;  %s5459_s1 = inlined_call_operand.vmem [shape: f32[140,256], index: 1, kind: input, shape index: {}]   ;;  %s5460_s0 = inlined_call_operand.vmem [shape: f32[8,24,140], index: 0, kind: input, shape index: {}]   ;;  %s5461_s3 = inlined_call_operand.vmem [shape: f32[640,256], index: 3, kind: input, shape index: {}]   ;;  %s5462_s2 = inlined_call_operand.vmem [shape: f32[1,256], index: 2, kind: input, shape index: {}]   ;;  %s5463_s4 = inlined_call_operand.vmem [shape: f32[1,256], index: 4, kind: input, shape index: {}]   ;;  %s5464_s6 = inlined_call_operand.vmem [shape: f32[1,64], index: 6, kind: input, shape index: {}]   ;;  %s5465_s5 = inlined_call_operand.vmem [shape: f32[4,128,64], index: 5, kind: input, shape index: {}]   ;;  %s5466_s7 = inlined_call_operand.vmem [shape: f32[64,128], index: 7, kind: input, shape index: {}]   ;;  %s5467_s8 = inlined_call_operand.vmem [shape: f32[1,128], index: 8, kind: input, shape index: {}]   ;;  %s5468_s9 = inlined_call_operand.vmem [shape: f32[8,128], index: 9, kind: output, shape index: {}]  }
   0x1   :  { %v110_v0 = vld [vmem:[%s5459_s1 + $0xf0] sm:$0xff]  ;;  %v111_v2 = vld [vmem:[%s5459_s1 + $0xf8] sm:$0xff]  ;;  %v108_v4 = vld [vmem:[%s5459_s1 + $0xe0] sm:$0xff]  ;;  %vm1362_vm4 = vcmask 1043459   ;;  %vm1364_vm5 = vcmask 1044484   ;;  %vm1366_vm6 = vcmask 1045509  }
   0x2   :  { %v114_v1 = vld [vmem:[%s5459_s1 + $0x110] sm:$0xf]  ;;  %202 = vmatpush.msra.mxu0 %v110_v0  ;;  %v115_v3 = vld [vmem:[%s5459_s1 + $0x118] sm:$0xf]  ;;  %v112_v5 = vld [vmem:[%s5459_s1 + $0x100] sm:$0xff]  ;;  %380 = vmatpush.msra.mxu2 %v111_v2  ;;  %vm1368_vm7 = vcmask 1046534  }
   0x3   :  { %2853 = vmatpush.msk.msra.mxu1 %vm195_vm0, %v114_v1  ;;  %2878 = vmatpush.msk.msra.mxu3 %vm195_vm0, %v115_v3  ;;  %v109_v6 = vld [vmem:[%s5459_s1 + $0xe8] sm:$0xff]  ;;  %v106_v9 = vld [vmem:[%s5459_s1 + $0xd0] sm:$0xff]  ;;  %v107_v10 = vld [vmem:[%s5459_s1 + $0xd8] sm:$0xff]  ;;  %vm1370_vm8 = vcmask 1047559   ;;  %vm2813_vm9 = vcmask 523264  }
   0x4   :  { %v113_v7 = vld [vmem:[%s5459_s1 + $0x108] sm:$0xff]  ;;  %203 = vmatpush.msra.mxu0 %v108_v4  ;;  %381 = vmatpush.msra.mxu2 %v109_v6  ;;  %v104_v11 = vld [vmem:[%s5459_s1 + $0xc0] sm:$0xff]  ;;  %v102_v13 = vld [vmem:[%s5459_s1 + $0xb0] sm:$0xff] }
   0x5   :  { %v33_v8 = vld [vmem:[%s5460_s0 + $0x8] sm:$0xff]  ;;  %306 = vmatpush.msra.mxu1 %v112_v5  ;;  %484 = vmatpush.msra.mxu3 %v113_v7  ;;  %v103_v14 = vld [vmem:[%s5459_s1 + $0xb8] sm:$0xff]  ;;  %v100_v15 = vld [vmem:[%s5459_s1 + $0xa0] sm:$0xff] }
   0x6   :  { %2854 = vmatmul.msk.f32.vlgmr.msra.gmra.mxu1 %vm122_vm1, %v33_v8  ;;  %2879 = vmatmul.msk.f32.vlgmr.msra.gmra.mxu3 %vm122_vm1, %v33_v8  ;;  %v105_v12 = vld [vmem:[%s5459_s1 + $0xc8] sm:$0xff]  ;;  %v35_v17 = vld [vmem:[%s5460_s0 + $0x18] sm:$0xff]  ;;  %v98_v18 = vld [vmem:[%s5459_s1 + $0x90] sm:$0xff] }
   0x7   :  { %204 = vmatpush.msra.mxu0 %v106_v9  ;;  %382 = vmatpush.msra.mxu2 %v107_v10  ;;  %v101_v16 = vld [vmem:[%s5459_s1 + $0xa8] sm:$0xff]  ;;  %v99_v19 = vld [vmem:[%s5459_s1 + $0x98] sm:$0xff]  ;;  %v96_v20 = vld [vmem:[%s5459_s1 + $0x80] sm:$0xff] }
   0x8   :  { %v97_v21 = vld [vmem:[%s5459_s1 + $0x88] sm:$0xff]  ;;  %v94_v22 = vld [vmem:[%s5459_s1 + $0x70] sm:$0xff]  ;;  %v95_v23 = vld [vmem:[%s5459_s1 + $0x78] sm:$0xff] }
   0x9   :  { %205 = vmatpush.msra.mxu0 %v104_v11  ;;  %383 = vmatpush.msra.mxu2 %v105_v12  ;;  %v92_v24 = vld [vmem:[%s5459_s1 + $0x60] sm:$0xff]  ;;  %v93_v25 = vld [vmem:[%s5459_s1 + $0x68] sm:$0xff]  ;;  %v90_v27 = vld [vmem:[%s5459_s1 + $0x50] sm:$0xff] }
   0xa   :  { %v37_v26 = vld [vmem:[%s5460_s0 + $0x28] sm:$0xff]  ;;  %v91_v28 = vld [vmem:[%s5459_s1 + $0x58] sm:$0xff]  ;;  %v88_v29 = vld [vmem:[%s5459_s1 + $0x40] sm:$0xff] }
   0xb   :  { %206 = vmatpush.msra.mxu0 %v102_v13  ;;  %384 = vmatpush.msra.mxu2 %v103_v14  ;;  %v89_v30 = vld [vmem:[%s5459_s1 + $0x48] sm:$0xff]  ;;  %v86_v31 = vld [vmem:[%s5459_s1 + $0x30] sm:$0xff]  ;;  %v87_v32 = vld [vmem:[%s5459_s1 + $0x38] sm:$0xff] }
   0xc   :  { %v84_v33 = vld [vmem:[%s5459_s1 + $0x20] sm:$0xff]  ;;  %v85_v34 = vld [vmem:[%s5459_s1 + $0x28] sm:$0xff]  ;;  %v39_v35 = vld [vmem:[%s5460_s0 + $0x38] sm:$0xff] }
   0xd   :  { %207 = vmatpush.msra.mxu0 %v100_v15  ;;  %385 = vmatpush.msra.mxu2 %v101_v16  ;;  %v82_v36 = vld [vmem:[%s5459_s1 + $0x10] sm:$0xff]  ;;  %v83_v37 = vld [vmem:[%s5459_s1 + $0x18] sm:$0xff]  ;;  %v80_v38 = vld [vmem:[%s5459_s1] sm:$0xff] }
   0xe   :  { %2855 = vmatmul.msk.f32.gmra.mxu1 %vm122_vm1, %v35_v17  ;;  %2880 = vmatmul.msk.f32.gmra.mxu3 %vm122_vm1, %v35_v17  ;;  %v81_v39 = vld [vmem:[%s5459_s1 + $0x8] sm:$0xff]  ;;  %v32_v40 = vld [vmem:[%s5460_s0] sm:$0xff]  ;;  %v34_v42 = vld [vmem:[%s5460_s0 + $0x10] sm:$0xff] }
   0xf   :  { %208 = vmatpush.msra.mxu0 %v98_v18  ;;  %386 = vmatpush.msra.mxu2 %v99_v19  ;;  %v41_v41 = vld [vmem:[%s5460_s0 + $0x48] sm:$0xff]  ;;  %v43_v43 = vld [vmem:[%s5460_s0 + $0x58] sm:$0xff]  ;;  %v36_v44 = vld [vmem:[%s5460_s0 + $0x20] sm:$0xff] }
  0x10   :  { %v45_v45 = vld [vmem:[%s5460_s0 + $0x68] sm:$0xff]  ;;  %v38_v46 = vld [vmem:[%s5460_s0 + $0x30] sm:$0xff]  ;;  %v47_v47 = vld [vmem:[%s5460_s0 + $0x78] sm:$0xff] }
  0x11   :  { %209 = vmatpush.msra.mxu0 %v96_v20  ;;  %387 = vmatpush.msra.mxu2 %v97_v21  ;;  %v40_v48 = vld [vmem:[%s5460_s0 + $0x40] sm:$0xff]  ;;  %v49_v49 = vld [vmem:[%s5460_s0 + $0x88] sm:$0xff]  ;;  %v42_v50 = vld [vmem:[%s5460_s0 + $0x50] sm:$0xff] }
  0x12   :  { %v51_v51 = vld [vmem:[%s5460_s0 + $0x98] sm:$0xff]  ;;  %v44_v52 = vld [vmem:[%s5460_s0 + $0x60] sm:$0xff]  ;;  %v1811_v53 = vld [vmem:[%s5461_s3 + $0x1f0] sm:$0xff] }
  0x13   :  { %210 = vmatpush.msra.mxu0 %v94_v22  ;;  %388 = vmatpush.msra.mxu2 %v95_v23  ;;  %v53_v54 = vld [vmem:[%s5460_s0 + $0xa8] sm:$0xff]  ;;  %v1779_v55 = vld [vmem:[%s5461_s3 + $0xf0] sm:$0xff]  ;;  %v55_v57 = vld [vmem:[%s5460_s0 + $0xb8] sm:$0xff] }
  0x14   :  { %1956 = vmatpush.msrb.mxu3 %v1811_v53  ;;  %v46_v56 = vld [vmem:[%s5460_s0 + $0x70] sm:$0xff]  ;;  %1915 = vmatpush.msrb.mxu1 %v1779_v55  ;;  %v1809_v58 = vld [vmem:[%s5461_s3 + $0x1e0] sm:$0xff]  ;;  %v57_v60 = vld [vmem:[%s5460_s0 + $0xc8] sm:$0xff] }
  0x15   :  { %211 = vmatpush.msra.mxu0 %v92_v24  ;;  %389 = vmatpush.msra.mxu2 %v93_v25  ;;  %v48_v59 = vld [vmem:[%s5460_s0 + $0x80] sm:$0xff]  ;;  %v50_v62 = vld [vmem:[%s5460_s0 + $0x90] sm:$0xff]  ;;  %v59_v63 = vld [vmem:[%s5460_s0 + $0xd8] sm:$0xff] }
  0x16   :  { %2856 = vmatmul.msk.f32.gmra.mxu1 %vm122_vm1, %v37_v26  ;;  %2881 = vmatmul.msk.f32.gmra.mxu3 %vm122_vm1, %v37_v26  ;;  %v1777_v61 = vld [vmem:[%s5461_s3 + $0xe0] sm:$0xff]  ;;  %v1807_v0 = vld [vmem:[%s5461_s3 + $0x1d0] sm:$0xff]  ;;  %v61_v3 = vld [vmem:[%s5460_s0 + $0xe8] sm:$0xff] }
  0x17   :  { %212 = vmatpush.msra.mxu0 %v90_v27  ;;  %390 = vmatpush.msra.mxu2 %v91_v28  ;;  %v52_v1 = vld [vmem:[%s5460_s0 + $0xa0] sm:$0xff]  ;;  %v1775_v2 = vld [vmem:[%s5461_s3 + $0xd0] sm:$0xff]  ;;  %v63_v6 = vld [vmem:[%s5460_s0 + $0xf8] sm:$0xff] }
  0x18   :  { %1957 = vmatpush.msrb.mxu3 %v1809_v58  ;;  %1916 = vmatpush.msrb.mxu1 %v1777_v61  ;;  %v54_v4 = vld [vmem:[%s5460_s0 + $0xb0] sm:$0xff]  ;;  %v1805_v5 = vld [vmem:[%s5461_s3 + $0x1c0] sm:$0xff]  ;;  %v65_v10 = vld [vmem:[%s5460_s0 + $0x108] sm:$0xff] }
  0x19   :  { %213 = vmatpush.msra.mxu0 %v88_v29  ;;  %391 = vmatpush.msra.mxu2 %v89_v30  ;;  %v1773_v7 = vld [vmem:[%s5461_s3 + $0xc0] sm:$0xff]  ;;  %v58_v11 = vld [vmem:[%s5460_s0 + $0xd0] sm:$0xff]  ;;  %v67_v14 = vld [vmem:[%s5460_s0 + $0x118] sm:$0xff] }
  0x1a   :  { %1958 = vmatpush.msrb.mxu3 %v1807_v0  ;;  %1917 = vmatpush.msrb.mxu1 %v1775_v2  ;;  %v56_v8 = vld [vmem:[%s5460_s0 + $0xc0] sm:$0xff]  ;;  %v1803_v15 = vld [vmem:[%s5461_s3 + $0x1b0] sm:$0xff]  ;;  %v69_v22 = vld [vmem:[%s5460_s0 + $0x128] sm:$0xff] }
  0x1b   :  { %214 = vmatpush.msra.mxu0 %v86_v31  ;;  %392 = vmatpush.msra.mxu2 %v87_v32  ;;  %v1771_v16 = vld [vmem:[%s5461_s3 + $0xb0] sm:$0xff]  ;;  %v60_v17 = vld [vmem:[%s5460_s0 + $0xe0] sm:$0xff]  ;;  %v73_v53 = vld [vmem:[%s5460_s0 + $0x148] sm:$0xff] }
  0x1c   :  { %1959 = vmatpush.msrb.mxu3 %v1805_v5  ;;  %1918 = vmatpush.msrb.mxu1 %v1773_v7  ;;  %v1769_v19 = vld [vmem:[%s5461_s3 + $0xa0] sm:$0xff]  ;;  %v1767_v23 = vld [vmem:[%s5461_s3 + $0x90] sm:$0xff] }
  0x1d   :  { %215 = vmatpush.msra.mxu0 %v84_v33  ;;  %393 = vmatpush.msra.mxu2 %v85_v34  ;;  %v1801_v20 = vld [vmem:[%s5461_s3 + $0x1a0] sm:$0xff]  ;;  %v1799_v24 = vld [vmem:[%s5461_s3 + $0x190] sm:$0xff]  ;;  %v71_v33 = vld [vmem:[%s5460_s0 + $0x138] sm:$0xff] }
  0x1e   :  { %2857 = vmatmul.msk.f32.gmra.mxu1 %vm122_vm1, %v39_v35  ;;  %2882 = vmatmul.msk.f32.gmra.mxu3 %vm122_vm1, %v39_v35  ;;  %v1765_v25 = vld [vmem:[%s5461_s3 + $0x80] sm:$0xff]  ;;  %v62_v27 = vld [vmem:[%s5460_s0 + $0xf0] sm:$0xff] }
  0x1f   :  { %216 = vmatpush.msra.mxu0 %v82_v36  ;;  %394 = vmatpush.msra.mxu2 %v83_v37  ;;  %v1797_v26 = vld [vmem:[%s5461_s3 + $0x180] sm:$0xff]  ;;  %v1763_v28 = vld [vmem:[%s5461_s3 + $0x70] sm:$0xff] }
  0x20   :  { %1960 = vmatpush.msrb.mxu3 %v1803_v15  ;;  %1919 = vmatpush.msrb.mxu1 %v1771_v16  ;;  %v1795_v29 = vld [vmem:[%s5461_s3 + $0x170] sm:$0xff]  ;;  %v1761_v31 = vld [vmem:[%s5461_s3 + $0x60] sm:$0xff] }
  0x21   :  { %217 = vmatpush.msra.mxu0 %v80_v38  ;;  %395 = vmatpush.msra.mxu2 %v81_v39  ;;  %v1793_v32 = vld [vmem:[%s5461_s3 + $0x160] sm:$0xff]  ;;  %v1875_v36 = vld [vmem:[%s5461_s3 + $0x3f0] sm:$0xff] }
  0x22   :  { %218 = vmatmul.f32.vlgmr.msra.gmra.mxu0 %v32_v40  ;;  %396 = vmatmul.f32.vlgmr.msra.gmra.mxu2 %v32_v40  ;;  %v116_v34 = vld [vmem:[%s5462_s2] sm:$0x3]  ;;  %v1843_v37 = vld [vmem:[%s5461_s3 + $0x2f0] sm:$0xff] }
  0x23   :  { %1920 = vmatpush.msrb.mxu1 %v1769_v19  ;;  %1961 = vmatpush.msrb.mxu3 %v1801_v20  ;;  %v1759_v38 = vld [vmem:[%s5461_s3 + $0x50] sm:$0xff]  ;;  %v1757_v40 = vld [vmem:[%s5461_s3 + $0x40] sm:$0xff] }
  0x24   :  { %2038 = vmatpush.msrb.mxu2 %v1875_v36  ;;  %1997 = vmatpush.msrb.mxu0 %v1843_v37  ;;  %v1791_v39 = vld [vmem:[%s5461_s3 + $0x150] sm:$0xff]  ;;  %v1841_v58 = vld [vmem:[%s5461_s3 + $0x2e0] sm:$0xff] }
  0x25   :  { %1921 = vmatpush.msrb.mxu1 %v1767_v23  ;;  %1962 = vmatpush.msrb.mxu3 %v1799_v24  ;;  %v1783_v55 = vld [vmem:[%s5461_s3 + $0x110] sm:$0xff]  ;;  %v1837_v15 = vld [vmem:[%s5461_s3 + $0x2c0] sm:$0xff] }
  0x26   :  { %2858 = vmatmul.msk.f32.gmra.mxu1 %vm122_vm1, %v41_v41  ;;  %2883 = vmatmul.msk.f32.gmra.mxu3 %vm122_vm1, %v41_v41  ;;  %v1789_v41 = vld [vmem:[%s5461_s3 + $0x140] sm:$0xff]  ;;  %v66_v0 = vld [vmem:[%s5460_s0 + $0x110] sm:$0xff] }
  0x27   :  { %1922 = vmatpush.msrb.mxu1 %v1765_v25  ;;  %1963 = vmatpush.msrb.mxu3 %v1797_v26  ;;  %v1839_v7 = vld [vmem:[%s5461_s3 + $0x2d0] sm:$0xff]  ;;  %v1869_v16 = vld [vmem:[%s5461_s3 + $0x3c0] sm:$0xff] }
  0x28   :  { %1998 = vmatpush.msrb.mxu0 %v1841_v58  ;;  %v68_v26 = vld [vmem:[%s5460_s0 + $0x120] sm:$0xff] }
  0x29   :  { %1923 = vmatpush.msrb.mxu1 %v1763_v28  ;;  %1964 = vmatpush.msrb.mxu3 %v1795_v29  ;;  %v1867_v28 = vld [vmem:[%s5461_s3 + $0x3b0] sm:$0xff]  ;;  %v1833_v37 = vld [vmem:[%s5461_s3 + $0x2a0] sm:$0xff] }
  0x2a   :  { %221 = vmatmul.f32.gmra.mxu0 %v34_v42  ;;  %399 = vmatmul.f32.gmra.mxu2 %v34_v42  ;;  %v3488_v42 = vperm.slane %v116_v34, 0 }
  0x2b   :  { %1924 = vmatpush.msrb.mxu1 %v1761_v31  ;;  %1965 = vmatpush.msrb.mxu3 %v1793_v32 }
  0x2c   :  { %1999 = vmatpush.msrb.mxu0 %v1839_v7  ;;  %v70_v7 = vld [vmem:[%s5460_s0 + $0x130] sm:$0xff] }
  0x2d   :  { %1925 = vmatpush.msrb.mxu1 %v1759_v38  ;;  %1966 = vmatpush.msrb.mxu3 %v1791_v39  ;;  %v1865_v38 = vld [vmem:[%s5461_s3 + $0x3a0] sm:$0xff] }
  0x2e   :  { %2859 = vmatmul.msk.f32.gmra.mxu1 %vm122_vm1, %v43_v43  ;;  %2884 = vmatmul.msk.f32.gmra.mxu3 %vm122_vm1, %v43_v43 }
  0x2f   :  { %1926 = vmatpush.msrb.mxu1 %v1757_v40  ;;  %1967 = vmatpush.msrb.mxu3 %v1789_v41 }
  0x30   :  { %2000 = vmatpush.msrb.mxu0 %v1837_v15 }
  0x32   :  { %224 = vmatmul.f32.gmra.mxu0 %v36_v44  ;;  %402 = vmatmul.f32.gmra.mxu2 %v36_v44  ;;  %v64_v44 = vld [vmem:[%s5460_s0 + $0x100] sm:$0xff] }
  0x36   :  { %2860 = vmatmul.msk.f32.gmra.mxu1 %vm122_vm1, %v45_v45  ;;  %2885 = vmatmul.msk.f32.gmra.mxu3 %vm122_vm1, %v45_v45  ;;  %v1755_v45 = vld [vmem:[%s5461_s3 + $0x30] sm:$0xff] }
  0x37   :  { %1927 = vmatpush.msrb.mxu1 %v1755_v45  ;;  %v1831_v45 = vld [vmem:[%s5461_s3 + $0x290] sm:$0xff] }
  0x3a   :  { %227 = vmatmul.f32.gmra.mxu0 %v38_v46  ;;  %405 = vmatmul.f32.gmra.mxu2 %v38_v46  ;;  %v1787_v46 = vld [vmem:[%s5461_s3 + $0x130] sm:$0xff] }
  0x3b   :  { %1968 = vmatpush.msrb.mxu3 %v1787_v46  ;;  %v1863_v46 = vld [vmem:[%s5461_s3 + $0x390] sm:$0xff] }
  0x3e   :  { %2861 = vmatmul.msk.f32.gmra.mxu1 %vm122_vm1, %v47_v47  ;;  %2886 = vmatmul.msk.f32.gmra.mxu3 %vm122_vm1, %v47_v47 }
  0x42   :  { %230 = vmatmul.f32.gmra.mxu0 %v40_v48  ;;  %408 = vmatmul.f32.gmra.mxu2 %v40_v48  ;;  %v1753_v48 = vld [vmem:[%s5461_s3 + $0x20] sm:$0xff] }
  0x43   :  { %1928 = vmatpush.msrb.mxu1 %v1753_v48 }
  0x46   :  { %2862 = vmatmul.msk.f32.gmra.mxu1 %vm122_vm1, %v49_v49  ;;  %2887 = vmatmul.msk.f32.gmra.mxu3 %vm122_vm1, %v49_v49  ;;  %v1785_v49 = vld [vmem:[%s5461_s3 + $0x120] sm:$0xff] }
  0x47   :  { %1969 = vmatpush.msrb.mxu3 %v1785_v49 }
  0x49   :  { %1970 = vmatpush.msrb.mxu3 %v1783_v55 }
  0x4a   :  { %233 = vmatmul.f32.gmra.mxu0 %v42_v50  ;;  %411 = vmatmul.f32.gmra.mxu2 %v42_v50 }
  0x4e   :  { %2863 = vmatmul.msk.f32.gmra.mxu1 %vm122_vm1, %v51_v51  ;;  %2888 = vmatmul.msk.f32.gmra.mxu3 %vm122_vm1, %v51_v51  ;;  %v3508_v51 = vperm.slane %v116_v34, 1 }
  0x52   :  { %236 = vmatmul.f32.gmra.mxu0 %v44_v52  ;;  %414 = vmatmul.f32.gmra.mxu2 %v44_v52 }
  0x56   :  { %2864 = vmatmul.msk.f32.gmra.mxu1 %vm122_vm1, %v53_v54  ;;  %2889 = vmatmul.msk.f32.gmra.mxu3 %vm122_vm1, %v53_v54  ;;  %v1751_v54 = vld [vmem:[%s5461_s3 + $0x10] sm:$0xff] }
  0x57   :  { %1929 = vmatpush.msrb.mxu1 %v1751_v54  ;;  %v1861_v54 = vld [vmem:[%s5461_s3 + $0x380] sm:$0xff] }
  0x5a   :  { %239 = vmatmul.f32.gmra.mxu0 %v46_v56  ;;  %417 = vmatmul.f32.gmra.mxu2 %v46_v56 }
  0x5e   :  { %2865 = vmatmul.msk.f32.gmra.mxu1 %vm122_vm1, %v55_v57  ;;  %2890 = vmatmul.msk.f32.gmra.mxu3 %vm122_vm1, %v55_v57  ;;  %v1873_v57 = vld [vmem:[%s5461_s3 + $0x3e0] sm:$0xff] }
  0x5f   :  { %2039 = vmatpush.msrb.mxu2 %v1873_v57 }
  0x62   :  { %242 = vmatmul.f32.gmra.mxu0 %v48_v59  ;;  %420 = vmatmul.f32.gmra.mxu2 %v48_v59  ;;  %v1749_v59 = vld [vmem:[%s5461_s3] sm:$0xff] }
  0x63   :  { %1930 = vmatpush.msrb.mxu1 %v1749_v59 }
  0x66   :  { %2866 = vmatmul.msk.f32.gmra.mxu1 %vm122_vm1, %v57_v60  ;;  %2891 = vmatmul.msk.f32.gmra.mxu3 %vm122_vm1, %v57_v60 }
  0x6a   :  { %245 = vmatmul.f32.gmra.mxu0 %v50_v62  ;;  %423 = vmatmul.f32.gmra.mxu2 %v50_v62  ;;  %v1781_v62 = vld [vmem:[%s5461_s3 + $0x100] sm:$0xff] }
  0x6b   :  { %1971 = vmatpush.msrb.mxu3 %v1781_v62 }
  0x6e   :  { %2867 = vmatmul.msk.f32.gmra.mxu1 %vm122_vm1, %v59_v63  ;;  %2892 = vmatmul.msk.f32.gmra.mxu3 %vm122_vm1, %v59_v63 }
  0x72   :  { %248 = vmatmul.f32.gmra.mxu0 %v52_v1  ;;  %426 = vmatmul.f32.gmra.mxu2 %v52_v1 }
  0x76   :  { %2868 = vmatmul.msk.f32.gmra.mxu1 %vm122_vm1, %v61_v3  ;;  %2893 = vmatmul.msk.f32.gmra.mxu3 %vm122_vm1, %v61_v3 }
  0x7a   :  { %251 = vmatmul.f32.gmra.mxu0 %v54_v4  ;;  %429 = vmatmul.f32.gmra.mxu2 %v54_v4 }
  0x7e   :  { %2869 = vmatmul.msk.f32.gmra.mxu1 %vm122_vm1, %v63_v6  ;;  %2894 = vmatmul.msk.f32.gmra.mxu3 %vm122_vm1, %v63_v6  ;;  %v75_v6 = vld [vmem:[%s5460_s0 + $0x158] sm:$0xff] }
  0x82   :  { %254 = vmatmul.f32.gmra.mxu0 %v56_v8  ;;  %432 = vmatmul.f32.gmra.mxu2 %v56_v8  ;;  %v1871_v8 = vld [vmem:[%s5461_s3 + $0x3d0] sm:$0xff] }
  0x83   :  { %v3388_v9 = vpop.f32.mrf.mxu1  ;;  %2040 = vmatpush.msrb.mxu2 %v1871_v8 }
  0x85   :  { %2041 = vmatpush.msrb.mxu2 %v1869_v16 }
  0x86   :  { %2870 = vmatmul.msk.f32.gmra.mxu1 %vm122_vm1, %v65_v10  ;;  %2895 = vmatmul.msk.f32.gmra.mxu3 %vm122_vm1, %v65_v10 }
  0x87   :  { %2042 = vmatpush.msrb.mxu2 %v1867_v28 }
  0x89   :  { %v3398_v12 = vpop.f32.mrf.mxu3  ;;  %2043 = vmatpush.msrb.mxu2 %v1865_v38 }
  0x8a   :  { %257 = vmatmul.f32.gmra.mxu0 %v58_v11  ;;  %435 = vmatmul.f32.gmra.mxu2 %v58_v11 }
  0x8b   :  { %v3400_v13 = vpop.f32.mrf.mxu1  ;;  %2044 = vmatpush.msrb.mxu2 %v1863_v46 }
  0x8d   :  { %2045 = vmatpush.msrb.mxu2 %v1861_v54  ;;  %v72_v54 = vld [vmem:[%s5460_s0 + $0x140] sm:$0xff] }
  0x8e   :  { %2871 = vmatmul.msk.f32.gmra.mxu1 %vm122_vm1, %v67_v14  ;;  %2896 = vmatmul.msk.f32.gmra.mxu3 %vm122_vm1, %v67_v14 }
  0x91   :  { %v3416_v18 = vpop.f32.mrf.mxu3 }
  0x92   :  { %260 = vmatmul.f32.gmra.mxu0 %v60_v17  ;;  %438 = vmatmul.f32.gmra.mxu2 %v60_v17 }
  0x93   :  { %v3424_v21 = vpop.f32.mrf.mxu1 }
  0x96   :  { %2872 = vmatmul.msk.f32.gmra.mxu1 %vm122_vm1, %v69_v22  ;;  %2897 = vmatmul.msk.f32.gmra.mxu3 %vm122_vm1, %v69_v22 }
  0x99   :  { %v3452_v30 = vpop.f32.mrf.mxu3 }
  0x9a   :  { %263 = vmatmul.f32.gmra.mxu0 %v62_v27  ;;  %441 = vmatmul.f32.gmra.mxu2 %v62_v27  ;;  %v1835_v27 = vld [vmem:[%s5461_s3 + $0x2b0] sm:$0xff] }
  0x9b   :  { %v3466_v35 = vpop.f32.mrf.mxu1  ;;  %2001 = vmatpush.msrb.mxu0 %v1835_v27 }
  0x9d   :  { %2002 = vmatpush.msrb.mxu0 %v1833_v37 }
  0x9e   :  { %2873 = vmatmul.msk.f32.gmra.mxu1 %vm122_vm1, %v71_v33  ;;  %2898 = vmatmul.msk.f32.gmra.mxu3 %vm122_vm1, %v71_v33 }
  0x9f   :  { %v219_v43 = vpop.f32.mrf.mxu0  ;;  %2003 = vmatpush.msrb.mxu0 %v1831_v45  ;;  %v1853_v45 = vld [vmem:[%s5461_s3 + $0x340] sm:$0xff] }
  0xa0   :  { %v220_v50 = vadd.f32 %v219_v43, %v3488_v42  ;;  %v77_v43 = vld [vmem:[%s5460_s0 + $0x168] sm:$0xff] }
  0xa1   :  { %v3499_v47 = vpop.f32.mrf.mxu3 }
  0xa2   :  { %266 = vmatmul.f32.gmra.mxu0 %v64_v44  ;;  %444 = vmatmul.f32.gmra.mxu2 %v64_v44  ;;  %v309_v60 = vadd.f32 %v3388_v9, %v220_v50 }
  0xa3   :  { %v3510_v52 = vpop.f32.mrf.mxu1 }
  0xa5   :  { %v397_v56 = vpop.f32.mrf.mxu2 }
  0xa6   :  { %v398_v61 = vadd.f32 %v397_v56, %v3508_v51  ;;  %2874 = vmatmul.msk.f32.gmra.mxu1 %vm122_vm1, %v73_v53  ;;  %2899 = vmatmul.msk.f32.gmra.mxu3 %vm122_vm1, %v73_v53  ;;  %v1829_v53 = vld [vmem:[%s5461_s3 + $0x280] sm:$0xff] }
  0xa7   :  { %v222_v63 = vpop.f32.mrf.mxu0  ;;  %2004 = vmatpush.msrb.mxu0 %v1829_v53 }
  0xa8   :  { %v487_v1 = vadd.f32 %v3398_v12, %v398_v61  ;;  %v223_v4 = vadd.f32 %v222_v63, %v3488_v42  ;;  %v1827_v63 = vld [vmem:[%s5461_s3 + $0x270] sm:$0xff] }
  0xa9   :  { %v3541_v2 = vpop.f32.mrf.mxu3  ;;  %2005 = vmatpush.msrb.mxu0 %v1827_v63 }
  0xaa   :  { %v558_v3 = vmax.f32 %v309_v60, %v487_v1  ;;  %269 = vmatmul.f32.gmra.mxu0 %v66_v0  ;;  %447 = vmatmul.f32.gmra.mxu2 %v66_v0  ;;  %v312_v23 = vadd.f32 %v3400_v13, %v223_v4  ;;  %v1859_v0 = vld [vmem:[%s5461_s3 + $0x370] sm:$0xff] }
  0xab   :  { %v3544_v5 = vpop.f32.mrf.mxu1  ;;  %2046 = vmatpush.msrb.mxu2 %v1859_v0 }
  0xac   :  { %v606_v9 = vrot.slane %v558_v3, 2  ;;  %v607_v10 = vrot.slane %v558_v3, 4  ;;  %v608_v11 = vrot.slane %v558_v3, 6  ;;  %v2903_v12 = vrot.slane %v558_v3, 9 }
  0xad   :  { %v400_v14 = vpop.f32.mrf.mxu2 }
  0xae   :  { %v2904_v17 = vrot.slane %v606_v9, 9  ;;  %v2905_v19 = vrot.slane %v607_v10, 9  ;;  %v2906_v20 = vrot.slane %v608_v11, 9  ;;  %v1038_v22 = vmax.f32 %v558_v3, %v2903_v12  ;;  %2875 = vmatmul.msk.f32.gmra.mxu1 %vm122_vm1, %v75_v6  ;;  %2900 = vmatmul.msk.f32.gmra.mxu3 %vm122_vm1, %v75_v6 }
  0xaf   :  { %v401_v24 = vadd.f32 %v400_v14, %v3508_v51  ;;  %v225_v25 = vpop.f32.mrf.mxu0 }
  0xb0   :  { %v1039_v29 = vmax.f32 %v606_v9, %v2904_v17  ;;  %v1041_v31 = vmax.f32 %v608_v11, %v2906_v20  ;;  %v1134_v13 = vmax.f32 %v1038_v22, 0.0  ;;  %v226_v32 = vadd.f32 %v225_v25, %v3488_v42  ;;  %v1825_v20 = vld [vmem:[%s5461_s3 + $0x260] sm:$0xff] }
  0xb1   :  { %v490_v33 = vadd.f32 %v3416_v18, %v401_v24  ;;  %v3576_v34 = vpop.f32.mrf.mxu3  ;;  %v1040_v36 = vmax.f32 %v607_v10, %v2905_v19  ;;  %v79_v24 = vld [vmem:[%s5460_s0 + $0x178] sm:$0xff]  ;;  %2006 = vmatpush.msrb.mxu0 %v1825_v20 }
  0xb2   :  { %v1135_v39 = vmax.f32 %v1039_v29, 0.0  ;;  %v1137_v40 = vmax.f32 %v1041_v31, 0.0  ;;  %272 = vmatmul.f32.gmra.mxu0 %v68_v26  ;;  %450 = vmatmul.f32.gmra.mxu2 %v68_v26  ;;  %v1294_v48 = vperm.slane %v1134_v13, 0  ;;  %v315_v50 = vadd.f32 %v3424_v21, %v226_v32  ;;  %v1855_v13 = vld [vmem:[%s5461_s3 + $0x350] sm:$0xff] }
  0xb3   :  { %v559_v18 = vmax.f32 %v312_v23, %v490_v33  ;;  %v3584_v41 = vpop.f32.mrf.mxu1  ;;  %v1136_v44 = vmax.f32 %v1040_v36, 0.0 }
  0xb4   :  { %v1295_v49 = vperm.slane %v1135_v39, 0  ;;  %v3605_v61 = vperm.slane %v1137_v40, 0 }
  0xb5   :  { %v609_v55 = vrot.slane %v559_v18, 2  ;;  %v610_v56 = vrot.slane %v559_v18, 4  ;;  %v611_v57 = vrot.slane %v559_v18, 6  ;;  %v2907_v58 = vrot.slane %v559_v18, 9  ;;  %v403_v59 = vpop.f32.mrf.mxu2 }
  0xb6   :  { %v404_v60 = vadd.f32 %v403_v59, %v3508_v51  ;;  %2876 = vmatmul.msk.f32.gmra.mxu1 %vm122_vm1, %v77_v43  ;;  %2901 = vmatmul.msk.f32.gmra.mxu3 %vm122_vm1, %v77_v43  ;;  %v1296_v21 = vperm.slane %v1136_v44, 0  ;;  %v1359_v62 = vsel %vm1358_vm2, %v1295_v49, %v1294_v48  ;;  %v1821_v44 = vld [vmem:[%s5461_s3 + $0x240] sm:$0xff] }
  0xb7   :  { %v2908_v1 = vrot.slane %v609_v55, 9  ;;  %v2909_v3 = vrot.slane %v610_v56, 9  ;;  %v1042_v4 = vmax.f32 %v559_v18, %v2907_v58  ;;  %v228_v6 = vpop.f32.mrf.mxu0  ;;  %v2910_v8 = vrot.slane %v611_v57, 9  ;;  %v1851_v58 = vld [vmem:[%s5461_s3 + $0x330] sm:$0xff] }
  0xb8   :  { %v493_v9 = vadd.f32 %v3452_v30, %v404_v60  ;;  %v229_v10 = vadd.f32 %v228_v6, %v3488_v42  ;;  %v1361_v11 = vsel %vm1360_vm3, %v1296_v21, %v1359_v62  ;;  %v1445_v12 = vsel %vm1358_vm2, %v1296_v21, %v1295_v49  ;;  %v1857_v30 = vld [vmem:[%s5461_s3 + $0x360] sm:$0xff] }
  0xb9   :  { %v1043_v14 = vmax.f32 %v609_v55, %v2908_v1  ;;  %v1138_v15 = vmax.f32 %v1042_v4, 0.0  ;;  %v3621_v16 = vpop.f32.mrf.mxu3  ;;  %v1044_v17 = vmax.f32 %v610_v56, %v2909_v3  ;;  %v1045_v19 = vmax.f32 %v611_v57, %v2910_v8  ;;  %2047 = vmatpush.msrb.mxu2 %v1857_v30  ;;  %v1819_v57 = vld [vmem:[%s5461_s3 + $0x230] sm:$0xff]  ;;  %v1849_v6 = vld [vmem:[%s5461_s3 + $0x320] sm:$0xff] }
  0xba   :  { %v3629_v22 = vmax.f32 %v315_v50, %v493_v9  ;;  %v318_v23 = vadd.f32 %v3466_v35, %v229_v10  ;;  %275 = vmatmul.f32.gmra.mxu0 %v70_v7  ;;  %453 = vmatmul.f32.gmra.mxu2 %v70_v7  ;;  %v1363_v25 = vsel %vm1362_vm4, %v3605_v61, %v1361_v11  ;;  %v1823_v35 = vld [vmem:[%s5461_s3 + $0x250] sm:$0xff] }
  0xbb   :  { %v1139_v26 = vmax.f32 %v1043_v14, 0.0  ;;  %v3637_v27 = vperm.slane %v1138_v15, 0  ;;  %v3639_v28 = vpop.f32.mrf.mxu1  ;;  %v1140_v29 = vmax.f32 %v1044_v17, 0.0  ;;  %v1141_v31 = vmax.f32 %v1045_v19, 0.0  ;;  %2007 = vmatpush.msrb.mxu0 %v1823_v35  ;;  %2048 = vmatpush.msrb.mxu2 %v1855_v13  ;;  %v1815_v15 = vld [vmem:[%s5461_s3 + $0x210] sm:$0xff]  ;;  %v1813_v35 = vld [vmem:[%s5461_s3 + $0x200] sm:$0xff] }
  0xbc   :  { %v2911_v32 = vrot.slane %v3629_v22, 9  ;;  %v1446_v33 = vsel %vm1360_vm3, %v3605_v61, %v1445_v12  ;;  %v612_v36 = vrot.slane %v3629_v22, 2  ;;  %v1525_v37 = vsel %vm1358_vm2, %v3605_v61, %v1296_v21  ;;  %v1847_v17 = vld [vmem:[%s5461_s3 + $0x310] sm:$0xff]  ;;  %v1845_v13 = vld [vmem:[%s5461_s3 + $0x300] sm:$0xff] }
  0xbd   :  { %v406_v38 = vpop.f32.mrf.mxu2  ;;  %v3653_v39 = vperm.slane %v1139_v26, 0  ;;  %v3655_v40 = vperm.slane %v1140_v29, 0  ;;  %v3657_v18 = vperm.slane %v1141_v31, 0  ;;  %v1365_v43 = vsel %vm1364_vm5, %v3637_v27, %v1363_v25  ;;  %2008 = vmatpush.msrb.mxu0 %v1821_v44  ;;  %2049 = vmatpush.msrb.mxu2 %v1853_v45 }
  0xbe   :  { %v407_v46 = vadd.f32 %v406_v38, %v3508_v51  ;;  %2877 = vmatmul.msk.f32.gmra.mxu1 %vm122_vm1, %v79_v24  ;;  %2902 = vmatmul.msk.f32.gmra.mxu3 %vm122_vm1, %v79_v24  ;;  %v1046_v48 = vmax.f32 %v3629_v22, %v2911_v32  ;;  %v1447_v49 = vsel %vm1362_vm4, %v3637_v27, %v1446_v33  ;;  %v2912_v50 = vrot.slane %v612_v36, 9 }
  0xbf   :  { %v231_v53 = vpop.f32.mrf.mxu0  ;;  %v1367_v55 = vsel %vm1366_vm6, %v3653_v39, %v1365_v43  ;;  %v1448_v56 = vsel %vm1364_vm5, %v3653_v39, %v1447_v49  ;;  %v1526_v59 = vsel %vm1360_vm3, %v3637_v27, %v1525_v37  ;;  %v613_v60 = vrot.slane %v3629_v22, 4  ;;  %2009 = vmatpush.msrb.mxu0 %v1819_v57  ;;  %2050 = vmatpush.msrb.mxu2 %v1851_v58 }
  0xc0   :  { %v496_v21 = vadd.f32 %v3499_v47, %v407_v46  ;;  %v232_v62 = vadd.f32 %v231_v53, %v3488_v42  ;;  %v1369_v63 = vsel %vm1368_vm7, %v3655_v40, %v1367_v55  ;;  %v1142_v0 = vmax.f32 %v1046_v48, 0.0  ;;  %v1817_v47 = vld [vmem:[%s5461_s3 + $0x220] sm:$0xff]  ;;  %v74_v46 = vld [vmem:[%s5460_s0 + $0x150] sm:$0xff] }
  0xc1   :  { %v3693_v1 = vpop.f32.mrf.mxu3  ;;  %v3697_v3 = vsel %vm1370_vm8, %v3657_v18, %v1369_v63  ;;  %v1449_v4 = vsel %vm1366_vm6, %v3655_v40, %v1448_v56  ;;  %v1047_v7 = vmax.f32 %v612_v36, %v2912_v50  ;;  %v2913_v8 = vrot.slane %v613_v60, 9  ;;  %2010 = vmatpush.msrb.mxu0 %v1817_v47  ;;  %2051 = vmatpush.msrb.mxu2 %v1849_v6 }
  0xc2   :  { %v561_v9 = vmax.f32 %v318_v23, %v496_v21  ;;  %v321_v10 = vadd.f32 %v3510_v52, %v232_v62  ;;  %278 = vmatmul.f32.gmra.mxu0 %v72_v54  ;;  %456 = vmatmul.f32.gmra.mxu2 %v72_v54  ;;  %v3708_v11 = vperm.slane %v1142_v0, 0  ;;  %v1450_v12 = vsel %vm1368_vm7, %v3657_v18, %v1449_v4 }
  0xc3   :  { %v3712_v14 = vpop.f32.mrf.mxu1  ;;  %v1143_v52 = vmax.f32 %v1047_v7, 0.0  ;;  %v1527_v19 = vsel %vm1362_vm4, %v3653_v39, %v1526_v59  ;;  %v1048_v20 = vmax.f32 %v613_v60, %v2913_v8  ;;  %v1605_v30 = vsel %vm1358_vm2, %v3637_v27, %v3605_v61  ;;  %2011 = vmatpush.msrb.mxu0 %v1815_v15  ;;  %2052 = vmatpush.msrb.mxu2 %v1847_v17 }
  0xc4   :  { %v615_v23 = vrot.slane %v561_v9, 2  ;;  %v616_v24 = vrot.slane %v561_v9, 4  ;;  %v617_v25 = vrot.slane %v561_v9, 6  ;;  %v2915_v26 = vrot.slane %v561_v9, 9 }
  0xc5   :  { %v409_v29 = vpop.f32.mrf.mxu2  ;;  %v3727_v31 = vsel %vm1370_vm8, %v3708_v11, %v1450_v12  ;;  %v3735_v61 = vperm.slane %v1143_v52, 0  ;;  %v1528_v32 = vsel %vm1364_vm5, %v3655_v40, %v1527_v19  ;;  %v1144_v33 = vmax.f32 %v1048_v20, 0.0  ;;  %2012 = vmatpush.msrb.mxu0 %v1813_v35  ;;  %2053 = vmatpush.msrb.mxu2 %v1845_v13  ;;  %v76_v13 = vld [vmem:[%s5460_s0 + $0x160] sm:$0xff] }
  0xc6   :  { %5519 = vst [vmem:[#allocation2_spill] sm:$0xff] %v3727_v31  ;;  %v2916_v36 = vrot.slane %v615_v23, 9  ;;  %v2917_v37 = vrot.slane %v616_v24, 9  ;;  %v2918_v38 = vrot.slane %v617_v25, 9  ;;  %v1050_v43 = vmax.f32 %v561_v9, %v2915_v26  ;;  %1931 = vmatmul.f32.vlgmr.msrb.gmra.mxu1 %v3697_v3  ;;  %1972 = vmatmul.f32.vlgmr.msrb.gmra.mxu3 %v3727_v31 }
  0xc7   :  { %v410_v44 = vadd.f32 %v409_v29, %v3508_v51  ;;  %v234_v45 = vpop.f32.mrf.mxu0  ;;  %v1529_v48 = vsel %vm1366_vm6, %v3657_v18, %v1528_v32  ;;  %v3747_v49 = vperm.slane %v1144_v33, 0  ;;  %v1606_v50 = vsel %vm1360_vm3, %v3653_v39, %v1605_v30 }
  0xc8   :  { %v1051_v53 = vmax.f32 %v615_v23, %v2916_v36  ;;  %v1146_v54 = vmax.f32 %v1050_v43, 0.0  ;;  %v235_v55 = vadd.f32 %v234_v45, %v3488_v42  ;;  %v1052_v56 = vmax.f32 %v616_v24, %v2917_v37 }
  0xc9   :  { %v499_v57 = vadd.f32 %v3541_v2, %v410_v44  ;;  %v3753_v58 = vpop.f32.mrf.mxu3  ;;  %v1053_v59 = vmax.f32 %v617_v25, %v2918_v38  ;;  %v1530_v60 = vsel %vm1368_vm7, %v3708_v11, %v1529_v48  ;;  %v1607_v21 = vsel %vm1362_vm4, %v3655_v40, %v1606_v50 }
  0xca   :  { %v1302_v62 = vperm.slane %v1146_v54, 0  ;;  %v324_v63 = vadd.f32 %v3544_v5, %v235_v55  ;;  %281 = vmatmul.f32.gmra.mxu0 %v74_v46  ;;  %459 = vmatmul.f32.gmra.mxu2 %v74_v46  ;;  %v1147_v0 = vmax.f32 %v1051_v53, 0.0  ;;  %v1148_v4 = vmax.f32 %v1052_v56, 0.0 }
  0xcb   :  { %v562_v47 = vmax.f32 %v321_v10, %v499_v57  ;;  %v3760_v6 = vpop.f32.mrf.mxu1  ;;  %v1149_v2 = vmax.f32 %v1053_v59, 0.0  ;;  %v3764_v7 = vsel %vm1370_vm8, %v3735_v61, %v1530_v60  ;;  %v1608_v8 = vsel %vm1364_vm5, %v3657_v18, %v1607_v21 }
  0xcc   :  { %5520 = vst [vmem:[#allocation3_spill] sm:$0xff] %v3764_v7  ;;  %v1303_v9 = vperm.slane %v1147_v0, 0  ;;  %v1304_v12 = vperm.slane %v1148_v4, 0  ;;  %v1609_v5 = vsel %vm1366_vm6, %v3708_v11, %v1608_v8  ;;  %v614_v15 = vrot.slane %v3629_v22, 6 }
  0xcd   :  { %v618_v17 = vrot.slane %v562_v47, 2  ;;  %v619_v52 = vrot.slane %v562_v47, 4  ;;  %v2919_v10 = vrot.slane %v562_v47, 9  ;;  %v412_v19 = vpop.f32.mrf.mxu2  ;;  %v620_v20 = vrot.slane %v562_v47, 6 }
  0xce   :  { %v413_v30 = vadd.f32 %v412_v19, %v3508_v51  ;;  %v3772_v23 = vperm.slane %v1149_v2, 0  ;;  %v1372_v24 = vsel %vm1358_vm2, %v1303_v9, %v1302_v62  ;;  %v1452_v25 = vsel %vm1358_vm2, %v1304_v12, %v1303_v9 }
  0xcf   :  { %v2920_v26 = vrot.slane %v618_v17, 9  ;;  %v1054_v29 = vmax.f32 %v562_v47, %v2919_v10  ;;  %v237_v35 = vpop.f32.mrf.mxu0  ;;  %v2921_v32 = vrot.slane %v619_v52, 9  ;;  %v2922_v33 = vrot.slane %v620_v20, 9 }
  0xd0   :  { %v502_v36 = vadd.f32 %v3576_v34, %v413_v30  ;;  %v238_v37 = vadd.f32 %v237_v35, %v3488_v42  ;;  %v1373_v38 = vsel %vm1360_vm3, %v1304_v12, %v1372_v24  ;;  %v1453_v43 = vsel %vm1360_vm3, %v3772_v23, %v1452_v25 }
  0xd1   :  { %v1150_v44 = vmax.f32 %v1054_v29, 0.0  ;;  %v3784_v45 = vpop.f32.mrf.mxu3  ;;  %v1055_v46 = vmax.f32 %v618_v17, %v2920_v26  ;;  %v1056_v48 = vmax.f32 %v619_v52, %v2921_v32  ;;  %v1057_v50 = vmax.f32 %v620_v20, %v2922_v33  ;;  %v78_v20 = vld [vmem:[%s5460_s0 + $0x170] sm:$0xff] }
  0xd2   :  { %v3786_v53 = vmax.f32 %v324_v63, %v502_v36  ;;  %v327_v54 = vadd.f32 %v3584_v41, %v238_v37  ;;  %284 = vmatmul.f32.gmra.mxu0 %v76_v13  ;;  %462 = vmatmul.f32.gmra.mxu2 %v76_v13  ;;  %v1374_v34 = vsel %vm1362_vm4, %v3772_v23, %v1373_v38  ;;  %v3793_v55 = vrot.slane %v614_v15, 9 }
  0xd3   :  { %v3795_v56 = vperm.slane %v1150_v44, 0  ;;  %v3797_v57 = vpop.f32.mrf.mxu1  ;;  %v1151_v59 = vmax.f32 %v1055_v46, 0.0  ;;  %v1152_v60 = vmax.f32 %v1056_v48, 0.0  ;;  %v1153_v21 = vmax.f32 %v1057_v50, 0.0 }
  0xd4   :  { %v2923_v62 = vrot.slane %v3786_v53, 9  ;;  %v1610_v41 = vsel %vm1368_vm7, %v3735_v61, %v1609_v5  ;;  %v621_v63 = vrot.slane %v3786_v53, 2  ;;  %v1532_v0 = vsel %vm1358_vm2, %v3772_v23, %v1304_v12 }
  0xd5   :  { %v415_v4 = vpop.f32.mrf.mxu2  ;;  %v3805_v47 = vperm.slane %v1151_v59, 0  ;;  %v3807_v2 = vperm.slane %v1152_v60, 0  ;;  %v3809_v8 = vperm.slane %v1153_v21, 0  ;;  %v1375_v9 = vsel %vm1364_vm5, %v3795_v56, %v1374_v34 }
  0xd6   :  { %v416_v17 = vadd.f32 %v415_v4, %v3508_v51  ;;  %v1058_v52 = vmax.f32 %v3786_v53, %v2923_v62  ;;  %v1454_v5 = vsel %vm1362_vm4, %v3795_v56, %v1453_v43  ;;  %v3819_v12 = vsel %vm1370_vm8, %v3747_v49, %v1610_v41 }
  0xd7   :  { %5521 = vst [vmem:[#allocation4_spill] sm:$0xff] %v3819_v12  ;;  %v240_v10 = vpop.f32.mrf.mxu0  ;;  %v1376_v19 = vsel %vm1366_vm6, %v3805_v47, %v1375_v9  ;;  %v1455_v30 = vsel %vm1364_vm5, %v3805_v47, %v1454_v5  ;;  %v2924_v24 = vrot.slane %v621_v63, 9  ;;  %v1533_v25 = vsel %vm1360_vm3, %v3795_v56, %v1532_v0 }
  0xd8   :  { %v505_v26 = vadd.f32 %v3621_v16, %v416_v17  ;;  %v241_v29 = vadd.f32 %v240_v10, %v3488_v42  ;;  %v1377_v35 = vsel %vm1368_vm7, %v3807_v2, %v1376_v19  ;;  %v1154_v13 = vmax.f32 %v1058_v52, 0.0 }
  0xd9   :  { %v3834_v32 = vpop.f32.mrf.mxu3  ;;  %v3838_v33 = vsel %vm1370_vm8, %v3809_v8, %v1377_v35  ;;  %v1456_v36 = vsel %vm1366_vm6, %v3807_v2, %v1455_v30  ;;  %v1059_v37 = vmax.f32 %v621_v63, %v2924_v24  ;;  %v1534_v38 = vsel %vm1362_vm4, %v3805_v47, %v1533_v25 }
  0xda   :  { %5522 = vst [vmem:[#allocation5_spill] sm:$0xff] %v3838_v33  ;;  %v564_v16 = vmax.f32 %v327_v54, %v505_v26  ;;  %v330_v43 = vadd.f32 %v3639_v28, %v241_v29  ;;  %1934 = vmatmul.f32.gmra.mxu1 %v3838_v33  ;;  %287 = vmatmul.f32.gmra.mxu0 %v78_v20  ;;  %v3846_v44 = vperm.slane %v1154_v13, 0  ;;  %v622_v59 = vrot.slane %v3786_v53, 4 }
  0xdb   :  { %v1457_v46 = vsel %vm1368_vm7, %v3809_v8, %v1456_v36  ;;  %465 = vmatmul.f32.gmra.mxu2 %v78_v20  ;;  %v3850_v48 = vpop.f32.mrf.mxu1  ;;  %v1155_v50 = vmax.f32 %v1059_v37, 0.0  ;;  %v1535_v34 = vsel %vm1364_vm5, %v3807_v2, %v1534_v38  ;;  %v1612_v28 = vsel %vm1358_vm2, %v3795_v56, %v3772_v23 }
  0xdc   :  { %v624_v54 = vrot.slane %v564_v16, 2  ;;  %v625_v60 = vrot.slane %v564_v16, 4  ;;  %v626_v21 = vrot.slane %v564_v16, 6  ;;  %v2927_v62 = vrot.slane %v564_v16, 9 }
  0xdd   :  { %v418_v41 = vpop.f32.mrf.mxu2  ;;  %v3860_v63 = vsel %vm1370_vm8, %v3846_v44, %v1457_v46  ;;  %v3862_v0 = vperm.slane %v1155_v50, 0  ;;  %v1536_v4 = vsel %vm1366_vm6, %v3809_v8, %v1535_v34  ;;  %v2925_v9 = vrot.slane %v622_v59, 9 }
  0xde   :  { %5523 = vst [vmem:[#allocation6_spill] sm:$0xff] %v3860_v63  ;;  %v2928_v17 = vrot.slane %v624_v54, 9  ;;  %v2929_v52 = vrot.slane %v625_v60, 9  ;;  %v2930_v5 = vrot.slane %v626_v21, 9  ;;  %v1062_v10 = vmax.f32 %v564_v16, %v2927_v62  ;;  %1975 = vmatmul.f32.gmra.mxu3 %v3860_v63 }
  0xdf   :  { %v419_v23 = vadd.f32 %v418_v41, %v3508_v51  ;;  %v243_v19 = vpop.f32.mrf.mxu0  ;;  %v1537_v20 = vsel %vm1368_vm7, %v3846_v44, %v1536_v4  ;;  %v1060_v30 = vmax.f32 %v622_v59, %v2925_v9  ;;  %v1613_v24 = vsel %vm1360_vm3, %v3805_v47, %v1612_v28 }
  0xe0   :  { %v1063_v25 = vmax.f32 %v624_v54, %v2928_v17  ;;  %v1158_v26 = vmax.f32 %v1062_v10, 0.0  ;;  %v244_v29 = vadd.f32 %v243_v19, %v3488_v42  ;;  %v3875_v35 = vsel %vm1370_vm8, %v3862_v0, %v1537_v20 }
  0xe1   :  { %5524 = vst [vmem:[#allocation7_spill] sm:$0xff] %v3875_v35  ;;  %v508_v13 = vadd.f32 %v3693_v1, %v419_v23  ;;  %v3878_v36 = vpop.f32.mrf.mxu3  ;;  %v1156_v37 = vmax.f32 %v1060_v30, 0.0  ;;  %v1614_v38 = vsel %vm1362_vm4, %v3807_v2, %v1613_v24  ;;  %v1064_v16 = vmax.f32 %v625_v60, %v2929_v52 }
  0xe2   :  { %v1310_v46 = vperm.slane %v1158_v26, 0  ;;  %v333_v50 = vadd.f32 %v3712_v14, %v244_v29  ;;  %2013 = vmatmul.f32.vlgmr.msrb.gmra.mxu0 %v3764_v7  ;;  %v1615_v34 = vsel %vm1364_vm5, %v3809_v8, %v1614_v38  ;;  %v1065_v59 = vmax.f32 %v626_v21, %v2930_v5 }
  0xe3   :  { %v565_v28 = vmax.f32 %v330_v43, %v508_v13  ;;  %2054 = vmatmul.f32.vlgmr.msrb.gmra.mxu2 %v3819_v12  ;;  %v3887_v1 = vpop.f32.mrf.mxu1  ;;  %v3889_v54 = vperm.slane %v1156_v37, 0  ;;  %v1616_v62 = vsel %vm1366_vm6, %v3846_v44, %v1615_v34  ;;  %v1159_v60 = vmax.f32 %v1063_v25, 0.0 }
  0xe4   :  { %v1617_v14 = vsel %vm1368_vm7, %v3862_v0, %v1616_v62  ;;  %v1160_v41 = vmax.f32 %v1064_v16, 0.0  ;;  %v1161_v4 = vmax.f32 %v1065_v59, 0.0  ;;  %v3898_v21 = vmax.f32 %v614_v15, %v3793_v55 }
  0xe5   :  { %v627_v43 = vrot.slane %v565_v28, 2  ;;  %v628_v9 = vrot.slane %v565_v28, 4  ;;  %v2931_v17 = vrot.slane %v565_v28, 9  ;;  %v421_v52 = vpop.f32.mrf.mxu2  ;;  %v3902_v5 = vsel %vm1370_vm8, %v3889_v54, %v1617_v14 }
  0xe6   :  { %5525 = vst [vmem:[#allocation8_spill] sm:$0xff] %v3902_v5  ;;  %v422_v10 = vadd.f32 %v421_v52, %v3508_v51  ;;  %v629_v23 = vrot.slane %v565_v28, 6  ;;  %v1311_v19 = vperm.slane %v1159_v60, 0  ;;  %v1312_v20 = vperm.slane %v1160_v41, 0 }
  0xe7   :  { %v2932_v30 = vrot.slane %v627_v43, 9  ;;  %v1066_v24 = vmax.f32 %v565_v28, %v2931_v17  ;;  %v246_v25 = vpop.f32.mrf.mxu0  ;;  %v2933_v26 = vrot.slane %v628_v9, 9  ;;  %v1313_v22 = vperm.slane %v1161_v4, 0 }
  0xe8   :  { %v511_v15 = vadd.f32 %v3753_v58, %v422_v10  ;;  %v247_v55 = vadd.f32 %v246_v25, %v3488_v42  ;;  %v2934_v29 = vrot.slane %v629_v23, 9  ;;  %v1379_v13 = vsel %vm1358_vm2, %v1311_v19, %v1310_v46 }
  0xe9   :  { %v1162_v37 = vmax.f32 %v1066_v24, 0.0  ;;  %v3908_v38 = vpop.f32.mrf.mxu3  ;;  %v1067_v16 = vmax.f32 %v627_v43, %v2932_v30  ;;  %v1068_v34 = vmax.f32 %v628_v9, %v2933_v26  ;;  %v1380_v59 = vsel %vm1360_vm3, %v1312_v20, %v1379_v13 }
  0xea   :  { %v3911_v62 = vmax.f32 %v333_v50, %v511_v15  ;;  %v336_v28 = vadd.f32 %v3760_v6, %v247_v55  ;;  %2016 = vmatmul.f32.gmra.mxu0 %v3875_v35  ;;  %v1069_v60 = vmax.f32 %v629_v23, %v2934_v29  ;;  %v1381_v58 = vsel %vm1362_vm4, %v1313_v22, %v1380_v59 }
  0xeb   :  { %v3916_v14 = vperm.slane %v1162_v37, 0  ;;  %2057 = vmatmul.f32.gmra.mxu2 %v3902_v5  ;;  %v3919_v46 = vpop.f32.mrf.mxu1  ;;  %v1163_v41 = vmax.f32 %v1067_v16, 0.0  ;;  %v1164_v4 = vmax.f32 %v1068_v34, 0.0  ;;  %v1459_v43 = vsel %vm1358_vm2, %v1312_v20, %v1311_v19 }
  0xec   :  { %v1165_v9 = vmax.f32 %v1069_v60, 0.0  ;;  %v2935_v50 = vrot.slane %v3911_v62, 9  ;;  %v1460_v6 = vsel %vm1360_vm3, %v1313_v22, %v1459_v43  ;;  %v630_v17 = vrot.slane %v3911_v62, 2 }
  0xed   :  { %v424_v52 = vpop.f32.mrf.mxu2  ;;  %v3925_v10 = vperm.slane %v1163_v41, 0  ;;  %v3927_v23 = vperm.slane %v1164_v4, 0  ;;  %v1382_v30 = vsel %vm1364_vm5, %v3916_v14, %v1381_v58  ;;  %v1461_v24 = vsel %vm1362_vm4, %v3916_v14, %v1460_v6 }
  0xee   :  { %v425_v19 = vadd.f32 %v424_v52, %v3508_v51  ;;  %v3934_v25 = vperm.slane %v1165_v9, 0  ;;  %v1070_v26 = vmax.f32 %v3911_v62, %v2935_v50  ;;  %v2936_v15 = vrot.slane %v630_v17, 9 }
  0xef   :  { %v249_v55 = vpop.f32.mrf.mxu0  ;;  %v1383_v29 = vsel %vm1366_vm6, %v3925_v10, %v1382_v30  ;;  %v1462_v13 = vsel %vm1364_vm5, %v3925_v10, %v1461_v24  ;;  %v1539_v37 = vsel %vm1358_vm2, %v1313_v22, %v1312_v20  ;;  %v631_v16 = vrot.slane %v3911_v62, 4 }
  0xf0   :  { %v514_v34 = vadd.f32 %v3784_v45, %v425_v19  ;;  %v250_v59 = vadd.f32 %v249_v55, %v3488_v42  ;;  %v1384_v60 = vsel %vm1368_vm7, %v3927_v23, %v1383_v29  ;;  %v1166_v58 = vmax.f32 %v1070_v26, 0.0 }
  0xf1   :  { %v3947_v41 = vpop.f32.mrf.mxu3  ;;  %v3951_v4 = vsel %vm1370_vm8, %v3934_v25, %v1384_v60  ;;  %v1463_v43 = vsel %vm1366_vm6, %v3927_v23, %v1462_v13  ;;  %v1071_v20 = vmax.f32 %v630_v17, %v2936_v15  ;;  %v1540_v9 = vsel %vm1360_vm3, %v3916_v14, %v1539_v37 }
  0xf2   :  { %5526 = vst [vmem:[#allocation9_spill] sm:$0xff] %v3951_v4  ;;  %v567_v45 = vmax.f32 %v336_v28, %v514_v34  ;;  %v339_v50 = vadd.f32 %v3797_v57, %v250_v59  ;;  %1937 = vmatmul.f32.gmra.mxu1 %v3951_v4  ;;  %v3959_v6 = vperm.slane %v1166_v58, 0  ;;  %v1464_v52 = vsel %vm1368_vm7, %v3934_v25, %v1463_v43 }
  0xf3   :  { %v3963_v30 = vpop.f32.mrf.mxu1  ;;  %v1167_v24 = vmax.f32 %v1071_v20, 0.0  ;;  %v1541_v19 = vsel %vm1362_vm4, %v3925_v10, %v1540_v9  ;;  %v2937_v17 = vrot.slane %v631_v16, 9  ;;  %v1619_v26 = vsel %vm1358_vm2, %v3916_v14, %v1313_v22 }
  0xf4   :  { %v633_v28 = vrot.slane %v567_v45, 2  ;;  %v634_v15 = vrot.slane %v567_v45, 4  ;;  %v635_v57 = vrot.slane %v567_v45, 6  ;;  %v2939_v55 = vrot.slane %v567_v45, 9 }
  0xf5   :  { %v427_v29 = vpop.f32.mrf.mxu2  ;;  %v3971_v13 = vsel %vm1370_vm8, %v3959_v6, %v1464_v52  ;;  %v3973_v37 = vperm.slane %v1167_v24, 0  ;;  %v1542_v34 = vsel %vm1364_vm5, %v3927_v23, %v1541_v19  ;;  %v1072_v59 = vmax.f32 %v631_v16, %v2937_v17 }
  0xf6   :  { %5527 = vst [vmem:[#allocation10_spill] sm:$0xff] %v3971_v13  ;;  %v2940_v60 = vrot.slane %v633_v28, 9  ;;  %v2941_v58 = vrot.slane %v634_v15, 9  ;;  %v2942_v43 = vrot.slane %v635_v57, 9  ;;  %v1074_v20 = vmax.f32 %v567_v45, %v2939_v55  ;;  %1978 = vmatmul.f32.gmra.mxu3 %v3971_v13 }
  0xf7   :  { %5528 = vst [vmem:[#allocation11_spill] sm:$0xff] %v3973_v37  ;;  %v428_v22 = vadd.f32 %v427_v29, %v3508_v51  ;;  %v252_v9 = vpop.f32.mrf.mxu0  ;;  %v1543_v5 = vsel %vm1366_vm6, %v3934_v25, %v1542_v34  ;;  %v1168_v52 = vmax.f32 %v1072_v59, 0.0  ;;  %v1620_v24 = vsel %vm1360_vm3, %v3925_v10, %v1619_v26 }
  0xf8   :  { %v1075_v12 = vmax.f32 %v633_v28, %v2940_v60  ;;  %v1170_v4 = vmax.f32 %v1074_v20, 0.0  ;;  %v253_v16 = vadd.f32 %v252_v9, %v3488_v42  ;;  %v1544_v19 = vsel %vm1368_vm7, %v3959_v6, %v1543_v5 }
  0xf9   :  { %v517_v45 = vadd.f32 %v3834_v32, %v428_v22  ;;  %v3989_v17 = vsel %vm1370_vm8, %v3973_v37, %v1544_v19  ;;  %v3991_v55 = vperm.slane %v1168_v52, 0  ;;  %v1621_v29 = vsel %vm1362_vm4, %v3927_v23, %v1620_v24  ;;  %v3995_v34 = vpop.f32.mrf.mxu3 }
  0xfa   :  { %5529 = vst [vmem:[#allocation12_spill] sm:$0xff] %v3989_v17  ;;  %v1318_v26 = vperm.slane %v1170_v4, 0  ;;  %v342_v28 = vadd.f32 %v3850_v48, %v253_v16  ;;  %2019 = vmatmul.f32.gmra.mxu0 %v3989_v17  ;;  %v1622_v5 = vsel %vm1364_vm5, %v3934_v25, %v1621_v29  ;;  %v1076_v32 = vmax.f32 %v634_v15, %v2941_v58 }
  0xfb   :  { %5530 = vst [vmem:[#allocation13_spill] sm:$0xff] %v3991_v55  ;;  %v568_v59 = vmax.f32 %v339_v50, %v517_v45  ;;  %v1623_v60 = vsel %vm1366_vm6, %v3959_v6, %v1622_v5  ;;  %v4003_v20 = vpop.f32.mrf.mxu1  ;;  %v1077_v22 = vmax.f32 %v635_v57, %v2942_v43  ;;  %v1171_v9 = vmax.f32 %v1075_v12, 0.0 }
  0xfc   :  { %v1624_v52 = vsel %vm1368_vm7, %v3973_v37, %v1623_v60  ;;  %v1172_v4 = vmax.f32 %v1076_v32, 0.0  ;;  %v4011_v24 = vsel %vm1358_vm2, %v3653_v39, %v3637_v27 }
  0xfd   :  { %v636_v15 = vrot.slane %v568_v59, 2  ;;  %v637_v50 = vrot.slane %v568_v59, 4  ;;  %v2943_v58 = vrot.slane %v568_v59, 9  ;;  %v4015_v16 = vsel %vm1370_vm8, %v3991_v55, %v1624_v52  ;;  %v430_v57 = vpop.f32.mrf.mxu2 }
  0xfe   :  { %5531 = vst [vmem:[#allocation14_spill] sm:$0xff] %v4015_v16  ;;  %2060 = vmatmul.f32.gmra.mxu2 %v4015_v16  ;;  %v431_v12 = vadd.f32 %v430_v57, %v3508_v51  ;;  %v638_v43 = vrot.slane %v568_v59, 6  ;;  %v1173_v19 = vmax.f32 %v1077_v22, 0.0  ;;  %v1319_v45 = vperm.slane %v1171_v9, 0 }
  0xff   :  { %v2944_v29 = vrot.slane %v636_v15, 9  ;;  %v1078_v5 = vmax.f32 %v568_v59, %v2943_v58  ;;  %v255_v32 = vpop.f32.mrf.mxu0  ;;  %v2945_v27 = vrot.slane %v637_v50, 9  ;;  %v1320_v39 = vperm.slane %v1172_v4, 0 }
 0x100   :  { %v520_v60 = vadd.f32 %v3878_v36, %v431_v12  ;;  %v256_v48 = vadd.f32 %v255_v32, %v3488_v42  ;;  %v2946_v17 = vrot.slane %v638_v43, 9  ;;  %v1321_v52 = vperm.slane %v1173_v19, 0 }
 0x101   :  { %v1174_v13 = vmax.f32 %v1078_v5, 0.0  ;;  %v4021_v35 = vpop.f32.mrf.mxu3  ;;  %v1079_v16 = vmax.f32 %v636_v15, %v2944_v29  ;;  %v1080_v63 = vmax.f32 %v637_v50, %v2945_v27  ;;  %v1386_v57 = vsel %vm1358_vm2, %v1319_v45, %v1318_v26 }
 0x102   :  { %v4024_v22 = vmax.f32 %v342_v28, %v520_v60  ;;  %v345_v59 = vadd.f32 %v3887_v1, %v256_v48  ;;  %v1081_v9 = vmax.f32 %v638_v43, %v2946_v17  ;;  %v1387_v4 = vsel %vm1360_vm3, %v1320_v39, %v1386_v57 }
 0x103   :  { %v4028_v58 = vperm.slane %v1174_v13, 0  ;;  %v4030_v36 = vpop.f32.mrf.mxu1  ;;  %v1175_v12 = vmax.f32 %v1079_v16, 0.0  ;;  %v1176_v19 = vmax.f32 %v1080_v63, 0.0  ;;  %v1388_v5 = vsel %vm1362_vm4, %v1321_v52, %v1387_v4 }
 0x104   :  { %v1177_v32 = vmax.f32 %v1081_v9, 0.0  ;;  %v2947_v15 = vrot.slane %v4024_v22, 9  ;;  %v1466_v26 = vsel %vm1358_vm2, %v1320_v39, %v1319_v45  ;;  %v639_v28 = vrot.slane %v4024_v22, 2 }
 0x105   :  { %v433_v50 = vpop.f32.mrf.mxu2  ;;  %v4036_v1 = vperm.slane %v1175_v12, 0  ;;  %v4038_v17 = vperm.slane %v1176_v19, 0  ;;  %v1389_v13 = vsel %vm1364_vm5, %v4028_v58, %v1388_v5  ;;  %v1467_v48 = vsel %vm1360_vm3, %v1321_v52, %v1466_v26 }
 0x106   :  { %v434_v63 = vadd.f32 %v433_v50, %v3508_v51  ;;  %v4044_v16 = vperm.slane %v1177_v32, 0  ;;  %v1082_v43 = vmax.f32 %v4024_v22, %v2947_v15  ;;  %v1468_v45 = vsel %vm1362_vm4, %v4028_v58, %v1467_v48 }
 0x107   :  { %5532 = vst [vmem:[#allocation15_spill] sm:$0xff] %v4036_v1  ;;  %v258_v29 = vpop.f32.mrf.mxu0  ;;  %v1390_v27 = vsel %vm1366_vm6, %v4036_v1, %v1389_v13  ;;  %v1469_v60 = vsel %vm1364_vm5, %v4036_v1, %v1468_v45  ;;  %v2948_v57 = vrot.slane %v639_v28, 9  ;;  %v1546_v9 = vsel %vm1358_vm2, %v1321_v52, %v1320_v39 }
 0x108   :  { %5533 = vst [vmem:[#allocation16_spill] sm:$0xff] %v4038_v17  ;;  %v523_v4 = vadd.f32 %v3908_v38, %v434_v63  ;;  %v259_v12 = vadd.f32 %v258_v29, %v3488_v42  ;;  %v1391_v19 = vsel %vm1368_vm7, %v4038_v17, %v1390_v27  ;;  %v1178_v5 = vmax.f32 %v1082_v43, 0.0 }
 0x109   :  { %5534 = vst [vmem:[#allocation17_spill] sm:$0xff] %v4044_v16  ;;  %v4058_v32 = vpop.f32.mrf.mxu3  ;;  %v4062_v15 = vsel %vm1370_vm8, %v4044_v16, %v1391_v19  ;;  %v1470_v26 = vsel %vm1366_vm6, %v4038_v17, %v1469_v60  ;;  %v1083_v50 = vmax.f32 %v639_v28, %v2948_v57  ;;  %v1547_v39 = vsel %vm1360_vm3, %v4028_v58, %v1546_v9 }
 0x10a   :  { %5535 = vst [vmem:[#allocation18_spill] sm:$0xff] %v4062_v15  ;;  %v570_v38 = vmax.f32 %v345_v59, %v523_v4  ;;  %v348_v13 = vadd.f32 %v3919_v46, %v259_v12  ;;  %1940 = vmatmul.f32.gmra.mxu1 %v4062_v15  ;;  %v4070_v48 = vperm.slane %v1178_v5, 0  ;;  %v1471_v63 = vsel %vm1368_vm7, %v4044_v16, %v1470_v26 }
 0x10b   :  { %v4074_v43 = vpop.f32.mrf.mxu1  ;;  %v1179_v45 = vmax.f32 %v1083_v50, 0.0  ;;  %v1548_v29 = vsel %vm1362_vm4, %v4036_v1, %v1547_v39  ;;  %v640_v28 = vrot.slane %v4024_v22, 4  ;;  %v1626_v59 = vsel %vm1358_vm2, %v4028_v58, %v1321_v52 }
 0x10c   :  { %5536 = vst [vmem:[#allocation19_spill] sm:$0xff] %v4070_v48  ;;  %v642_v27 = vrot.slane %v570_v38, 2  ;;  %v643_v46 = vrot.slane %v570_v38, 4  ;;  %v644_v60 = vrot.slane %v570_v38, 6  ;;  %v2951_v57 = vrot.slane %v570_v38, 9 }
 0x10d   :  { %v436_v9 = vpop.f32.mrf.mxu2  ;;  %v4083_v4 = vsel %vm1370_vm8, %v4070_v48, %v1471_v63  ;;  %v4085_v12 = vperm.slane %v1179_v45, 0  ;;  %v1549_v19 = vsel %vm1364_vm5, %v4038_v17, %v1548_v29  ;;  %v2949_v5 = vrot.slane %v640_v28, 9 }
 0x10e   :  { %5537 = vst [vmem:[#allocation20_spill] sm:$0xff] %v4083_v4  ;;  %v2952_v26 = vrot.slane %v642_v27, 9  ;;  %v2953_v50 = vrot.slane %v643_v46, 9  ;;  %v2954_v39 = vrot.slane %v644_v60, 9  ;;  %v1086_v15 = vmax.f32 %v570_v38, %v2951_v57  ;;  %1981 = vmatmul.f32.gmra.mxu3 %v4083_v4 }
 0x10f   :  { %5538 = vst [vmem:[#allocation21_spill] sm:$0xff] %v4085_v12  ;;  %v437_v52 = vadd.f32 %v436_v9, %v3508_v51  ;;  %v261_v33 = vpop.f32.mrf.mxu0  ;;  %v1550_v55 = vsel %vm1366_vm6, %v4044_v16, %v1549_v19  ;;  %v1084_v63 = vmax.f32 %v640_v28, %v2949_v5  ;;  %v1627_v45 = vsel %vm1360_vm3, %v4036_v1, %v1626_v59 }
 0x110   :  { %v1087_v7 = vmax.f32 %v642_v27, %v2952_v26  ;;  %v1182_v37 = vmax.f32 %v1086_v15, 0.0  ;;  %v262_v29 = vadd.f32 %v261_v33, %v3488_v42  ;;  %v1551_v31 = vsel %vm1368_vm7, %v4070_v48, %v1550_v55 }
 0x111   :  { %v526_v38 = vadd.f32 %v3947_v41, %v437_v52  ;;  %v4101_v57 = vsel %vm1370_vm8, %v4085_v12, %v1551_v31  ;;  %v1180_v9 = vmax.f32 %v1084_v63, 0.0  ;;  %v1628_v28 = vsel %vm1362_vm4, %v4038_v17, %v1627_v45  ;;  %v4105_v19 = vpop.f32.mrf.mxu3 }
 0x112   :  { %5539 = vst [vmem:[#allocation22_spill] sm:$0xff] %v4101_v57  ;;  %v1326_v59 = vperm.slane %v1182_v37, 0  ;;  %v351_v15 = vadd.f32 %v3963_v30, %v262_v29  ;;  %2022 = vmatmul.f32.gmra.mxu0 %v4101_v57  ;;  %v1629_v33 = vsel %vm1364_vm5, %v4044_v16, %v1628_v28  ;;  %v1088_v55 = vmax.f32 %v643_v46, %v2953_v50 }
 0x113   :  { %v571_v41 = vmax.f32 %v348_v13, %v526_v38  ;;  %v4111_v27 = vperm.slane %v1180_v9, 0  ;;  %v1630_v31 = vsel %vm1366_vm6, %v4070_v48, %v1629_v33  ;;  %v4115_v5 = vpop.f32.mrf.mxu1  ;;  %v1089_v26 = vmax.f32 %v644_v60, %v2954_v39 }
 0x114   :  { %v1631_v37 = vsel %vm1368_vm7, %v4085_v12, %v1630_v31  ;;  %v1183_v52 = vmax.f32 %v1087_v7, 0.0  ;;  %v1184_v30 = vmax.f32 %v1088_v55, 0.0  ;;  %v5541_v63 = vmax.f32 %v3898_v21, 0.0 }
 0x115   :  { %5540 = vst [vmem:[#allocation23_spill] sm:$0xff] %v4111_v27  ;;  %v645_v29 = vrot.slane %v571_v41, 2  ;;  %v646_v46 = vrot.slane %v571_v41, 4  ;;  %v2955_v13 = vrot.slane %v571_v41, 9  ;;  %v4125_v50 = vsel %vm1370_vm8, %v4111_v27, %v1631_v37  ;;  %v439_v38 = vpop.f32.mrf.mxu2 }
 0x116   :  { %v4121_v45 = vperm.slane %v5541_v63, 0  ;;  %5542 = vst [vmem:[#allocation24_spill] sm:$0xff] %v4125_v50  ;;  %2063 = vmatmul.f32.gmra.mxu2 %v4125_v50  ;;  %v440_v60 = vadd.f32 %v439_v38, %v3508_v51  ;;  %v647_v39 = vrot.slane %v571_v41, 6  ;;  %v1185_v9 = vmax.f32 %v1089_v26, 0.0 }
 0x117   :  { %v1327_v7 = vperm.slane %v1183_v52, 0  ;;  %v2956_v28 = vrot.slane %v645_v29, 9  ;;  %v1090_v33 = vmax.f32 %v571_v41, %v2955_v13  ;;  %v264_v21 = vpop.f32.mrf.mxu0  ;;  %v2957_v55 = vrot.slane %v646_v46, 9 }
 0x118   :  { %v1328_v31 = vperm.slane %v1184_v30, 0  ;;  %v529_v63 = vadd.f32 %v3995_v34, %v440_v60  ;;  %v265_v57 = vadd.f32 %v264_v21, %v3488_v42  ;;  %v2958_v4 = vrot.slane %v647_v39, 9 }
 0x119   :  { %v1329_v37 = vperm.slane %v1185_v9, 0  ;;  %v1186_v27 = vmax.f32 %v1090_v33, 0.0  ;;  %v4131_v12 = vpop.f32.mrf.mxu3  ;;  %v1091_v50 = vmax.f32 %v645_v29, %v2956_v28  ;;  %v1092_v48 = vmax.f32 %v646_v46, %v2957_v55 }
 0x11a   :  { %v1393_v38 = vsel %vm1358_vm2, %v1327_v7, %v1326_v59  ;;  %v4134_v26 = vmax.f32 %v351_v15, %v529_v63  ;;  %v354_v41 = vadd.f32 %v4003_v20, %v265_v57  ;;  %v1093_v52 = vmax.f32 %v647_v39, %v2958_v4 }
 0x11b   :  { %v1394_v30 = vsel %vm1360_vm3, %v1328_v31, %v1393_v38  ;;  %v4138_v13 = vperm.slane %v1186_v27, 0  ;;  %v4140_v34 = vpop.f32.mrf.mxu1  ;;  %v1187_v60 = vmax.f32 %v1091_v50, 0.0  ;;  %v1188_v9 = vmax.f32 %v1092_v48, 0.0 }
 0x11c   :  { %5543 = vst [vmem:[#allocation25_spill] sm:$0xff] %v4134_v26  ;;  %v1395_v33 = vsel %vm1362_vm4, %v1329_v37, %v1394_v30  ;;  %v1189_v21 = vmax.f32 %v1093_v52, 0.0  ;;  %v2959_v29 = vrot.slane %v4134_v26, 9  ;;  %v1473_v59 = vsel %vm1358_vm2, %v1328_v31, %v1327_v7 }
 0x11d   :  { %5544 = vst [vmem:[#allocation26_spill] sm:$0xff] %v4138_v13  ;;  %v648_v15 = vrot.slane %v4134_v26, 2  ;;  %v442_v46 = vpop.f32.mrf.mxu2  ;;  %v4146_v20 = vperm.slane %v1187_v60, 0  ;;  %v4148_v4 = vperm.slane %v1188_v9, 0  ;;  %v1396_v57 = vsel %vm1364_vm5, %v4138_v13, %v1395_v33 }
 0x11e   :  { %v1474_v27 = vsel %vm1360_vm3, %v1329_v37, %v1473_v59  ;;  %v443_v48 = vadd.f32 %v442_v46, %v3508_v51  ;;  %v4154_v50 = vperm.slane %v1189_v21, 0  ;;  %v1094_v39 = vmax.f32 %v4134_v26, %v2959_v29 }
 0x11f   :  { %5545 = vst [vmem:[#allocation27_spill] sm:$0xff] %v4146_v20  ;;  %v1475_v7 = vsel %vm1362_vm4, %v4138_v13, %v1474_v27  ;;  %v267_v28 = vpop.f32.mrf.mxu0  ;;  %v1397_v55 = vsel %vm1366_vm6, %v4146_v20, %v1396_v57  ;;  %v2960_v38 = vrot.slane %v648_v15, 9  ;;  %v1553_v52 = vsel %vm1358_vm2, %v1329_v37, %v1328_v31 }
 0x120   :  { %5546 = vst [vmem:[#allocation28_spill] sm:$0xff] %v4148_v4  ;;  %v1476_v63 = vsel %vm1364_vm5, %v4146_v20, %v1475_v7  ;;  %v532_v30 = vadd.f32 %v4021_v35, %v443_v48  ;;  %v268_v60 = vadd.f32 %v267_v28, %v3488_v42  ;;  %v1398_v9 = vsel %vm1368_vm7, %v4148_v4, %v1397_v55 }
 0x121   :  { %5547 = vst [vmem:[#allocation29_spill] sm:$0xff] %v4154_v50  ;;  %v1190_v33 = vmax.f32 %v1094_v39, 0.0  ;;  %v4168_v21 = vpop.f32.mrf.mxu3  ;;  %v4172_v29 = vsel %vm1370_vm8, %v4154_v50, %v1398_v9  ;;  %v1477_v59 = vsel %vm1366_vm6, %v4148_v4, %v1476_v63  ;;  %v1095_v46 = vmax.f32 %v648_v15, %v2960_v38  ;;  %v1780_v39 = vld [vmem:[%s5461_s3 + $0xf8] sm:$0xff]  ;;  %v1907_v15 = vld [vmem:[%s5461_s3 + $0x4f0] sm:$0xff] }
 0x122   :  { %5548 = vst [vmem:[#allocation30_spill] sm:$0xff] %v4172_v29  ;;  %v1554_v31 = vsel %vm1360_vm3, %v4138_v13, %v1553_v52  ;;  %v573_v35 = vmax.f32 %v354_v41, %v532_v30  ;;  %v357_v57 = vadd.f32 %v4030_v36, %v268_v60  ;;  %1943 = vmatmul.f32.gmra.mxu1 %v4172_v29  ;;  %v1778_v41 = vld [vmem:[%s5461_s3 + $0xe8] sm:$0xff]  ;;  %v649_v55 = vrot.slane %v4134_v26, 4 }
 0x123   :  { %v4180_v27 = vperm.slane %v1190_v33, 0  ;;  %v1478_v48 = vsel %vm1368_vm7, %v4154_v50, %v1477_v59  ;;  %v4193_v36 = vpop.f32.mrf.mxu1  ;;  %v1191_v7 = vmax.f32 %v1095_v46, 0.0  ;;  %v1555_v28 = vsel %vm1362_vm4, %v4146_v20, %v1554_v31  ;;  %2120 = vmatpush.msra.mxu3 %v1780_v39  ;;  %2079 = vmatpush.msra.mxu1 %v1907_v15 }
 0x124   :  { %v1633_v63 = vsel %vm1358_vm2, %v4138_v13, %v1329_v37  ;;  %v651_v38 = vrot.slane %v573_v35, 2  ;;  %v652_v52 = vrot.slane %v573_v35, 4  ;;  %v653_v30 = vrot.slane %v573_v35, 6 }
 0x125   :  { %5549 = vst [vmem:[#allocation31_spill] sm:$0xff] %v4180_v27  ;;  %v2963_v60 = vrot.slane %v573_v35, 9  ;;  %v445_v9 = vpop.f32.mrf.mxu2  ;;  %v4202_v33 = vsel %vm1370_vm8, %v4180_v27, %v1478_v48  ;;  %v4204_v59 = vperm.slane %v1191_v7, 0  ;;  %v1556_v46 = vsel %vm1364_vm5, %v4148_v4, %v1555_v28  ;;  %2121 = vmatpush.msra.mxu3 %v1778_v41 }
 0x126   :  { %5550 = vst [vmem:[#allocation32_spill] sm:$0xff] %v4202_v33  ;;  %v2961_v31 = vrot.slane %v649_v55, 9  ;;  %v2964_v29 = vrot.slane %v651_v38, 9  ;;  %v2965_v37 = vrot.slane %v652_v52, 9  ;;  %v2966_v39 = vrot.slane %v653_v30, 9  ;;  %1984 = vmatmul.f32.gmra.mxu3 %v4202_v33  ;;  %v1770_v33 = vld [vmem:[%s5461_s3 + $0xa8] sm:$0xff] }
 0x127   :  { %5551 = vst [vmem:[#allocation33_spill] sm:$0xff] %v4204_v59  ;;  %v1098_v15 = vmax.f32 %v573_v35, %v2963_v60  ;;  %v446_v13 = vadd.f32 %v445_v9, %v3508_v51  ;;  %v270_v16 = vpop.f32.mrf.mxu0  ;;  %v1557_v48 = vsel %vm1366_vm6, %v4154_v50, %v1556_v46  ;;  %v1634_v7 = vsel %vm1360_vm3, %v4146_v20, %v1633_v63 }
 0x128   :  { %v1096_v26 = vmax.f32 %v649_v55, %v2961_v31  ;;  %v1099_v17 = vmax.f32 %v651_v38, %v2964_v29  ;;  %v271_v41 = vadd.f32 %v270_v16, %v3488_v42  ;;  %v1558_v1 = vsel %vm1368_vm7, %v4180_v27, %v1557_v48 }
 0x129   :  { %v1194_v28 = vmax.f32 %v1098_v15, 0.0  ;;  %v535_v35 = vadd.f32 %v4058_v32, %v446_v13  ;;  %v4220_v60 = vsel %vm1370_vm8, %v4204_v59, %v1558_v1  ;;  %v1635_v55 = vsel %vm1362_vm4, %v4148_v4, %v1634_v7  ;;  %v4224_v46 = vpop.f32.mrf.mxu3  ;;  %v1905_v15 = vld [vmem:[%s5461_s3 + $0x4e0] sm:$0xff] }
 0x12a   :  { %5552 = vst [vmem:[#allocation34_spill] sm:$0xff] %v4220_v60  ;;  %v1192_v9 = vmax.f32 %v1096_v26, 0.0  ;;  %v360_v29 = vadd.f32 %v4074_v43, %v271_v41  ;;  %2025 = vmatmul.f32.gmra.mxu0 %v4220_v60  ;;  %v1636_v16 = vsel %vm1364_vm5, %v4154_v50, %v1635_v55  ;;  %v1100_v38 = vmax.f32 %v652_v52, %v2965_v37  ;;  %v1776_v43 = vld [vmem:[%s5461_s3 + $0xd8] sm:$0xff] }
 0x12b   :  { %v1334_v63 = vperm.slane %v1194_v28, 0  ;;  %v574_v32 = vmax.f32 %v357_v57, %v535_v35  ;;  %v1637_v1 = vsel %vm1366_vm6, %v4180_v27, %v1636_v16  ;;  %v4234_v26 = vpop.f32.mrf.mxu1  ;;  %v1101_v31 = vmax.f32 %v653_v30, %v2966_v39  ;;  %v1903_v57 = vld [vmem:[%s5461_s3 + $0x4d0] sm:$0xff]  ;;  %2080 = vmatpush.msra.mxu1 %v1905_v15  ;;  %2122 = vmatpush.msra.mxu3 %v1776_v43  ;;  %v1774_v30 = vld [vmem:[%s5461_s3 + $0xc8] sm:$0xff] }
 0x12c   :  { %v4230_v13 = vperm.slane %v1192_v9, 0  ;;  %v1638_v52 = vsel %vm1368_vm7, %v4204_v59, %v1637_v1  ;;  %v1195_v37 = vmax.f32 %v1099_v17, 0.0  ;;  %v1196_v48 = vmax.f32 %v1100_v38, 0.0  ;;  %v1901_v9 = vld [vmem:[%s5461_s3 + $0x4c0] sm:$0xff] }
 0x12d   :  { %v4253_v39 = vsel %vm1360_vm3, %v3655_v40, %v4011_v24  ;;  %v654_v7 = vrot.slane %v574_v32, 2  ;;  %v655_v28 = vrot.slane %v574_v32, 4  ;;  %v2967_v41 = vrot.slane %v574_v32, 9  ;;  %v448_v17 = vpop.f32.mrf.mxu2  ;;  %2081 = vmatpush.msra.mxu1 %v1903_v57  ;;  %v1772_v24 = vld [vmem:[%s5461_s3 + $0xb8] sm:$0xff]  ;;  %2123 = vmatpush.msra.mxu3 %v1774_v30 }
 0x12e   :  { %5553 = vst [vmem:[#allocation35_spill] sm:$0xff] %v4230_v13  ;;  %v4257_v35 = vsel %vm1370_vm8, %v4230_v13, %v1638_v52  ;;  %v449_v55 = vadd.f32 %v448_v17, %v3508_v51  ;;  %v656_v16 = vrot.slane %v574_v32, 6  ;;  %v1197_v38 = vmax.f32 %v1101_v31, 0.0 }
 0x12f   :  { %5554 = vst [vmem:[#allocation36_spill] sm:$0xff] %v4257_v35  ;;  %2066 = vmatmul.f32.gmra.mxu2 %v4257_v35  ;;  %v1335_v40 = vperm.slane %v1195_v37, 0  ;;  %v2968_v1 = vrot.slane %v654_v7, 9  ;;  %v1102_v15 = vmax.f32 %v574_v32, %v2967_v41  ;;  %v273_v43 = vpop.f32.mrf.mxu0  ;;  %v2969_v52 = vrot.slane %v655_v28, 9  ;;  %v1899_v35 = vld [vmem:[%s5461_s3 + $0x4b0] sm:$0xff]  ;;  %2082 = vmatpush.msra.mxu1 %v1901_v9 }
 0x130   :  { %v1336_v60 = vperm.slane %v1196_v48, 0  ;;  %v538_v17 = vadd.f32 %v4105_v19, %v449_v55  ;;  %v274_v31 = vadd.f32 %v273_v43, %v3488_v42  ;;  %v2970_v37 = vrot.slane %v656_v16, 9  ;;  %2124 = vmatpush.msra.mxu3 %v1772_v24 }
 0x131   :  { %v1337_v57 = vperm.slane %v1197_v38, 0  ;;  %v1198_v32 = vmax.f32 %v1102_v15, 0.0  ;;  %v4275_v41 = vpop.f32.mrf.mxu3  ;;  %v1103_v48 = vmax.f32 %v654_v7, %v2968_v1  ;;  %v1104_v30 = vmax.f32 %v655_v28, %v2969_v52  ;;  %2083 = vmatpush.msra.mxu1 %v1899_v35 }
 0x132   :  { %v1400_v13 = vsel %vm1358_vm2, %v1335_v40, %v1334_v63  ;;  %v4278_v59 = vmax.f32 %v360_v29, %v538_v17  ;;  %v363_v19 = vadd.f32 %v4115_v5, %v274_v31  ;;  %v1105_v55 = vmax.f32 %v656_v16, %v2970_v37  ;;  %2125 = vmatpush.msra.mxu3 %v1770_v33 }
 0x133   :  { %v1401_v38 = vsel %vm1360_vm3, %v1336_v60, %v1400_v13  ;;  %v4282_v9 = vperm.slane %v1198_v32, 0  ;;  %v4284_v43 = vpop.f32.mrf.mxu1  ;;  %v1199_v15 = vmax.f32 %v1103_v48, 0.0  ;;  %v1200_v27 = vmax.f32 %v1104_v30, 0.0 }
 0x134   :  { %5555 = vst [vmem:[#allocation37_spill] sm:$0xff] %v4278_v59  ;;  %v1402_v7 = vsel %vm1362_vm4, %v1337_v57, %v1401_v38  ;;  %v1201_v28 = vmax.f32 %v1105_v55, 0.0  ;;  %v2971_v63 = vrot.slane %v4278_v59, 9  ;;  %v1480_v29 = vsel %vm1358_vm2, %v1336_v60, %v1335_v40 }
 0x135   :  { %5556 = vst [vmem:[#allocation38_spill] sm:$0xff] %v4282_v9  ;;  %v657_v5 = vrot.slane %v4278_v59, 2  ;;  %v451_v16 = vpop.f32.mrf.mxu2  ;;  %v4290_v24 = vperm.slane %v1199_v15, 0  ;;  %v4292_v13 = vperm.slane %v1200_v27, 0  ;;  %v1403_v35 = vsel %vm1364_vm5, %v4282_v9, %v1402_v7 }
 0x136   :  { %v1481_v1 = vsel %vm1360_vm3, %v1337_v57, %v1480_v29  ;;  %v452_v52 = vadd.f32 %v451_v16, %v3508_v51  ;;  %v4298_v33 = vperm.slane %v1201_v28, 0  ;;  %v1106_v17 = vmax.f32 %v4278_v59, %v2971_v63 }
 0x137   :  { %5557 = vst [vmem:[#allocation39_spill] sm:$0xff] %v4290_v24  ;;  %v1482_v40 = vsel %vm1362_vm4, %v4282_v9, %v1481_v1  ;;  %v276_v31 = vpop.f32.mrf.mxu0  ;;  %v1404_v37 = vsel %vm1366_vm6, %v4290_v24, %v1403_v35  ;;  %v2972_v32 = vrot.slane %v657_v5, 9  ;;  %v1560_v48 = vsel %vm1358_vm2, %v1337_v57, %v1336_v60 }
 0x138   :  { %5558 = vst [vmem:[#allocation40_spill] sm:$0xff] %v4292_v13  ;;  %v1483_v27 = vsel %vm1364_vm5, %v4290_v24, %v1482_v40  ;;  %v541_v30 = vadd.f32 %v4131_v12, %v452_v52  ;;  %v277_v55 = vadd.f32 %v276_v31, %v3488_v42  ;;  %v1405_v38 = vsel %vm1368_vm7, %v4292_v13, %v1404_v37  ;;  %v1897_v52 = vld [vmem:[%s5461_s3 + $0x4a0] sm:$0xff] }
 0x139   :  { %5559 = vst [vmem:[#allocation41_spill] sm:$0xff] %v4298_v33  ;;  %v1202_v15 = vmax.f32 %v1106_v17, 0.0  ;;  %v4312_v7 = vpop.f32.mrf.mxu3  ;;  %v4316_v28 = vsel %vm1370_vm8, %v4298_v33, %v1405_v38  ;;  %v1484_v63 = vsel %vm1366_vm6, %v4292_v13, %v1483_v27  ;;  %v1107_v29 = vmax.f32 %v657_v5, %v2972_v32  ;;  %v1768_v5 = vld [vmem:[%s5461_s3 + $0x98] sm:$0xff]  ;;  %2084 = vmatpush.msra.mxu1 %v1897_v52  ;;  %v1766_v27 = vld [vmem:[%s5461_s3 + $0x88] sm:$0xff] }
 0x13a   :  { %5560 = vst [vmem:[#allocation42_spill] sm:$0xff] %v4316_v28  ;;  %v1561_v60 = vsel %vm1360_vm3, %v4282_v9, %v1560_v48  ;;  %v4322_v12 = vmax.f32 %v363_v19, %v541_v30  ;;  %v366_v16 = vadd.f32 %v4140_v34, %v277_v55  ;;  %1946 = vmatmul.f32.gmra.mxu1 %v4316_v28  ;;  %v1895_v19 = vld [vmem:[%s5461_s3 + $0x490] sm:$0xff]  ;;  %v658_v31 = vrot.slane %v4278_v59, 4 }
 0x13b   :  { %v4326_v35 = vperm.slane %v1202_v15, 0  ;;  %v1485_v1 = vsel %vm1368_vm7, %v4298_v33, %v1484_v63  ;;  %v4339_v34 = vpop.f32.mrf.mxu1  ;;  %v1203_v17 = vmax.f32 %v1107_v29, 0.0  ;;  %v1562_v40 = vsel %vm1362_vm4, %v4290_v24, %v1561_v60  ;;  %2126 = vmatpush.msra.mxu3 %v1768_v5  ;;  %2085 = vmatpush.msra.mxu1 %v1895_v19 }
 0x13c   :  { %v1640_v37 = vsel %vm1358_vm2, %v4282_v9, %v1337_v57  ;;  %v660_v32 = vrot.slane %v4322_v12, 2  ;;  %v661_v48 = vrot.slane %v4322_v12, 4  ;;  %v662_v30 = vrot.slane %v4322_v12, 6 }
 0x13d   :  { %5561 = vst [vmem:[#allocation43_spill] sm:$0xff] %v4326_v35  ;;  %v2975_v55 = vrot.slane %v4322_v12, 9  ;;  %v454_v38 = vpop.f32.mrf.mxu2  ;;  %v4355_v15 = vsel %vm1370_vm8, %v4326_v35, %v1485_v1  ;;  %v4357_v57 = vperm.slane %v1203_v17, 0  ;;  %v1563_v63 = vsel %vm1364_vm5, %v4292_v13, %v1562_v40  ;;  %2127 = vmatpush.msra.mxu3 %v1766_v27 }
 0x13e   :  { %5562 = vst [vmem:[#allocation44_spill] sm:$0xff] %v4355_v15  ;;  %v2973_v29 = vrot.slane %v658_v31, 9  ;;  %v2976_v60 = vrot.slane %v660_v32, 9  ;;  %v2977_v52 = vrot.slane %v661_v48, 9  ;;  %v2978_v5 = vrot.slane %v662_v30, 9  ;;  %1987 = vmatmul.f32.gmra.mxu3 %v4355_v15  ;;  %v1760_v15 = vld [vmem:[%s5461_s3 + $0x58] sm:$0xff] }
 0x13f   :  { %5563 = vst [vmem:[#allocation45_spill] sm:$0xff] %v4357_v57  ;;  %v1110_v28 = vmax.f32 %v4322_v12, %v2975_v55  ;;  %v455_v59 = vadd.f32 %v454_v38, %v3508_v51  ;;  %v279_v50 = vpop.f32.mrf.mxu0  ;;  %v1564_v1 = vsel %vm1366_vm6, %v4298_v33, %v1563_v63  ;;  %v1641_v40 = vsel %vm1360_vm3, %v4290_v24, %v1640_v37  ;;  %v1909_v12 = vld [vmem:[%s5463_s4] sm:$0x3] }
 0x140   :  { %v1108_v17 = vmax.f32 %v658_v31, %v2973_v29  ;;  %v1111_v4 = vmax.f32 %v660_v32, %v2976_v60  ;;  %v4368_v19 = vmax.f32 %v662_v30, %v2978_v5  ;;  %v280_v20 = vadd.f32 %v279_v50, %v3488_v42 }
 0x141   :  { %v1206_v27 = vmax.f32 %v1110_v28, 0.0  ;;  %v544_v55 = vadd.f32 %v4168_v21, %v455_v59  ;;  %v1565_v38 = vsel %vm1368_vm7, %v4326_v35, %v1564_v1  ;;  %v1642_v31 = vsel %vm1362_vm4, %v4292_v13, %v1641_v40  ;;  %v4379_v37 = vpop.f32.mrf.mxu3 }
 0x142   :  { %v1204_v63 = vmax.f32 %v1108_v17, 0.0  ;;  %v1207_v32 = vmax.f32 %v1111_v4, 0.0  ;;  %v4384_v50 = vadd.f32 %v4193_v36, %v280_v20  ;;  %v4388_v28 = vsel %vm1370_vm8, %v4357_v57, %v1565_v38  ;;  %v1893_v20 = vld [vmem:[%s5461_s3 + $0x480] sm:$0xff]  ;;  %v1764_v36 = vld [vmem:[%s5461_s3 + $0x78] sm:$0xff] }
 0x143   :  { %v4381_v30 = vperm.slane %v1206_v27, 0  ;;  %5564 = vst [vmem:[#allocation46_spill] sm:$0xff] %v4388_v28  ;;  %v4390_v21 = vmax.f32 %v366_v16, %v544_v55  ;;  %2028 = vmatmul.f32.gmra.mxu0 %v4388_v28  ;;  %v1643_v29 = vsel %vm1364_vm5, %v4298_v33, %v1642_v31  ;;  %v4397_v60 = vperm.slane %v1909_v12, 0  ;;  %v1932_v4 = vpop.f32.mrf.mxu1  ;;  %v1812_v16 = vld [vmem:[%s5461_s3 + $0x1f8] sm:$0xff]  ;;  %2086 = vmatpush.msra.mxu1 %v1893_v20  ;;  %v1891_v27 = vld [vmem:[%s5461_s3 + $0x470] sm:$0xff]  ;;  %v1762_v12 = vld [vmem:[%s5461_s3 + $0x68] sm:$0xff] }
 0x144   :  { %v4393_v59 = vperm.slane %v1204_v63, 0  ;;  %v1644_v5 = vsel %vm1366_vm6, %v4326_v35, %v1643_v29  ;;  %v1112_v1 = vmax.f32 %v661_v48, %v2977_v52  ;;  %v1209_v17 = vmax.f32 %v4368_v19, 0.0  ;;  %2128 = vmatpush.msra.mxu3 %v1764_v36  ;;  %v1844_v55 = vld [vmem:[%s5461_s3 + $0x2f8] sm:$0xff]  ;;  %2161 = vmatpush.msra.mxu0 %v1812_v16  ;;  %v1810_v31 = vld [vmem:[%s5461_s3 + $0x1e8] sm:$0xff] }
 0x145   :  { %v4411_v40 = vperm.slane %v1207_v32, 0  ;;  %v663_v48 = vrot.slane %v4390_v21, 2  ;;  %v664_v52 = vrot.slane %v4390_v21, 4  ;;  %v665_v19 = vrot.slane %v4390_v21, 6  ;;  %v457_v63 = vpop.f32.mrf.mxu2  ;;  %2202 = vmatpush.msra.mxu2 %v1844_v55  ;;  %v1842_v32 = vld [vmem:[%s5461_s3 + $0x2e8] sm:$0xff]  ;;  %2087 = vmatpush.msra.mxu1 %v1891_v27  ;;  %v1808_v16 = vld [vmem:[%s5461_s3 + $0x1d8] sm:$0xff] }
 0x146   :  { %5565 = vst [vmem:[#allocation47_spill] sm:$0xff] %v4393_v59  ;;  %v2979_v38 = vrot.slane %v4390_v21, 9  ;;  %v1645_v29 = vsel %vm1368_vm7, %v4357_v57, %v1644_v5  ;;  %v1933_v20 = vadd.f32 %v1932_v4, %v4397_v60  ;;  %v458_v36 = vadd.f32 %v457_v63, %v3508_v51  ;;  %2129 = vmatpush.msra.mxu3 %v1762_v12  ;;  %v1889_v55 = vld [vmem:[%s5461_s3 + $0x460] sm:$0xff]  ;;  %v1840_v12 = vld [vmem:[%s5461_s3 + $0x2d8] sm:$0xff] }
 0x147   :  { %v1208_v28 = vmax.f32 %v1112_v1, 0.0  ;;  %v2980_v5 = vrot.slane %v663_v48, 9  ;;  %v2981_v57 = vrot.slane %v664_v52, 9  ;;  %v4448_v1 = vsel %vm1370_vm8, %v4393_v59, %v1645_v29  ;;  %v282_v27 = vpop.f32.mrf.mxu0  ;;  %2162 = vmatpush.msra.mxu0 %v1810_v31  ;;  %2203 = vmatpush.msra.mxu2 %v1842_v32 }
 0x148   :  { %v1114_v4 = vmax.f32 %v4390_v21, %v2979_v38  ;;  %5566 = vst [vmem:[#allocation48_spill] sm:$0xff] %v4448_v1  ;;  %2069 = vmatmul.f32.gmra.mxu2 %v4448_v1  ;;  %v547_v63 = vadd.f32 %v4224_v46, %v458_v36  ;;  %v283_v35 = vadd.f32 %v282_v27, %v3488_v42  ;;  %v2982_v33 = vrot.slane %v665_v19, 9  ;;  %v1806_v21 = vld [vmem:[%s5461_s3 + $0x1c8] sm:$0xff]  ;;  %v1887_v38 = vld [vmem:[%s5461_s3 + $0x450] sm:$0xff] }
 0x149   :  { %v1344_v13 = vperm.slane %v1208_v28, 0  ;;  %2088 = vmatpush.msra.mxu1 %v1889_v55  ;;  %v1115_v31 = vmax.f32 %v663_v48, %v2980_v5  ;;  %v1973_v29 = vpop.f32.mrf.mxu3  ;;  %v1116_v59 = vmax.f32 %v664_v52, %v2981_v57  ;;  %v4462_v1 = vperm.slane %v1209_v17, 0  ;;  %2163 = vmatpush.msra.mxu0 %v1808_v16  ;;  %v1838_v46 = vld [vmem:[%s5461_s3 + $0x2c8] sm:$0xff]  ;;  %v1885_v17 = vld [vmem:[%s5461_s3 + $0x440] sm:$0xff] }
 0x14a   :  { %v1210_v32 = vmax.f32 %v1114_v4, 0.0  ;;  %2130 = vmatpush.msra.mxu3 %v1760_v15  ;;  %v1758_v28 = vld [vmem:[%s5461_s3 + $0x48] sm:$0xff]  ;;  %v4471_v36 = vmax.f32 %v4384_v50, %v547_v63  ;;  %v4474_v48 = vadd.f32 %v4234_v26, %v283_v35  ;;  %v4476_v55 = vadd.f32 %v1973_v29, %v1933_v20  ;;  %2204 = vmatpush.msra.mxu2 %v1840_v12  ;;  %v1804_v15 = vld [vmem:[%s5461_s3 + $0x1b8] sm:$0xff]  ;;  %v1883_v4 = vld [vmem:[%s5461_s3 + $0x430] sm:$0xff] }
 0x14b   :  { %v1117_v57 = vmax.f32 %v665_v19, %v2982_v33  ;;  %v1211_v16 = vmax.f32 %v1115_v31, 0.0  ;;  %v1212_v50 = vmax.f32 %v1116_v59, 0.0  ;;  %v1407_v26 = vsel %vm1358_vm2, %v4411_v40, %v4381_v30  ;;  %2164 = vmatpush.msra.mxu0 %v1806_v21  ;;  %2089 = vmatpush.msra.mxu1 %v1887_v38  ;;  %v1836_v33 = vld [vmem:[%s5461_s3 + $0x2b8] sm:$0xff]  ;;  %v1802_v30 = vld [vmem:[%s5461_s3 + $0x1a8] sm:$0xff] }
 0x14c   :  { %5567 = vst [vmem:[#allocation49_spill] sm:$0xff] %v4471_v36  ;;  %v4484_v52 = vperm.slane %v1210_v32, 0  ;;  %v1756_v35 = vld [vmem:[%s5461_s3 + $0x38] sm:$0xff]  ;;  %v1408_v20 = vsel %vm1360_vm3, %v1344_v13, %v1407_v26  ;;  %v2983_v5 = vrot.slane %v4471_v36, 9  ;;  %v1487_v59 = vsel %vm1358_vm2, %v1344_v13, %v4411_v40  ;;  %2205 = vmatpush.msra.mxu2 %v1838_v46  ;;  %2131 = vmatpush.msra.mxu3 %v1758_v28  ;;  %v1834_v38 = vld [vmem:[%s5461_s3 + $0x2a8] sm:$0xff] }
 0x14d   :  { %v1213_v19 = vmax.f32 %v1117_v57, 0.0  ;;  %v460_v27 = vpop.f32.mrf.mxu2  ;;  %v4505_v12 = vperm.slane %v1211_v16, 0  ;;  %v4507_v63 = vperm.slane %v1212_v50, 0  ;;  %v1409_v21 = vsel %vm1362_vm4, %v4462_v1, %v1408_v20  ;;  %2165 = vmatpush.msra.mxu0 %v1804_v15  ;;  %2090 = vmatpush.msra.mxu1 %v1885_v17  ;;  %v1754_v31 = vld [vmem:[%s5461_s3 + $0x28] sm:$0xff]  ;;  %v1800_v57 = vld [vmem:[%s5461_s3 + $0x198] sm:$0xff]  ;;  %v1881_v15 = vld [vmem:[%s5461_s3 + $0x420] sm:$0xff] }
 0x14e   :  { %v1488_v40 = vsel %vm1360_vm3, %v4462_v1, %v1487_v59  ;;  %v461_v32 = vadd.f32 %v460_v27, %v3508_v51  ;;  %v1410_v46 = vsel %vm1364_vm5, %v4484_v52, %v1409_v21  ;;  %v1118_v28 = vmax.f32 %v4471_v36, %v2983_v5  ;;  %2206 = vmatpush.msra.mxu2 %v1836_v33  ;;  %v1798_v27 = vld [vmem:[%s5461_s3 + $0x188] sm:$0xff] }
 0x14f   :  { %v4520_v29 = vperm.slane %v1213_v19, 0  ;;  %2132 = vmatpush.msra.mxu3 %v1756_v35  ;;  %v285_v17 = vpop.f32.mrf.mxu0  ;;  %v1411_v16 = vsel %vm1366_vm6, %v4505_v12, %v1410_v46  ;;  %v1489_v50 = vsel %vm1362_vm4, %v4484_v52, %v1488_v40  ;;  %v666_v26 = vrot.slane %v4471_v36, 2  ;;  %2166 = vmatpush.msra.mxu0 %v1802_v30  ;;  %v1832_v35 = vld [vmem:[%s5461_s3 + $0x298] sm:$0xff]  ;;  %v1830_v40 = vld [vmem:[%s5461_s3 + $0x288] sm:$0xff] }
 0x150   :  { %v1567_v33 = vsel %vm1358_vm2, %v4462_v1, %v1344_v13  ;;  %2091 = vmatpush.msra.mxu1 %v1883_v4  ;;  %v550_v19 = vadd.f32 %v4275_v41, %v461_v32  ;;  %v286_v20 = vadd.f32 %v285_v17, %v3488_v42  ;;  %v1412_v5 = vsel %vm1368_vm7, %v4507_v63, %v1411_v16  ;;  %v1752_v13 = vld [vmem:[%s5461_s3 + $0x18] sm:$0xff] }
 0x151   :  { %v1214_v59 = vmax.f32 %v1118_v28, 0.0  ;;  %2207 = vmatpush.msra.mxu2 %v1834_v38  ;;  %2133 = vmatpush.msra.mxu3 %v1754_v31  ;;  %v4553_v30 = vsel %vm1370_vm8, %v4520_v29, %v1412_v5  ;;  %v1490_v41 = vsel %vm1364_vm5, %v4505_v12, %v1489_v50  ;;  %v2984_v4 = vrot.slane %v666_v26, 9  ;;  %v1879_v38 = vld [vmem:[%s5461_s3 + $0x410] sm:$0xff]  ;;  %v1828_v16 = vld [vmem:[%s5461_s3 + $0x278] sm:$0xff] }
 0x152   :  { %5568 = vst [vmem:[#allocation50_spill] sm:$0xff] %v4553_v30  ;;  %v1568_v21 = vsel %vm1360_vm3, %v4484_v52, %v1567_v33  ;;  %2167 = vmatpush.msra.mxu0 %v1800_v57  ;;  %2092 = vmatpush.msra.mxu1 %v1881_v15  ;;  %v4566_v31 = vmax.f32 %v4474_v48, %v550_v19  ;;  %v1796_v57 = vld [vmem:[%s5461_s3 + $0x178] sm:$0xff]  ;;  %v667_v17 = vrot.slane %v4471_v36, 4 }
 0x153   :  { %v4569_v32 = vadd.f32 %v4284_v43, %v286_v20  ;;  %1949 = vmatmul.f32.gmra.mxu1 %v4553_v30  ;;  %v4572_v46 = vperm.slane %v1214_v59, 0  ;;  %v1491_v28 = vsel %vm1366_vm6, %v4507_v63, %v1490_v41  ;;  %2208 = vmatpush.msra.mxu2 %v1832_v35  ;;  %v1119_v48 = vmax.f32 %v666_v26, %v2984_v4  ;;  %v1794_v26 = vld [vmem:[%s5461_s3 + $0x168] sm:$0xff]  ;;  %v1877_v4 = vld [vmem:[%s5461_s3 + $0x400] sm:$0xff] }
 0x154   :  { %v1492_v15 = vsel %vm1368_vm7, %v4520_v29, %v1491_v28  ;;  %v1569_v43 = vsel %vm1362_vm4, %v4505_v12, %v1568_v21  ;;  %2168 = vmatpush.msra.mxu0 %v1798_v27  ;;  %2134 = vmatpush.msra.mxu3 %v1752_v13  ;;  %v669_v50 = vrot.slane %v4566_v31, 2  ;;  %v670_v33 = vrot.slane %v4566_v31, 4  ;;  %v1826_v41 = vld [vmem:[%s5461_s3 + $0x268] sm:$0xff] }
 0x155   :  { %v671_v35 = vrot.slane %v4566_v31, 6  ;;  %v2987_v19 = vrot.slane %v4566_v31, 9  ;;  %2209 = vmatpush.msra.mxu2 %v1830_v40  ;;  %2093 = vmatpush.msra.mxu1 %v1879_v38  ;;  %v463_v20 = vpop.f32.mrf.mxu2  ;;  %v4596_v5 = vsel %vm1370_vm8, %v4572_v46, %v1492_v15  ;;  %v1215_v59 = vmax.f32 %v1119_v48, 0.0  ;;  %v1750_v21 = vld [vmem:[%s5461_s3 + $0x8] sm:$0xff] }
 0x156   :  { %5569 = vst [vmem:[#allocation51_spill] sm:$0xff] %v4596_v5  ;;  %v1570_v27 = vsel %vm1364_vm5, %v4507_v63, %v1569_v43  ;;  %v2985_v13 = vrot.slane %v667_v17, 9  ;;  %2169 = vmatpush.msra.mxu0 %v1796_v57  ;;  %v2988_v40 = vrot.slane %v669_v50, 9  ;;  %v2989_v38 = vrot.slane %v670_v33, 9  ;;  %1990 = vmatmul.f32.gmra.mxu3 %v4596_v5  ;;  %v1792_v57 = vld [vmem:[%s5461_s3 + $0x158] sm:$0xff] }
 0x157   :  { %v2990_v28 = vrot.slane %v671_v35, 9  ;;  %v1122_v15 = vmax.f32 %v4566_v31, %v2987_v19  ;;  %2210 = vmatpush.msra.mxu2 %v1828_v16  ;;  %v464_v48 = vadd.f32 %v463_v20, %v3508_v51  ;;  %v1935_v43 = vpop.f32.mrf.mxu1  ;;  %v288_v30 = vpop.f32.mrf.mxu0  ;;  %v4615_v36 = vperm.slane %v1215_v59, 0  ;;  %v1824_v31 = vld [vmem:[%s5461_s3 + $0x258] sm:$0xff]  ;;  %2094 = vmatpush.msra.mxu1 %v1877_v4 }
 0x158   :  { %v1571_v24 = vsel %vm1366_vm6, %v4520_v29, %v1570_v27  ;;  %v1120_v9 = vmax.f32 %v667_v17, %v2985_v13  ;;  %2170 = vmatpush.msra.mxu0 %v1794_v26  ;;  %v1908_v16 = vld [vmem:[%s5461_s3 + $0x4f8] sm:$0xff]  ;;  %v1123_v19 = vmax.f32 %v669_v50, %v2988_v40  ;;  %v4626_v59 = vadd.f32 %v1935_v43, %v4397_v60  ;;  %v1790_v50 = vld [vmem:[%s5461_s3 + $0x148] sm:$0xff] }
 0x159   :  { %v1125_v20 = vmax.f32 %v671_v35, %v2990_v28  ;;  %v1218_v5 = vmax.f32 %v1122_v15, 0.0  ;;  %2211 = vmatpush.msra.mxu2 %v1826_v41  ;;  %2135 = vmatpush.msra.mxu3 %v1750_v21  ;;  %v553_v17 = vadd.f32 %v4312_v7, %v464_v48  ;;  %v289_v26 = vadd.f32 %v288_v30, %v3488_v42  ;;  %v1822_v35 = vld [vmem:[%s5461_s3 + $0x248] sm:$0xff]  ;;  %v1788_v21 = vld [vmem:[%s5461_s3 + $0x138] sm:$0xff] }
 0x15a   :  { %v1572_v27 = vsel %vm1368_vm7, %v4572_v46, %v1571_v24  ;;  %v1216_v13 = vmax.f32 %v1120_v9, 0.0  ;;  %2171 = vmatpush.msra.mxu0 %v1792_v57  ;;  %v1219_v41 = vmax.f32 %v1123_v19, 0.0  ;;  %v1647_v42 = vsel %vm1358_vm2, %v4484_v52, %v4462_v1  ;;  %v1820_v1 = vld [vmem:[%s5461_s3 + $0x238] sm:$0xff]  ;;  %v1786_v15 = vld [vmem:[%s5461_s3 + $0x128] sm:$0xff] }
 0x15b   :  { %2284 = vmatpush.msrb.mxu3 %v1908_v16  ;;  %v1350_v4 = vperm.slane %v1218_v5, 0  ;;  %v4640_v7 = vsel %vm1370_vm8, %v4615_v36, %v1572_v27  ;;  %2212 = vmatpush.msra.mxu2 %v1824_v31  ;;  %v580_v9 = vmax.f32 %v4569_v32, %v553_v17  ;;  %v4647_v24 = vadd.f32 %v4339_v34, %v289_v26  ;;  %v1818_v57 = vld [vmem:[%s5461_s3 + $0x228] sm:$0xff] }
 0x15c   :  { %2031 = vmatmul.f32.gmra.mxu0 %v4640_v7  ;;  %v4650_v30 = vperm.slane %v1216_v13, 0  ;;  %v1648_v5 = vsel %vm1360_vm3, %v4505_v12, %v1647_v42  ;;  %v1124_v34 = vmax.f32 %v670_v33, %v2989_v38  ;;  %v1221_v40 = vmax.f32 %v1125_v20, 0.0  ;;  %v1876_v33 = vld [vmem:[%s5461_s3 + $0x3f8] sm:$0xff]  ;;  %v1906_v38 = vld [vmem:[%s5461_s3 + $0x4e8] sm:$0xff] }
 0x15d   :  { %v1649_v32 = vsel %vm1362_vm4, %v4507_v63, %v1648_v5  ;;  %v1351_v28 = vperm.slane %v1219_v41, 0  ;;  %2172 = vmatpush.msra.mxu0 %v1790_v50  ;;  %2213 = vmatpush.msra.mxu2 %v1822_v35  ;;  %v672_v48 = vrot.slane %v580_v9, 2  ;;  %v673_v43 = vrot.slane %v580_v9, 4  ;;  %v1784_v5 = vld [vmem:[%s5461_s3 + $0x118] sm:$0xff] }
 0x15e   :  { %v674_v31 = vrot.slane %v580_v9, 6  ;;  %v2991_v16 = vrot.slane %v580_v9, 9  ;;  %v1650_v19 = vsel %vm1364_vm5, %v4520_v29, %v1649_v32  ;;  %v466_v20 = vpop.f32.mrf.mxu2  ;;  %v1220_v17 = vmax.f32 %v1124_v34, 0.0  ;;  %2243 = vmatpush.msrb.mxu1 %v1876_v33  ;;  %2285 = vmatpush.msrb.mxu3 %v1906_v38 }
 0x15f   :  { %v4676_v26 = vperm.slane %v1221_v40, 0  ;;  %v1414_v27 = vsel %vm1358_vm2, %v1351_v28, %v1350_v4  ;;  %2173 = vmatpush.msra.mxu0 %v1788_v21  ;;  %2214 = vmatpush.msra.mxu2 %v1820_v1  ;;  %v2992_v13 = vrot.slane %v672_v48, 9  ;;  %v2993_v50 = vrot.slane %v673_v43, 9  ;;  %v2014_v42 = vpop.f32.mrf.mxu0 }
 0x160   :  { %v1126_v35 = vmax.f32 %v580_v9, %v2991_v16  ;;  %v1651_v41 = vsel %vm1366_vm6, %v4572_v46, %v1650_v19  ;;  %v467_v4 = vadd.f32 %v466_v20, %v3508_v51  ;;  %v2015_v21 = vadd.f32 %v2014_v42, %v4476_v55  ;;  %v1816_v9 = vld [vmem:[%s5461_s3 + $0x218] sm:$0xff]  ;;  %v1782_v51 = vld [vmem:[%s5461_s3 + $0x108] sm:$0xff] }
 0x161   :  { %v1652_v32 = vsel %vm1368_vm7, %v4615_v36, %v1651_v41  ;;  %v2994_v1 = vrot.slane %v674_v31, 9  ;;  %2174 = vmatpush.msra.mxu0 %v1786_v15  ;;  %2215 = vmatpush.msra.mxu2 %v1818_v57  ;;  %v1127_v34 = vmax.f32 %v672_v48, %v2992_v13  ;;  %v1976_v33 = vpop.f32.mrf.mxu3  ;;  %v1128_v38 = vmax.f32 %v673_v43, %v2993_v50  ;;  %v1814_v48 = vld [vmem:[%s5461_s3 + $0x208] sm:$0xff]  ;;  %v1904_v20 = vld [vmem:[%s5461_s3 + $0x4d8] sm:$0xff] }
 0x162   :  { %v1222_v40 = vmax.f32 %v1126_v35, 0.0  ;;  %v4693_v16 = vsel %vm1370_vm8, %v4650_v30, %v1652_v32  ;;  %v556_v55 = vadd.f32 %v4379_v37, %v467_v4  ;;  %v1977_v15 = vadd.f32 %v1976_v33, %v4626_v59  ;;  %v1874_v43 = vld [vmem:[%s5461_s3 + $0x3e8] sm:$0xff]  ;;  %2286 = vmatpush.msrb.mxu3 %v1904_v20 }
 0x163   :  { %2072 = vmatmul.f32.gmra.mxu2 %v4693_v16  ;;  %v1129_v57 = vmax.f32 %v674_v31, %v2994_v1  ;;  %v1352_v19 = vperm.slane %v1220_v17, 0  ;;  %2175 = vmatpush.msra.mxu0 %v1784_v5  ;;  %v1223_v37 = vmax.f32 %v1127_v34, 0.0  ;;  %v1224_v50 = vmax.f32 %v1128_v38, 0.0 }
 0x164   :  { %v4710_v13 = vperm.slane %v1222_v40, 0  ;;  %v1687_v59 = vsel %vm1362_vm4, %v3657_v18, %v4253_v39  ;;  %2216 = vmatpush.msra.mxu2 %v1816_v9  ;;  %2244 = vmatpush.msrb.mxu1 %v1874_v43  ;;  %v4716_v31 = vmax.f32 %v4647_v24, %v556_v55  ;;  %v1872_v39 = vld [vmem:[%s5461_s3 + $0x3d8] sm:$0xff]  ;;  %v1902_v24 = vld [vmem:[%s5461_s3 + $0x4c8] sm:$0xff] }
 0x165   :  { %v1225_v17 = vmax.f32 %v1129_v57, 0.0  ;;  %v1415_v35 = vsel %vm1360_vm3, %v1352_v19, %v1414_v27  ;;  %v1494_v41 = vsel %vm1358_vm2, %v1352_v19, %v1351_v28  ;;  %2176 = vmatpush.msra.mxu0 %v1782_v51  ;;  %v4720_v42 = vperm.slane %v1223_v37, 0  ;;  %2287 = vmatpush.msrb.mxu3 %v1902_v24  ;;  %v1870_v55 = vld [vmem:[%s5461_s3 + $0x3c8] sm:$0xff]  ;;  %v1900_v57 = vld [vmem:[%s5461_s3 + $0x4b8] sm:$0xff] }
 0x166   :  { %v4722_v5 = vperm.slane %v1224_v50, 0  ;;  %v1416_v32 = vsel %vm1362_vm4, %v4676_v26, %v1415_v35  ;;  %v1495_v18 = vsel %vm1360_vm3, %v4676_v26, %v1494_v41  ;;  %2217 = vmatpush.msra.mxu2 %v1814_v48  ;;  %v2055_v28 = vpop.f32.mrf.mxu2  ;;  %v2995_v1 = vrot.slane %v4716_v31, 9  ;;  %2245 = vmatpush.msrb.mxu1 %v1872_v39 }
 0x167   :  { %v4734_v27 = vperm.slane %v1225_v17, 0  ;;  %v1417_v4 = vsel %vm1364_vm5, %v4710_v13, %v1416_v32  ;;  %v1496_v9 = vsel %vm1362_vm4, %v4710_v13, %v1495_v18  ;;  %v4741_v34 = vadd.f32 %v2055_v28, %v2015_v21  ;;  %v2017_v40 = vpop.f32.mrf.mxu0  ;;  %2288 = vmatpush.msrb.mxu3 %v1900_v57 }
 0x168   :  { %v1418_v33 = vsel %vm1366_vm6, %v4720_v42, %v1417_v4  ;;  %v1497_v38 = vsel %vm1364_vm5, %v4720_v42, %v1496_v9  ;;  %v675_v51 = vrot.slane %v4716_v31, 2  ;;  %v2018_v48 = vadd.f32 %v2017_v40, %v1977_v15  ;;  %2246 = vmatpush.msrb.mxu1 %v1870_v55 }
 0x169   :  { %v1419_v21 = vsel %vm1368_vm7, %v4722_v5, %v1418_v33  ;;  %v1130_v43 = vmax.f32 %v4716_v31, %v2995_v1  ;;  %v1498_v20 = vsel %vm1366_vm6, %v4722_v5, %v1497_v38  ;;  %v1574_v15 = vsel %vm1358_vm2, %v4676_v26, %v1352_v19 }
 0x16a   :  { %v4761_v37 = vsel %vm1370_vm8, %v4734_v27, %v1419_v21  ;;  %v1499_v50 = vsel %vm1368_vm7, %v4734_v27, %v1498_v20  ;;  %v2996_v17 = vrot.slane %v675_v51, 9  ;;  %v1575_v41 = vsel %vm1360_vm3, %v4710_v13, %v1574_v15 }
 0x16b   :  { %1952 = vmatmul.f32.gmra.mxu1 %v4761_v37  ;;  %v1226_v35 = vmax.f32 %v1130_v43, 0.0  ;;  %v676_v32 = vrot.slane %v4716_v31, 4  ;;  %v1654_v18 = vsel %vm1358_vm2, %v4710_v13, %v4676_v26  ;;  %v1576_v24 = vsel %vm1362_vm4, %v4720_v42, %v1575_v41 }
 0x16c   :  { %v1131_v39 = vmax.f32 %v675_v51, %v2996_v17  ;;  %v1655_v19 = vsel %vm1360_vm3, %v4720_v42, %v1654_v18  ;;  %v1688_v28 = vsel %vm1364_vm5, %v3708_v11, %v1687_v59  ;;  %v1577_v1 = vsel %vm1364_vm5, %v4722_v5, %v1576_v24  ;;  %v1868_v11 = vld [vmem:[%s5461_s3 + $0x3b8] sm:$0xff]  ;;  %v1898_v59 = vld [vmem:[%s5461_s3 + $0x4a8] sm:$0xff] }
 0x16d   :  { %v4780_v4 = vperm.slane %v1226_v35, 0  ;;  %v2997_v9 = vrot.slane %v676_v32, 9  ;;  %v1656_v40 = vsel %vm1362_vm4, %v4722_v5, %v1655_v19  ;;  %v1578_v33 = vsel %vm1366_vm6, %v4734_v27, %v1577_v1  ;;  %2247 = vmatpush.msrb.mxu1 %v1868_v11  ;;  %v1866_v35 = vld [vmem:[%s5461_s3 + $0x3a8] sm:$0xff]  ;;  %2289 = vmatpush.msrb.mxu3 %v1898_v59 }
 0x16e   :  { %v1227_v26 = vmax.f32 %v1131_v39, 0.0  ;;  %v1657_v38 = vsel %vm1364_vm5, %v4734_v27, %v1656_v40  ;;  %v1689_v51 = vsel %vm1366_vm6, %v3735_v61, %v1688_v28  ;;  %v2058_v57 = vpop.f32.mrf.mxu2  ;;  %v632_v24 = vrot.slane %v3911_v62, 6 }
 0x16f   :  { %v4800_v55 = vsel %vm1370_vm8, %v4780_v4, %v1499_v50  ;;  %v1579_v21 = vsel %vm1368_vm7, %v4780_v4, %v1578_v33  ;;  %v1132_v43 = vmax.f32 %v676_v32, %v2997_v9  ;;  %v1658_v61 = vsel %vm1366_vm6, %v4780_v4, %v1657_v38  ;;  %2248 = vmatpush.msrb.mxu1 %v1866_v35  ;;  %v1938_v62 = vpop.f32.mrf.mxu1 }
 0x170   :  { %1993 = vmatmul.f32.gmra.mxu3 %v4800_v55  ;;  %v4807_v20 = vadd.f32 %v2058_v57, %v2018_v48  ;;  %v4809_v17 = vperm.slane %v1227_v26, 0  ;;  %v1690_v15 = vsel %vm1368_vm7, %v3747_v49, %v1689_v51  ;;  %v623_v50 = vrot.slane %v3786_v53, 6  ;;  %v1896_v49 = vld [vmem:[%s5461_s3 + $0x498] sm:$0xff] }
 0x171   :  { %v1228_v41 = vmax.f32 %v1132_v43, 0.0  ;;  %v4819_v32 = vsel %vm1370_vm8, %v4121_v45, %v1690_v15  ;;  %v1692_v48 = vsel %vm1358_vm2, %v3805_v47, %v3795_v56  ;;  %v1699_v19 = vsel %vm1358_vm2, %v3925_v10, %v3916_v14  ;;  %2290 = vmatpush.msrb.mxu3 %v1896_v49  ;;  %v1894_v10 = vld [vmem:[%s5461_s3 + $0x488] sm:$0xff] }
 0x172   :  { %v4829_v53 = vsel %vm1370_vm8, %v4809_v17, %v1579_v21  ;;  %v1659_v18 = vsel %vm1368_vm7, %v4809_v17, %v1658_v61  ;;  %v2926_v39 = vrot.slane %v623_v50, 9  ;;  %v1693_v45 = vsel %vm1360_vm3, %v3807_v2, %v1692_v48  ;;  %v5571_v21 = vld [vmem:[#allocation2_spill] sm:$0xff]  ;;  %v5574_v49 = vld [vmem:[#allocation3_spill] sm:$0xff] }
 0x173   :  { %2034 = vmatmul.f32.gmra.mxu0 %v4829_v53  ;;  %v4836_v56 = vperm.slane %v1228_v41, 0  ;;  %2095 = vmatmul.f32.vlgmr.msra.gmra.mxu1 %v4819_v32  ;;  %v1694_v47 = vsel %vm1362_vm4, %v3809_v8, %v1693_v45  ;;  %v2938_v40 = vrot.slane %v632_v24, 9  ;;  %v1700_v8 = vsel %vm1360_vm3, %v3927_v23, %v1699_v19  ;;  %v5573_v41 = vld [vmem:[#allocation16_spill] sm:$0xff]  ;;  %v5577_v19 = vld [vmem:[#allocation13_spill] sm:$0xff] }
 0x174   :  { %v1061_v28 = vmax.f32 %v623_v50, %v2926_v39  ;;  %v1695_v1 = vsel %vm1364_vm5, %v3846_v44, %v1694_v47  ;;  %v1864_v44 = vld [vmem:[%s5461_s3 + $0x398] sm:$0xff]  ;;  %2291 = vmatpush.msrb.mxu3 %v1894_v10  ;;  %v1701_v38 = vsel %vm1362_vm4, %v3934_v25, %v1700_v8  ;;  %v1939_v51 = vadd.f32 %v1938_v62, %v4397_v60  ;;  %v1862_v25 = vld [vmem:[%s5461_s3 + $0x388] sm:$0xff]  ;;  %v5579_v8 = vld [vmem:[#allocation40_spill] sm:$0xff] }
 0x175   :  { %v4849_v2 = vsel %vm1370_vm8, %v4836_v56, %v1659_v18  ;;  %v1696_v9 = vsel %vm1366_vm6, %v3862_v0, %v1695_v1  ;;  %v641_v0 = vrot.slane %v4024_v22, 6  ;;  %2249 = vmatpush.msrb.mxu1 %v1864_v44  ;;  %v1073_v33 = vmax.f32 %v632_v24, %v2938_v40  ;;  %v5572_v50 = vld [vmem:[#allocation11_spill] sm:$0xff]  ;;  %v5575_v18 = vld [vmem:[#allocation38_spill] sm:$0xff]  ;;  %v1860_v47 = vld [vmem:[%s5461_s3 + $0x378] sm:$0xff] }
 0x176   :  { %2075 = vmatmul.f32.gmra.mxu2 %v4849_v2  ;;  %v1157_v14 = vmax.f32 %v1061_v28, 0.0  ;;  %v1697_v26 = vsel %vm1368_vm7, %v3889_v54, %v1696_v9  ;;  %v1702_v11 = vsel %vm1364_vm5, %v3959_v6, %v1701_v38  ;;  %v5570_v54 = vld [vmem:[#allocation15_spill] sm:$0xff]  ;;  %v1892_v6 = vld [vmem:[%s5461_s3 + $0x478] sm:$0xff] }
 0x177   :  { %v1706_v22 = vsel %vm1358_vm2, %v5570_v54, %v4028_v58  ;;  %v2950_v43 = vrot.slane %v641_v0, 9  ;;  %v2020_v61 = vpop.f32.mrf.mxu0  ;;  %v1169_v15 = vmax.f32 %v1073_v33, 0.0  ;;  %v1703_v35 = vsel %vm1366_vm6, %v5572_v50, %v1702_v11  ;;  %2250 = vmatpush.msrb.mxu1 %v1862_v25  ;;  %2292 = vmatpush.msrb.mxu3 %v1892_v6  ;;  %v5576_v39 = vld [vmem:[#allocation39_spill] sm:$0xff]  ;;  %v5578_v9 = vld [vmem:[#allocation25_spill] sm:$0xff]  ;;  %v5588_v50 = vld [vmem:[#allocation6_spill] sm:$0xff] }
 0x178   :  { %2136 = vmatmul.f32.vlgmr.msra.gmra.mxu3 %v3697_v3  ;;  %v1678_v23 = vperm.slane %v1157_v14, 0  ;;  %v1707_v48 = vsel %vm1360_vm3, %v5573_v41, %v1706_v22  ;;  %v1720_v45 = vsel %vm1358_vm2, %v5576_v39, %v5575_v18  ;;  %v1890_v24 = vld [vmem:[%s5461_s3 + $0x468] sm:$0xff]  ;;  %v1704_v28 = vsel %vm1368_vm7, %v5577_v19, %v1703_v35  ;;  %v5580_v14 = vld [vmem:[#allocation5_spill] sm:$0xff] }
 0x179   :  { %v1979_v59 = vpop.f32.mrf.mxu3  ;;  %v1085_v1 = vmax.f32 %v641_v0, %v2950_v43  ;;  %v650_v40 = vrot.slane %v5578_v9, 6  ;;  %v1721_v62 = vsel %vm1360_vm3, %v5579_v8, %v1720_v45  ;;  %2251 = vmatpush.msrb.mxu1 %v1860_v47  ;;  %2293 = vmatpush.msrb.mxu3 %v1890_v24  ;;  %v1679_v44 = vperm.slane %v1169_v15, 0  ;;  %v5581_v10 = vld [vmem:[#allocation17_spill] sm:$0xff]  ;;  %v1858_v0 = vld [vmem:[%s5461_s3 + $0x368] sm:$0xff]  ;;  %v5591_v45 = vld [vmem:[#allocation28_spill] sm:$0xff] }
 0x17a   :  { %v4872_v57 = vsel %vm1370_vm8, %v1678_v23, %v1697_v26  ;;  %v1980_v3 = vadd.f32 %v1979_v59, %v1939_v51  ;;  %v1708_v26 = vsel %vm1362_vm4, %v5581_v10, %v1707_v48  ;;  %v5582_v23 = vld [vmem:[#allocation41_spill] sm:$0xff]  ;;  %v5583_v51 = vld [vmem:[#allocation19_spill] sm:$0xff] }
 0x17b   :  { %2177 = vmatmul.f32.vlgmr.msra.gmra.mxu0 %v5571_v21  ;;  %2098 = vmatmul.f32.gmra.mxu1 %v4872_v57  ;;  %v1722_v33 = vsel %vm1362_vm4, %v5582_v23, %v1721_v62  ;;  %v1888_v38 = vld [vmem:[%s5461_s3 + $0x458] sm:$0xff]  ;;  %v1709_v11 = vsel %vm1364_vm5, %v5583_v51, %v1708_v26  ;;  %v5584_v59 = vld [vmem:[#allocation43_spill] sm:$0xff]  ;;  %v4920_v21 = vsel %vm1370_vm8, %v1679_v44, %v1704_v28  ;;  %v1181_v35 = vmax.f32 %v1085_v1, 0.0 }
 0x17c   :  { %v2021_v58 = vadd.f32 %v2020_v61, %v1980_v3  ;;  %v1723_v54 = vsel %vm1364_vm5, %v5584_v59, %v1722_v33  ;;  %2252 = vmatpush.msrb.mxu1 %v1858_v0  ;;  %2294 = vmatpush.msrb.mxu3 %v1888_v38  ;;  %v5585_v3 = vld [vmem:[#allocation26_spill] sm:$0xff]  ;;  %v5586_v43 = vld [vmem:[#allocation27_spill] sm:$0xff]  ;;  %v5587_v6 = vld [vmem:[#allocation45_spill] sm:$0xff]  ;;  %v2962_v41 = vrot.slane %v650_v40, 9  ;;  %v1727_v28 = vsel %vm1358_vm2, %v4505_v12, %v4484_v52 }
 0x17d   :  { %v1713_v25 = vsel %vm1358_vm2, %v5586_v43, %v5585_v3  ;;  %v1724_v61 = vsel %vm1366_vm6, %v5587_v6, %v1723_v54  ;;  %v5589_v48 = vld [vmem:[#allocation47_spill] sm:$0xff]  ;;  %v5590_v18 = vld [vmem:[#allocation21_spill] sm:$0xff]  ;;  %v1680_v8 = vperm.slane %v1181_v35, 0  ;;  %v1728_v10 = vsel %vm1360_vm3, %v4507_v63, %v1727_v28  ;;  %v5599_v3 = vld [vmem:[#allocation10_spill] sm:$0xff] }
 0x17e   :  { %2218 = vmatmul.f32.vlgmr.msra.gmra.mxu2 %v5574_v49  ;;  %v4933_v49 = vsel %vm1368_vm7, %v5589_v48, %v1724_v61  ;;  %v1710_v39 = vsel %vm1366_vm6, %v5590_v18, %v1709_v11  ;;  %v1714_v47 = vsel %vm1360_vm3, %v5591_v45, %v1713_v25  ;;  %v5592_v24 = vld [vmem:[#allocation7_spill] sm:$0xff]  ;;  %v1856_v1 = vld [vmem:[%s5461_s3 + $0x358] sm:$0xff]  ;;  %v1097_v44 = vmax.f32 %v650_v40, %v2962_v41  ;;  %v5601_v41 = vld [vmem:[#allocation12_spill] sm:$0xff] }
 0x17f   :  { %v1886_v9 = vld [vmem:[%s5461_s3 + $0x448] sm:$0xff]  ;;  %2253 = vmatpush.msrb.mxu1 %v1856_v1  ;;  %v5595_v26 = vld [vmem:[#allocation9_spill] sm:$0xff]  ;;  %v1729_v38 = vsel %vm1362_vm4, %v4520_v29, %v1728_v10  ;;  %v5603_v45 = vld [vmem:[#allocation18_spill] sm:$0xff] }
 0x180   :  { %2139 = vmatmul.f32.gmra.mxu3 %v5580_v14  ;;  %v5594_v62 = vld [vmem:[#allocation23_spill] sm:$0xff]  ;;  %v5596_v52 = vld [vmem:[#allocation29_spill] sm:$0xff]  ;;  %v1730_v59 = vsel %vm1364_vm5, %v4572_v46, %v1729_v38  ;;  %v1193_v25 = vmax.f32 %v1097_v44, 0.0 }
 0x181   :  { %v2061_v22 = vpop.f32.mrf.mxu2  ;;  %v1711_v14 = vsel %vm1368_vm7, %v5594_v62, %v1710_v39  ;;  %2295 = vmatpush.msrb.mxu3 %v1886_v9  ;;  %v1715_v12 = vsel %vm1362_vm4, %v5596_v52, %v1714_v47  ;;  %v5597_v23 = vld [vmem:[#allocation37_spill] sm:$0xff]  ;;  %v1854_v40 = vld [vmem:[%s5461_s3 + $0x348] sm:$0xff]  ;;  %v5604_v9 = vld [vmem:[#allocation20_spill] sm:$0xff] }
 0x182   :  { %v4927_v15 = vadd.f32 %v2061_v22, %v2021_v58  ;;  %v5593_v58 = vld [vmem:[#allocation49_spill] sm:$0xff]  ;;  %v659_v33 = vrot.slane %v5597_v23, 6  ;;  %v5598_v51 = vld [vmem:[#allocation31_spill] sm:$0xff]  ;;  %2254 = vmatpush.msrb.mxu1 %v1854_v40  ;;  %v4971_v54 = vsel %vm1370_vm8, %v1680_v8, %v1711_v14  ;;  %v1731_v22 = vsel %vm1366_vm6, %v4615_v36, %v1730_v59 }
 0x183   :  { %2180 = vmatmul.f32.gmra.mxu0 %v5588_v50  ;;  %2101 = vmatmul.f32.gmra.mxu1 %v4920_v21  ;;  %v668_v19 = vrot.slane %v5593_v58, 6  ;;  %v1884_v63 = vld [vmem:[%s5461_s3 + $0x438] sm:$0xff]  ;;  %v1716_v11 = vsel %vm1364_vm5, %v5598_v51, %v1715_v12  ;;  %v1732_v43 = vsel %vm1368_vm7, %v4650_v30, %v1731_v22  ;;  %v1882_v18 = vld [vmem:[%s5461_s3 + $0x428] sm:$0xff]  ;;  %v1681_v47 = vperm.slane %v1193_v25, 0  ;;  %v5605_v12 = vld [vmem:[#allocation22_spill] sm:$0xff] }
 0x184   :  { %2296 = vmatpush.msrb.mxu3 %v1884_v63  ;;  %v5600_v6 = vld [vmem:[#allocation33_spill] sm:$0xff]  ;;  %v2974_v61 = vrot.slane %v659_v33, 9  ;;  %v5602_v39 = vld [vmem:[#allocation35_spill] sm:$0xff]  ;;  %v677_v40 = vrot.slane %v4716_v31, 6  ;;  %v5609_v31 = vld [vmem:[#allocation42_spill] sm:$0xff] }
 0x185   :  { %v2986_v0 = vrot.slane %v668_v19, 9  ;;  %v1717_v46 = vsel %vm1366_vm6, %v5600_v6, %v1716_v11  ;;  %v1852_v36 = vld [vmem:[%s5461_s3 + $0x338] sm:$0xff]  ;;  %v1850_v62 = vld [vmem:[%s5461_s3 + $0x328] sm:$0xff]  ;;  %v1734_v11 = vsel %vm1358_vm2, %v4720_v42, %v4710_v13  ;;  %v5610_v42 = vld [vmem:[#allocation44_spill] sm:$0xff] }
 0x186   :  { %2221 = vmatmul.f32.gmra.mxu2 %v5592_v24  ;;  %v1718_v30 = vsel %vm1368_vm7, %v5602_v39, %v1717_v46  ;;  %2255 = vmatpush.msrb.mxu1 %v1852_v36  ;;  %v1109_v24 = vmax.f32 %v659_v33, %v2974_v61  ;;  %v1880_v14 = vld [vmem:[%s5461_s3 + $0x418] sm:$0xff]  ;;  %v1846_v23 = vld [vmem:[%s5461_s3 + $0x308] sm:$0xff]  ;;  %v2998_v22 = vrot.slane %v677_v40, 9  ;;  %v5611_v61 = vld [vmem:[#allocation46_spill] sm:$0xff] }
 0x187   :  { %v1121_v29 = vmax.f32 %v668_v19, %v2986_v0  ;;  %v1941_v35 = vpop.f32.mrf.mxu1  ;;  %2297 = vmatpush.msrb.mxu3 %v1882_v18  ;;  %v4996_v1 = vsel %vm1370_vm8, %v1681_v47, %v1718_v30  ;;  %v1848_v44 = vld [vmem:[%s5461_s3 + $0x318] sm:$0xff]  ;;  %v1878_v33 = vld [vmem:[%s5461_s3 + $0x408] sm:$0xff]  ;;  %v5606_v0 = vld [vmem:[#allocation30_spill] sm:$0xff] }
 0x188   :  { %2142 = vmatmul.f32.gmra.mxu3 %v5595_v26  ;;  %v1942_v19 = vadd.f32 %v1941_v35, %v4397_v60  ;;  %v1205_v26 = vmax.f32 %v1109_v24, 0.0  ;;  %2256 = vmatpush.msrb.mxu1 %v1850_v62  ;;  %v1133_v25 = vmax.f32 %v677_v40, %v2998_v22  ;;  %v5612_v35 = vld [vmem:[#allocation50_spill] sm:$0xff]  ;;  %v5613_v36 = vld [vmem:[#allocation51_spill] sm:$0xff]  ;;  %v5615_v47 = vld [vmem:[#allocation8_spill] sm:$0xff] }
 0x189   :  { %v1217_v50 = vmax.f32 %v1121_v29, 0.0  ;;  %2298 = vmatpush.msrb.mxu3 %v1880_v14  ;;  %v5607_v29 = vld [vmem:[#allocation32_spill] sm:$0xff] }
 0x18a   :  { %2257 = vmatpush.msrb.mxu1 %v1848_v44  ;;  %v1682_v38 = vperm.slane %v1205_v26, 0  ;;  %v1229_v6 = vmax.f32 %v1133_v25, 0.0  ;;  %v5619_v26 = vld [vmem:[#allocation48_spill] sm:$0xff] }
 0x18b   :  { %2183 = vmatmul.f32.gmra.mxu0 %v5599_v3  ;;  %2104 = vmatmul.f32.gmra.mxu1 %v4971_v54  ;;  %v1683_v48 = vperm.slane %v1217_v50, 0  ;;  %v1735_v3 = vsel %vm1360_vm3, %v4722_v5, %v1734_v11 }
 0x18c   :  { %2299 = vmatpush.msrb.mxu3 %v1878_v33  ;;  %2258 = vmatpush.msrb.mxu1 %v1846_v23  ;;  %v1726_v51 = vsel %vm1370_vm8, %v1682_v38, %v4933_v49  ;;  %v1736_v49 = vsel %vm1362_vm4, %v4734_v27, %v1735_v3  ;;  %v1684_v27 = vperm.slane %v1229_v6, 0 }
 0x18d   :  { %v4992_v58 = vsel %vm1370_vm8, %v1683_v48, %v1732_v43  ;;  %v5608_v43 = vld [vmem:[#allocation34_spill] sm:$0xff]  ;;  %v1737_v13 = vsel %vm1364_vm5, %v4780_v4, %v1736_v49 }
 0x18e   :  { %2224 = vmatmul.f32.gmra.mxu2 %v5601_v41  ;;  %v1738_v46 = vsel %vm1366_vm6, %v4809_v17, %v1737_v13 }
 0x18f   :  { %v2023_v10 = vpop.f32.mrf.mxu0  ;;  %v1739_v50 = vsel %vm1368_vm7, %v4836_v56, %v1738_v46 }
 0x190   :  { %2145 = vmatmul.f32.gmra.mxu3 %v5603_v45  ;;  %v1740_v48 = vsel %vm1370_vm8, %v1684_v27, %v1739_v50  ;;  %v5614_v45 = vld [vmem:[#allocation4_spill] sm:$0xff] }
 0x191   :  { %v1982_v28 = vpop.f32.mrf.mxu3 }
 0x192   :  { %v1983_v8 = vadd.f32 %v1982_v28, %v1942_v19 }
 0x193   :  { %2186 = vmatmul.f32.gmra.mxu0 %v5604_v9  ;;  %2107 = vmatmul.f32.gmra.mxu1 %v4996_v1 }
 0x194   :  { %v2024_v52 = vadd.f32 %v2023_v10, %v1983_v8 }
 0x196   :  { %2227 = vmatmul.f32.gmra.mxu2 %v5605_v12 }
 0x198   :  { %2148 = vmatmul.f32.gmra.mxu3 %v5606_v0 }
 0x199   :  { %v2064_v63 = vpop.f32.mrf.mxu2 }
 0x19a   :  { %v5023_v59 = vadd.f32 %v2064_v63, %v2024_v52 }
 0x19b   :  { %2189 = vmatmul.f32.gmra.mxu0 %v5607_v29  ;;  %2110 = vmatmul.f32.gmra.mxu1 %v1726_v51 }
 0x19e   :  { %2230 = vmatmul.f32.gmra.mxu2 %v5608_v43 }
 0x19f   :  { %v1944_v5 = vpop.f32.mrf.mxu1 }
 0x1a0   :  { %2151 = vmatmul.f32.gmra.mxu3 %v5609_v31  ;;  %v1945_v41 = vadd.f32 %v1944_v5, %v4397_v60 }
 0x1a3   :  { %2192 = vmatmul.f32.gmra.mxu0 %v5610_v42  ;;  %2113 = vmatmul.f32.gmra.mxu1 %v4992_v58 }
 0x1a6   :  { %2233 = vmatmul.f32.gmra.mxu2 %v5611_v61 }
 0x1a7   :  { %v2026_v39 = vpop.f32.mrf.mxu0 }
 0x1a8   :  { %2154 = vmatmul.f32.gmra.mxu3 %v5612_v35 }
 0x1a9   :  { %v1985_v4 = vpop.f32.mrf.mxu3 }
 0x1aa   :  { %v1986_v18 = vadd.f32 %v1985_v4, %v1945_v41 }
 0x1ab   :  { %2195 = vmatmul.f32.gmra.mxu0 %v5613_v36  ;;  %2116 = vmatmul.f32.gmra.mxu1 %v1740_v48 }
 0x1ac   :  { %v2027_v17 = vadd.f32 %v2026_v39, %v1986_v18  ;;  %v3086_v18 = vld [vmem:[%s5463_s4] sm:$0x3] }
 0x1ad   :  { %v5099_v39 = vperm.slane %v3086_v18, 1  ;;  %v2556_v18 = vld [vmem:[%s5465_s5 + $0x30] sm:$0xff] }
 0x1ae   :  { %2236 = vmatmul.f32.gmra.mxu2 %v4640_v7 }
 0x1b0   :  { %2157 = vmatmul.f32.gmra.mxu3 %v4761_v37  ;;  %v5616_v37 = vld [vmem:[#allocation14_spill] sm:$0xff] }
 0x1b2   :  { %v2067_v30 = vpop.f32.mrf.mxu2 }
 0x1b3   :  { %v2068_v56 = vadd.f32 %v2067_v30, %v2027_v17  ;;  %2198 = vmatmul.f32.gmra.mxu0 %v4800_v55  ;;  %2259 = vmatmul.f32.vlgmr.msrb.gmra.mxu1 %v5614_v45  ;;  %v5617_v55 = vld [vmem:[#allocation24_spill] sm:$0xff]  ;;  %v3046_v45 = vld [vmem:[%s5465_s5 + $0xf8] sm:$0xff] }
 0x1b4   :  { %2655 = vmatpush.msrb.mxu2 %v3046_v45 }
 0x1b6   :  { %2239 = vmatmul.f32.gmra.mxu2 %v4829_v53 }
 0x1b7   :  { %v1947_v24 = vpop.f32.mrf.mxu1 }
 0x1b8   :  { %2300 = vmatmul.f32.vlgmr.msrb.gmra.mxu3 %v4819_v32  ;;  %v1948_v19 = vadd.f32 %v1947_v24, %v4397_v60  ;;  %v5618_v32 = vld [vmem:[#allocation36_spill] sm:$0xff] }
 0x1b9   :  { %v3045_v24 = vld [vmem:[%s5465_s5 + $0xf0] sm:$0xff] }
 0x1ba   :  { %2656 = vmatpush.msrb.mxu2 %v3045_v24 }
 0x1bb   :  { %2262 = vmatmul.f32.gmra.mxu1 %v5615_v47  ;;  %v2565_v47 = vld [vmem:[%s5465_s5 + $0x78] sm:$0xff] }
 0x1bc   :  { %2590 = vmatpush.msrb.mxu0 %v2565_v47 }
 0x1c0   :  { %2303 = vmatmul.f32.gmra.mxu3 %v4872_v57  ;;  %v2029_v9 = vpop.f32.mrf.mxu0 }
 0x1c1   :  { %v1988_v7 = vpop.f32.mrf.mxu3 }
 0x1c2   :  { %v1989_v28 = vadd.f32 %v1988_v7, %v1948_v19 }
 0x1c3   :  { %2265 = vmatmul.f32.gmra.mxu1 %v5616_v37 }
 0x1c4   :  { %v2030_v8 = vadd.f32 %v2029_v9, %v1989_v28 }
 0x1c8   :  { %2306 = vmatmul.f32.gmra.mxu3 %v4920_v21 }
 0x1cb   :  { %2268 = vmatmul.f32.gmra.mxu1 %v5617_v55  ;;  %v2070_v53 = vpop.f32.mrf.mxu2  ;;  %v2564_v55 = vld [vmem:[%s5465_s5 + $0x70] sm:$0xff] }
 0x1cc   :  { %v2071_v62 = vadd.f32 %v2070_v53, %v2030_v8  ;;  %v3044_v53 = vld [vmem:[%s5465_s5 + $0xe8] sm:$0xff]  ;;  %2591 = vmatpush.msrb.mxu0 %v2564_v55 }
 0x1cd   :  { %2657 = vmatpush.msrb.mxu2 %v3044_v53  ;;  %v3036_v55 = vld [vmem:[%s5465_s5 + $0xa8] sm:$0xff] }
 0x1d0   :  { %2309 = vmatmul.f32.gmra.mxu3 %v4971_v54  ;;  %v1950_v14 = vpop.f32.mrf.mxu1 }
 0x1d1   :  { %v1951_v57 = vadd.f32 %v1950_v14, %v4397_v60  ;;  %v3043_v14 = vld [vmem:[%s5465_s5 + $0xe0] sm:$0xff] }
 0x1d2   :  { %2658 = vmatpush.msrb.mxu2 %v3043_v14 }
 0x1d3   :  { %2271 = vmatmul.f32.gmra.mxu1 %v5618_v32 }
 0x1d8   :  { %2312 = vmatmul.f32.gmra.mxu3 %v4996_v1 }
 0x1d9   :  { %v1991_v44 = vpop.f32.mrf.mxu3  ;;  %v2032_v52 = vpop.f32.mrf.mxu0 }
 0x1da   :  { %v1992_v10 = vadd.f32 %v1991_v44, %v1951_v57  ;;  %v2562_v44 = vld [vmem:[%s5465_s5 + $0x60] sm:$0xff] }
 0x1db   :  { %2274 = vmatmul.f32.gmra.mxu1 %v5619_v26 }
 0x1dc   :  { %v2033_v12 = vadd.f32 %v2032_v52, %v1992_v10 }
 0x1e0   :  { %2315 = vmatmul.f32.gmra.mxu3 %v1726_v51 }
 0x1e3   :  { %2277 = vmatmul.f32.gmra.mxu1 %v4693_v16 }
 0x1e6   :  { %v2073_v21 = vpop.f32.mrf.mxu2 }
 0x1e7   :  { %v2074_v23 = vadd.f32 %v2073_v21, %v2033_v12 }
 0x1e8   :  { %2318 = vmatmul.f32.gmra.mxu3 %v4992_v58  ;;  %v1953_v54 = vpop.f32.mrf.mxu1 }
 0x1e9   :  { %v1954_v0 = vadd.f32 %v1953_v54, %v4397_v60 }
 0x1eb   :  { %2280 = vmatmul.f32.gmra.mxu1 %v4849_v2 }
 0x1f0   :  { %2321 = vmatmul.f32.gmra.mxu3 %v1740_v48  ;;  %v2096_v1 = vpop.f32.mrf.mxu1  ;;  %v2035_v63 = vpop.f32.mrf.mxu0 }
 0x1f1   :  { %v5066_v33 = vadd.f32 %v2096_v1, %v4741_v34 }
 0x1f3   :  { %v1994_v38 = vpop.f32.mrf.mxu3 }
 0x1f4   :  { %v1995_v40 = vadd.f32 %v1994_v38, %v1954_v0  ;;  %v2561_v38 = vld [vmem:[%s5465_s5 + $0x58] sm:$0xff] }
 0x1f6   :  { %v2036_v51 = vadd.f32 %v2035_v63, %v1995_v40  ;;  %v3042_v40 = vld [vmem:[%s5465_s5 + $0xd8] sm:$0xff]  ;;  %v2560_v63 = vld [vmem:[%s5465_s5 + $0x50] sm:$0xff] }
 0x1f7   :  { %2659 = vmatpush.msrb.mxu2 %v3042_v40 }
 0x1f8   :  { %v2099_v11 = vpop.f32.mrf.mxu1  ;;  %v2178_v25 = vpop.f32.mrf.mxu0 }
 0x1f9   :  { %v2076_v16 = vpop.f32.mrf.mxu2  ;;  %v5070_v29 = vadd.f32 %v2099_v11, %v4807_v20 }
 0x1fa   :  { %v2077_v58 = vadd.f32 %v2076_v16, %v2036_v51  ;;  %v2559_v16 = vld [vmem:[%s5465_s5 + $0x48] sm:$0xff] }
 0x1fb   :  { %v2137_v22 = vpop.f32.mrf.mxu3 }
 0x1fc   :  { %v2138_v30 = vadd.f32 %v2137_v22, %v5099_v39 }
 0x1fe   :  { %v2179_v7 = vadd.f32 %v2178_v25, %v2138_v30  ;;  %v3039_v25 = vld [vmem:[%s5465_s5 + $0xc0] sm:$0xff]  ;;  %v3037_v30 = vld [vmem:[%s5465_s5 + $0xb0] sm:$0xff] }
 0x200   :  { %v2102_v3 = vpop.f32.mrf.mxu1  ;;  %v2181_v6 = vpop.f32.mrf.mxu0 }
 0x201   :  { %v5073_v2 = vadd.f32 %v2102_v3, %v4927_v15  ;;  %v2219_v20 = vpop.f32.mrf.mxu2 }
 0x202   :  { %v2220_v9 = vadd.f32 %v2219_v20, %v2179_v7 }
 0x203   :  { %v2140_v43 = vpop.f32.mrf.mxu3 }
 0x204   :  { %v2141_v32 = vadd.f32 %v2140_v43, %v5099_v39  ;;  %v2558_v43 = vld [vmem:[%s5465_s5 + $0x40] sm:$0xff] }
 0x206   :  { %v2182_v52 = vadd.f32 %v2181_v6, %v2141_v32 }
 0x208   :  { %v2105_v34 = vpop.f32.mrf.mxu1 }
 0x209   :  { %v5076_v31 = vadd.f32 %v2105_v34, %v5023_v59  ;;  %v2222_v15 = vpop.f32.mrf.mxu2  ;;  %v2184_v59 = vpop.f32.mrf.mxu0 }
 0x20a   :  { %v2223_v0 = vadd.f32 %v2222_v15, %v2182_v52  ;;  %v3038_v15 = vld [vmem:[%s5465_s5 + $0xb8] sm:$0xff] }
 0x20b   :  { %v2143_v60 = vpop.f32.mrf.mxu3 }
 0x210   :  { %v2108_v49 = vpop.f32.mrf.mxu1 }
 0x211   :  { %v5078_v13 = vadd.f32 %v2108_v49, %v2068_v56  ;;  %v5092_v48 = vpop.f32.mrf.mxu2  ;;  %v5101_v17 = vpop.f32.mrf.mxu0 }
 0x213   :  { %v5080_v42 = vpop.f32.mrf.mxu3 }
 0x214   :  { %v2147_v34 = vadd.f32 %v5080_v42, %v5099_v39  ;;  %v2557_v42 = vld [vmem:[%s5465_s5 + $0x38] sm:$0xff] }
 0x218   :  { %v2111_v46 = vpop.f32.mrf.mxu1 }
 0x219   :  { %v5082_v5 = vadd.f32 %v2111_v46, %v2071_v62  ;;  %v5115_v28 = vpop.f32.mrf.mxu2  ;;  %v5117_v37 = vpop.f32.mrf.mxu0  ;;  %v2563_v62 = vld [vmem:[%s5465_s5 + $0x68] sm:$0xff] }
 0x21a   :  { %2592 = vmatpush.msrb.mxu0 %v2563_v62 }
 0x21b   :  { %v5084_v61 = vpop.f32.mrf.mxu3 }
 0x21c   :  { %2593 = vmatpush.msrb.mxu0 %v2562_v44  ;;  %v2150_v49 = vadd.f32 %v5084_v61, %v5099_v39  ;;  %v3035_v44 = vld [vmem:[%s5465_s5 + $0xa0] sm:$0xff] }
 0x21e   :  { %2594 = vmatpush.msrb.mxu0 %v2561_v38  ;;  %v2191_v24 = vadd.f32 %v5117_v37, %v2150_v49 }
 0x220   :  { %v2114_v50 = vpop.f32.mrf.mxu1  ;;  %2595 = vmatpush.msrb.mxu0 %v2560_v63 }
 0x221   :  { %v5086_v35 = vadd.f32 %v2114_v50, %v2074_v23  ;;  %v5135_v12 = vpop.f32.mrf.mxu2  ;;  %v2144_v23 = vadd.f32 %v2143_v60, %v5099_v39  ;;  %v2193_v54 = vpop.f32.mrf.mxu0 }
 0x222   :  { %2596 = vmatpush.msrb.mxu0 %v2559_v16 }
 0x223   :  { %v5088_v27 = vpop.f32.mrf.mxu3  ;;  %v2185_v22 = vadd.f32 %v2184_v59, %v2144_v23 }
 0x224   :  { %2597 = vmatpush.msrb.mxu0 %v2558_v43  ;;  %v2153_v61 = vadd.f32 %v5088_v27, %v5099_v39 }
 0x225   :  { %v2226_v50 = vadd.f32 %v5092_v48, %v2185_v22  ;;  %v2188_v48 = vadd.f32 %v5101_v17, %v2147_v34  ;;  %v3033_v22 = vld [vmem:[%s5465_s5 + $0x90] sm:$0xff] }
 0x226   :  { %2598 = vmatpush.msrb.mxu0 %v2557_v42  ;;  %v2194_v32 = vadd.f32 %v2193_v54, %v2153_v61  ;;  %v2551_v42 = vld [vmem:[%s5465_s5 + $0x8] sm:$0xff] }
 0x228   :  { %v2117_v41 = vpop.f32.mrf.mxu1  ;;  %2599 = vmatpush.msrb.mxu0 %v2556_v18 }
 0x229   :  { %v5090_v4 = vadd.f32 %v2117_v41, %v2077_v58  ;;  %v3040_v58 = vld [vmem:[%s5465_s5 + $0xc8] sm:$0xff]  ;;  %v2234_v59 = vpop.f32.mrf.mxu2 }
 0x22b   :  { %v5094_v36 = vpop.f32.mrf.mxu3 }
 0x22c   :  { %v2156_v37 = vadd.f32 %v5094_v36, %v5099_v39  ;;  %v5218_v36 = vadd.f32 %v5135_v12, %v2191_v24 }
 0x230   :  { %v2260_v56 = vpop.f32.mrf.mxu1 }
 0x231   :  { %v2261_v57 = vadd.f32 %v2260_v56, %v2220_v9  ;;  %v2196_v56 = vpop.f32.mrf.mxu0 }
 0x233   :  { %v5113_v19 = vpop.f32.mrf.mxu3 }
 0x238   :  { %v2263_v8 = vpop.f32.mrf.mxu1 }
 0x239   :  { %v2264_v51 = vadd.f32 %v2263_v8, %v2223_v0  ;;  %v2555_v8 = vld [vmem:[%s5465_s5 + $0x28] sm:$0xff]  ;;  %v2553_v0 = vld [vmem:[%s5465_s5 + $0x18] sm:$0xff] }
 0x23a   :  { %2600 = vmatpush.msrb.mxu0 %v2555_v8  ;;  %v3078_v8 = vld [vmem:[%s5465_s5 + $0x1f8] sm:$0xff] }
 0x23b   :  { %v2301_v10 = vpop.f32.mrf.mxu3 }
 0x23c   :  { %v2302_v26 = vadd.f32 %v2301_v10, %v2261_v57  ;;  %v2554_v57 = vld [vmem:[%s5465_s5 + $0x20] sm:$0xff]  ;;  %v2229_v10 = vadd.f32 %v5115_v28, %v2188_v48  ;;  %v3034_v28 = vld [vmem:[%s5465_s5 + $0x98] sm:$0xff] }
 0x23d   :  { %2601 = vmatpush.msrb.mxu0 %v2554_v57 }
 0x23e   :  { %v5138_v21 = vmax.f32 %v5066_v33, %v2302_v26  ;;  %v3041_v33 = vld [vmem:[%s5465_s5 + $0xd0] sm:$0xff] }
 0x23f   :  { %2660 = vmatpush.msrb.mxu2 %v3041_v33  ;;  %v5231_v33 = vadd.f32 %v2234_v59, %v2194_v32  ;;  %2602 = vmatpush.msrb.mxu0 %v2553_v0 }
 0x240   :  { %v2266_v1 = vpop.f32.mrf.mxu1  ;;  %v2341_v60 = vrot.slane %v5138_v21, 2  ;;  %v2342_v20 = vrot.slane %v5138_v21, 4  ;;  %v2343_v6 = vrot.slane %v5138_v21, 6 }
 0x241   :  { %2661 = vmatpush.msrb.mxu2 %v3040_v58  ;;  %v2267_v47 = vadd.f32 %v2266_v1, %v2226_v50  ;;  %v2552_v58 = vld [vmem:[%s5465_s5 + $0x10] sm:$0xff] }
 0x242   :  { %v3000_v45 = vrot.slane %v2341_v60, 9  ;;  %v3001_v27 = vrot.slane %v2342_v20, 9  ;;  %v3002_v7 = vrot.slane %v2343_v6, 9  ;;  %2603 = vmatpush.msrb.mxu0 %v2552_v58 }
 0x243   :  { %v2304_v11 = vpop.f32.mrf.mxu3  ;;  %2662 = vmatpush.msrb.mxu2 %v3039_v25 }
 0x244   :  { %v2305_v3 = vadd.f32 %v2304_v11, %v2264_v51  ;;  %v2486_v26 = vmax.f32 %v2341_v60, %v3000_v45  ;;  %v2488_v54 = vmax.f32 %v2343_v6, %v3002_v7  ;;  %v2197_v51 = vadd.f32 %v2196_v56, %v2156_v37  ;;  %v2550_v56 = vld [vmem:[%s5465_s5] sm:$0xff]  ;;  %2604 = vmatpush.msrb.mxu0 %v2551_v42  ;;  %v3074_v42 = vld [vmem:[%s5465_s5 + $0x1d8] sm:$0xff] }
 0x245   :  { %2663 = vmatpush.msrb.mxu2 %v3038_v15  ;;  %v2159_v11 = vadd.f32 %v5113_v19, %v5099_v39  ;;  %v2199_v15 = vpop.f32.mrf.mxu0  ;;  %v3031_v45 = vld [vmem:[%s5465_s5 + $0x80] sm:$0xff] }
 0x246   :  { %v5173_v46 = vmax.f32 %v5070_v29, %v2305_v3  ;;  %v2999_v29 = vrot.slane %v5138_v21, 9  ;;  %v2237_v3 = vpop.f32.mrf.mxu2  ;;  %v2518_v43 = vmax.f32 %v2486_v26, 0.0  ;;  %v2520_v19 = vmax.f32 %v2488_v54, 0.0  ;;  %2605 = vmatpush.msrb.mxu0 %v2550_v56  ;;  %v3077_v26 = vld [vmem:[%s5465_s5 + $0x1f0] sm:$0xff] }
 0x247   :  { %2664 = vmatpush.msrb.mxu2 %v3037_v30  ;;  %v5251_v18 = vadd.f32 %v2237_v3, %v2197_v51 }
 0x248   :  { %v5182_v41 = vpop.f32.mrf.mxu1  ;;  %v2344_v17 = vrot.slane %v5173_v46, 2  ;;  %v2345_v53 = vrot.slane %v5173_v46, 4  ;;  %v2485_v14 = vmax.f32 %v5138_v21, %v2999_v29  ;;  %v3003_v52 = vrot.slane %v5173_v46, 9 }
 0x249   :  { %2665 = vmatpush.msrb.mxu2 %v3036_v55  ;;  %v2487_v21 = vmax.f32 %v2342_v20, %v3001_v27  ;;  %v2346_v1 = vrot.slane %v5173_v46, 6  ;;  %v2270_v49 = vadd.f32 %v5182_v41, %v2229_v10  ;;  %v5253_v41 = vadd.f32 %v2199_v15, %v2159_v11  ;;  %v3061_v10 = vld [vmem:[%s5465_s5 + $0x170] sm:$0xff] }
 0x24a   :  { %v3004_v38 = vrot.slane %v2344_v17, 9  ;;  %v2517_v16 = vmax.f32 %v2485_v14, 0.0  ;;  %v2489_v34 = vmax.f32 %v5173_v46, %v3003_v52  ;;  %v3032_v46 = vld [vmem:[%s5465_s5 + $0x88] sm:$0xff] }
 0x24b   :  { %v2307_v9 = vpop.f32.mrf.mxu3  ;;  %2666 = vmatpush.msrb.mxu2 %v3035_v44  ;;  %v2519_v39 = vmax.f32 %v2487_v21, 0.0  ;;  %v3006_v50 = vrot.slane %v2346_v1, 9 }
 0x24c   :  { %v2308_v62 = vadd.f32 %v2307_v9, %v2267_v47  ;;  %v2490_v59 = vmax.f32 %v2344_v17, %v3004_v38  ;;  %v2574_v30 = vperm.slane %v2517_v16, 0  ;;  %v5261_v47 = vperm.slane %v2518_v43, 0  ;;  %v3062_v9 = vld [vmem:[%s5465_s5 + $0x178] sm:$0xff]  ;;  %v3060_v38 = vld [vmem:[%s5465_s5 + $0x168] sm:$0xff]  ;;  %v3075_v43 = vld [vmem:[%s5465_s5 + $0x1e0] sm:$0xff] }
 0x24d   :  { %2667 = vmatpush.msrb.mxu2 %v3034_v28  ;;  %v2521_v24 = vmax.f32 %v2489_v34, 0.0  ;;  %v5270_v55 = vperm.slane %v2519_v39, 0  ;;  %v5272_v17 = vperm.slane %v2520_v19, 0  ;;  %v5275_v32 = vmax.f32 %v2346_v1, %v3006_v50  ;;  %2717 = vmatpush.msra.mxu0 %v3062_v9 }
 0x24e   :  { %v5215_v23 = vmax.f32 %v5073_v2, %v2308_v62  ;;  %v3005_v2 = vrot.slane %v2345_v53, 9  ;;  %v2522_v37 = vmax.f32 %v2490_v59, 0.0 }
 0x24f   :  { %2668 = vmatpush.msrb.mxu2 %v3033_v22  ;;  %v2575_v54 = vperm.slane %v2521_v24, 0  ;;  %2718 = vmatpush.msra.mxu0 %v3061_v10  ;;  %v2524_v58 = vmax.f32 %v5275_v32, 0.0  ;;  %v3073_v24 = vld [vmem:[%s5465_s5 + $0x1d0] sm:$0xff] }
 0x250   :  { %v2347_v40 = vrot.slane %v5215_v23, 2  ;;  %v2348_v63 = vrot.slane %v5215_v23, 4  ;;  %v5229_v12 = vpop.f32.mrf.mxu1  ;;  %v2349_v60 = vrot.slane %v5215_v23, 6  ;;  %v3007_v25 = vrot.slane %v5215_v23, 9 }
 0x251   :  { %v2491_v61 = vmax.f32 %v2345_v53, %v3005_v2  ;;  %2669 = vmatpush.msrb.mxu2 %v3032_v46  ;;  %v2273_v28 = vadd.f32 %v5229_v12, %v5218_v36  ;;  %v3076_v2 = vld [vmem:[%s5465_s5 + $0x1e8] sm:$0xff]  ;;  %v2640_v22 = vperm.slane %v2522_v37, 0  ;;  %v3059_v12 = vld [vmem:[%s5465_s5 + $0x160] sm:$0xff]  ;;  %2719 = vmatpush.msra.mxu0 %v3060_v38  ;;  %v2582_v46 = vsel %vm1358_vm2, %v2575_v54, %v2574_v30 }
 0x252   :  { %v3008_v20 = vrot.slane %v2347_v40, 9  ;;  %v3009_v29 = vrot.slane %v2348_v63, 9  ;;  %v3010_v27 = vrot.slane %v2349_v60, 9  ;;  %v2493_v7 = vmax.f32 %v5215_v23, %v3007_v25 }
 0x253   :  { %v2310_v6 = vpop.f32.mrf.mxu3  ;;  %v2523_v14 = vmax.f32 %v2491_v61, 0.0  ;;  %2670 = vmatpush.msrb.mxu2 %v3031_v45  ;;  %2720 = vmatpush.msra.mxu0 %v3059_v12  ;;  %v3057_v45 = vld [vmem:[%s5465_s5 + $0x150] sm:$0xff] }
 0x254   :  { %v2311_v48 = vadd.f32 %v2310_v6, %v2270_v49  ;;  %v2494_v53 = vmax.f32 %v2347_v40, %v3008_v20  ;;  %v2495_v57 = vmax.f32 %v2348_v63, %v3009_v29  ;;  %v5283_v1 = vmax.f32 %v2349_v60, %v3010_v27  ;;  %v3058_v6 = vld [vmem:[%s5465_s5 + $0x158] sm:$0xff]  ;;  %v3053_v12 = vld [vmem:[%s5465_s5 + $0x130] sm:$0xff] }
 0x255   :  { %2779 = vmatpush.msra.mxu2 %v3078_v8  ;;  %v2525_v0 = vmax.f32 %v2493_v7, 0.0  ;;  %v2702_v19 = vperm.slane %v2523_v14, 0  ;;  %2721 = vmatpush.msra.mxu0 %v3058_v6  ;;  %v3056_v14 = vld [vmem:[%s5465_s5 + $0x148] sm:$0xff] }
 0x256   :  { %v2328_v62 = vmax.f32 %v5076_v31, %v2311_v48  ;;  %v2526_v40 = vmax.f32 %v2494_v53, 0.0  ;;  %v2527_v3 = vmax.f32 %v2495_v57, 0.0  ;;  %v2528_v49 = vmax.f32 %v5283_v1, 0.0  ;;  %v3072_v57 = vld [vmem:[%s5465_s5 + $0x1c8] sm:$0xff]  ;;  %v3055_v1 = vld [vmem:[%s5465_s5 + $0x140] sm:$0xff] }
 0x257   :  { %2780 = vmatpush.msra.mxu2 %v3077_v26  ;;  %v2576_v15 = vperm.slane %v2525_v0, 0  ;;  %2722 = vmatpush.msra.mxu0 %v3057_v45  ;;  %v3071_v0 = vld [vmem:[%s5465_s5 + $0x1c0] sm:$0xff] }
 0x258   :  { %v2275_v44 = vpop.f32.mrf.mxu1  ;;  %v2350_v52 = vrot.slane %v2328_v62, 2  ;;  %v2351_v23 = vrot.slane %v2328_v62, 4  ;;  %v2352_v21 = vrot.slane %v2328_v62, 6  ;;  %v3011_v31 = vrot.slane %v2328_v62, 9 }
 0x259   :  { %2781 = vmatpush.msra.mxu2 %v3076_v2  ;;  %v2641_v50 = vperm.slane %v2526_v40, 0  ;;  %v2703_v27 = vperm.slane %v2527_v3, 0  ;;  %v2276_v9 = vadd.f32 %v2275_v44, %v5231_v33  ;;  %v2583_v33 = vsel %vm1360_vm3, %v2576_v15, %v2582_v46  ;;  %2723 = vmatpush.msra.mxu0 %v3056_v14  ;;  %v3054_v40 = vld [vmem:[%s5465_s5 + $0x138] sm:$0xff]  ;;  %v3052_v15 = vld [vmem:[%s5465_s5 + $0x128] sm:$0xff] }
 0x25a   :  { %v3012_v63 = vrot.slane %v2350_v52, 9  ;;  %v3013_v51 = vrot.slane %v2351_v23, 9  ;;  %v2497_v11 = vmax.f32 %v2328_v62, %v3011_v31  ;;  %v3014_v34 = vrot.slane %v2352_v21, 9 }
 0x25b   :  { %v2313_v16 = vpop.f32.mrf.mxu3  ;;  %2782 = vmatpush.msra.mxu2 %v3075_v43  ;;  %v2647_v44 = vsel %vm1358_vm2, %v2640_v22, %v5261_v47  ;;  %2724 = vmatpush.msra.mxu0 %v3055_v1  ;;  %v3069_v43 = vld [vmem:[%s5465_s5 + $0x1b0] sm:$0xff] }
 0x25c   :  { %v2314_v36 = vadd.f32 %v2313_v16, %v2273_v28  ;;  %v2498_v60 = vmax.f32 %v2350_v52, %v3012_v63  ;;  %v2499_v25 = vmax.f32 %v2351_v23, %v3013_v51  ;;  %v2529_v39 = vmax.f32 %v2497_v11, 0.0  ;;  %v3070_v63 = vld [vmem:[%s5465_s5 + $0x1b8] sm:$0xff] }
 0x25d   :  { %v5315_v30 = vmax.f32 %v2352_v21, %v3014_v34  ;;  %2783 = vmatpush.msra.mxu2 %v3074_v42  ;;  %v2709_v52 = vsel %vm1358_vm2, %v2702_v19, %v5270_v55  ;;  %v2764_v28 = vperm.slane %v2524_v58, 0  ;;  %v2648_v55 = vsel %vm1360_vm3, %v2641_v50, %v2647_v44  ;;  %2725 = vmatpush.msra.mxu0 %v3054_v40  ;;  %v3068_v50 = vld [vmem:[%s5465_s5 + $0x1a8] sm:$0xff]  ;;  %v3050_v44 = vld [vmem:[%s5465_s5 + $0x118] sm:$0xff] }
 0x25e   :  { %v2329_v20 = vmax.f32 %v5078_v13, %v2314_v36  ;;  %v2530_v59 = vmax.f32 %v2498_v60, 0.0  ;;  %v2531_v61 = vmax.f32 %v2499_v25, 0.0  ;;  %v2577_v7 = vperm.slane %v2529_v39, 0 }
 0x25f   :  { %2784 = vmatpush.msra.mxu2 %v3073_v24  ;;  %v2765_v58 = vperm.slane %v2528_v49, 0  ;;  %v2710_v36 = vsel %vm1360_vm3, %v2703_v27, %v2709_v52  ;;  %v2532_v42 = vmax.f32 %v5315_v30, 0.0  ;;  %2726 = vmatpush.msra.mxu0 %v3053_v12  ;;  %v2808_v24 = vld [vmem:[%s5466_s7 + $0x38] sm:$0xff]  ;;  %v2807_v27 = vld [vmem:[%s5466_s7 + $0x30] sm:$0xff] }
 0x260   :  { %v2353_v29 = vrot.slane %v2329_v20, 2  ;;  %v2354_v48 = vrot.slane %v2329_v20, 4  ;;  %v2355_v56 = vrot.slane %v2329_v20, 6  ;;  %v3015_v13 = vrot.slane %v2329_v20, 9  ;;  %v2278_v8 = vpop.f32.mrf.mxu1  ;;  %2825 = vmatpush.msra.mxu1 %v2808_v24 }
 0x261   :  { %v2642_v53 = vperm.slane %v2530_v59, 0  ;;  %v2704_v23 = vperm.slane %v2531_v61, 0  ;;  %2785 = vmatpush.msra.mxu2 %v3072_v57  ;;  %v2584_v47 = vsel %vm1362_vm4, %v2577_v7, %v2583_v33  ;;  %v2279_v46 = vadd.f32 %v2278_v8, %v5251_v18  ;;  %v3067_v8 = vld [vmem:[%s5465_s5 + $0x1a0] sm:$0xff]  ;;  %2727 = vmatpush.msra.mxu0 %v3052_v15  ;;  %v2806_v57 = vld [vmem:[%s5466_s7 + $0x28] sm:$0xff] }
 0x262   :  { %v3016_v62 = vrot.slane %v2353_v29, 9  ;;  %v3017_v32 = vrot.slane %v2354_v48, 9  ;;  %v2501_v37 = vmax.f32 %v2329_v20, %v3015_v13  ;;  %v3018_v10 = vrot.slane %v2355_v56, 9  ;;  %2826 = vmatpush.msra.mxu1 %v2807_v27 }
 0x263   :  { %v2316_v26 = vpop.f32.mrf.mxu3  ;;  %v2649_v11 = vsel %vm1362_vm4, %v2642_v53, %v2648_v55  ;;  %2786 = vmatpush.msra.mxu2 %v3071_v0  ;;  %v2711_v39 = vsel %vm1362_vm4, %v2704_v23, %v2710_v36  ;;  %v3065_v55 = vld [vmem:[%s5465_s5 + $0x190] sm:$0xff] }
 0x264   :  { %v2502_v21 = vmax.f32 %v2353_v29, %v3016_v62  ;;  %v2503_v31 = vmax.f32 %v2354_v48, %v3017_v32  ;;  %v2533_v54 = vmax.f32 %v2501_v37, 0.0  ;;  %v2317_v38 = vadd.f32 %v2316_v26, %v2276_v9  ;;  %v3051_v9 = vld [vmem:[%s5465_s5 + $0x120] sm:$0xff]  ;;  %2827 = vmatpush.msra.mxu1 %v2806_v57 }
 0x265   :  { %v5344_v22 = vmax.f32 %v2355_v56, %v3018_v10  ;;  %2787 = vmatpush.msra.mxu2 %v3070_v63  ;;  %v2771_v62 = vsel %vm1358_vm2, %v2764_v28, %v5272_v17  ;;  %v2766_v10 = vperm.slane %v2532_v42, 0  ;;  %v3066_v17 = vld [vmem:[%s5465_s5 + $0x198] sm:$0xff]  ;;  %2728 = vmatpush.msra.mxu0 %v3051_v9 }
 0x266   :  { %v2578_v2 = vperm.slane %v2533_v54, 0  ;;  %v2534_v51 = vmax.f32 %v2502_v21, 0.0  ;;  %v2535_v16 = vmax.f32 %v2503_v31, 0.0  ;;  %v2330_v3 = vmax.f32 %v5082_v5, %v2317_v38  ;;  %v2240_v5 = vpop.f32.mrf.mxu2 }
 0x267   :  { %2788 = vmatpush.msra.mxu2 %v3069_v43  ;;  %v2241_v30 = vadd.f32 %v2240_v5, %v5253_v41  ;;  %v2536_v53 = vmax.f32 %v5344_v22, 0.0  ;;  %v2772_v52 = vsel %vm1360_vm3, %v2765_v58, %v2771_v62  ;;  %2729 = vmatpush.msra.mxu0 %v3050_v44  ;;  %v3048_v22 = vld [vmem:[%s5465_s5 + $0x108] sm:$0xff]  ;;  %v2803_v5 = vld [vmem:[%s5466_s7 + $0x10] sm:$0xff] }
 0x268   :  { %v5355_v34 = vsel %vm1364_vm5, %v2578_v2, %v2584_v47  ;;  %v2643_v60 = vperm.slane %v2534_v51, 0  ;;  %v2705_v25 = vperm.slane %v2535_v16, 0  ;;  %v2356_v19 = vrot.slane %v2330_v3, 2  ;;  %v2281_v45 = vpop.f32.mrf.mxu1  ;;  %v3049_v47 = vld [vmem:[%s5465_s5 + $0x110] sm:$0xff] }
 0x269   :  { %v2357_v49 = vrot.slane %v2330_v3, 4  ;;  %v2358_v20 = vrot.slane %v2330_v3, 6  ;;  %v3019_v6 = vrot.slane %v2330_v3, 9  ;;  %2789 = vmatpush.msra.mxu2 %v3068_v50  ;;  %v2282_v26 = vadd.f32 %v2281_v45, %v2241_v30  ;;  %2730 = vmatpush.msra.mxu0 %v3049_v47  ;;  %v2801_v47 = vld [vmem:[%s5466_s7] sm:$0xff] }
 0x26a   :  { %v5367_v59 = vsel %vm1364_vm5, %v2643_v60, %v2649_v11  ;;  %v5370_v61 = vsel %vm1364_vm5, %v2705_v25, %v2711_v39  ;;  %v3020_v29 = vrot.slane %v2356_v19, 9  ;;  %v2767_v51 = vperm.slane %v2536_v53, 0  ;;  %v2804_v11 = vld [vmem:[%s5466_s7 + $0x18] sm:$0xff] }
 0x26b   :  { %v3021_v48 = vrot.slane %v2357_v49, 9  ;;  %v3022_v56 = vrot.slane %v2358_v20, 9  ;;  %v2505_v13 = vmax.f32 %v2330_v3, %v3019_v6  ;;  %v2319_v18 = vpop.f32.mrf.mxu3  ;;  %2790 = vmatpush.msra.mxu2 %v3067_v8  ;;  %v3064_v3 = vld [vmem:[%s5465_s5 + $0x188] sm:$0xff]  ;;  %v2773_v39 = vsel %vm1362_vm4, %v2766_v10, %v2772_v52  ;;  %v3047_v6 = vld [vmem:[%s5465_s5 + $0x100] sm:$0xff]  ;;  %2731 = vmatpush.msra.mxu0 %v3048_v22 }
 0x26c   :  { %v2320_v7 = vadd.f32 %v2319_v18, %v2279_v46  ;;  %v2506_v37 = vmax.f32 %v2356_v19, %v3020_v29  ;;  %v3063_v46 = vld [vmem:[%s5465_s5 + $0x180] sm:$0xff]  ;;  %v2774_v50 = vsel %vm1364_vm5, %v2767_v51, %v2773_v39 }
 0x26d   :  { %v2537_v32 = vmax.f32 %v2505_v13, 0.0  ;;  %v2507_v41 = vmax.f32 %v2357_v49, %v3021_v48  ;;  %v2508_v14 = vmax.f32 %v2358_v20, %v3022_v56  ;;  %2791 = vmatpush.msra.mxu2 %v3066_v17  ;;  %2732 = vmatpush.msra.mxu0 %v3047_v6 }
 0x26e   :  { %v2331_v33 = vmax.f32 %v5086_v35, %v2320_v7  ;;  %v2538_v21 = vmax.f32 %v2506_v37, 0.0  ;;  %v2805_v35 = vld [vmem:[%s5466_s7 + $0x20] sm:$0xff] }
 0x26f   :  { %v2579_v23 = vperm.slane %v2537_v32, 0  ;;  %v2539_v31 = vmax.f32 %v2507_v41, 0.0  ;;  %v2540_v54 = vmax.f32 %v2508_v14, 0.0  ;;  %2828 = vmatpush.msra.mxu1 %v2805_v35  ;;  %2792 = vmatpush.msra.mxu2 %v3065_v55 }
 0x270   :  { %v2359_v1 = vrot.slane %v2331_v33, 2  ;;  %v2360_v0 = vrot.slane %v2331_v33, 4  ;;  %v2361_v28 = vrot.slane %v2331_v33, 6  ;;  %v3023_v38 = vrot.slane %v2331_v33, 9 }
 0x271   :  { %v2586_v2 = vsel %vm1366_vm6, %v2579_v23, %v5355_v34  ;;  %v2644_v40 = vperm.slane %v2538_v21, 0  ;;  %v2706_v63 = vperm.slane %v2539_v31, 0  ;;  %v2768_v25 = vperm.slane %v2540_v54, 0  ;;  %2829 = vmatpush.msra.mxu1 %v2804_v11  ;;  %2793 = vmatpush.msra.mxu2 %v3064_v3 }
 0x272   :  { %v2509_v16 = vmax.f32 %v2331_v33, %v3023_v38  ;;  %v3024_v58 = vrot.slane %v2359_v1, 9  ;;  %v3025_v36 = vrot.slane %v2360_v0, 9  ;;  %v3026_v12 = vrot.slane %v2361_v28, 9  ;;  %v2802_v38 = vld [vmem:[%s5466_s7 + $0x8] sm:$0xff] }
 0x273   :  { %v2322_v43 = vpop.f32.mrf.mxu3  ;;  %v2651_v34 = vsel %vm1366_vm6, %v2644_v40, %v5367_v59  ;;  %v2713_v60 = vsel %vm1366_vm6, %v2706_v63, %v5370_v61  ;;  %2830 = vmatpush.msra.mxu1 %v2803_v5  ;;  %2794 = vmatpush.msra.mxu2 %v3063_v46  ;;  %v2775_v13 = vsel %vm1366_vm6, %v2768_v25, %v2774_v50 }
 0x274   :  { %v2323_v19 = vadd.f32 %v2322_v43, %v2282_v26  ;;  %v2541_v49 = vmax.f32 %v2509_v16, 0.0  ;;  %v2510_v20 = vmax.f32 %v2359_v1, %v3024_v58  ;;  %v2511_v42 = vmax.f32 %v2360_v0, %v3025_v36  ;;  %v3081_v36 = vld [vmem:[%s5467_s8] ss:$0 sm:$0xff] }
 0x275   :  { %v2512_v15 = vmax.f32 %v2361_v28, %v3026_v12  ;;  %2831 = vmatpush.msra.mxu1 %v2802_v38 }
 0x276   :  { %v2332_v59 = vmax.f32 %v5090_v4, %v2323_v19  ;;  %v2580_v61 = vperm.slane %v2541_v49, 0  ;;  %v2542_v29 = vmax.f32 %v2510_v20, 0.0  ;;  %v2543_v48 = vmax.f32 %v2511_v42, 0.0 }
 0x277   :  { %v2544_v56 = vmax.f32 %v2512_v15, 0.0  ;;  %2832 = vmatpush.msra.mxu1 %v2801_v47 }
 0x278   :  { %v3027_v45 = vrot.slane %v2332_v59, 9  ;;  %v2587_v18 = vsel %vm1368_vm7, %v2580_v61, %v2586_v2  ;;  %v2362_v24 = vrot.slane %v2332_v59, 2  ;;  %v2645_v27 = vperm.slane %v2542_v29, 0  ;;  %v3080_v2 = vld [vmem:[%s5464_s6] ss:$0 sm:$0xff] }
 0x279   :  { %v2363_v30 = vrot.slane %v2332_v59, 4  ;;  %v2707_v7 = vperm.slane %v2543_v48, 0  ;;  %v2364_v9 = vrot.slane %v2332_v59, 6  ;;  %v2769_v8 = vperm.slane %v2544_v56, 0 }
 0x27a   :  { %v2513_v53 = vmax.f32 %v2332_v59, %v3027_v45  ;;  %v3028_v4 = vrot.slane %v2362_v24, 9  ;;  %v2652_v62 = vsel %vm1368_vm7, %v2645_v27, %v2651_v34 }
 0x27b   :  { %v3029_v32 = vrot.slane %v2363_v30, 9  ;;  %v2714_v37 = vsel %vm1368_vm7, %v2707_v7, %v2713_v60  ;;  %v3030_v41 = vrot.slane %v2364_v9, 9  ;;  %v2776_v14 = vsel %vm1368_vm7, %v2769_v8, %v2775_v13 }
 0x27c   :  { %v2545_v57 = vmax.f32 %v2513_v53, 0.0  ;;  %v2514_v10 = vmax.f32 %v2362_v24, %v3028_v4 }
 0x27d   :  { %v2515_v26 = vmax.f32 %v2363_v30, %v3029_v32  ;;  %v2516_v33 = vmax.f32 %v2364_v9, %v3030_v41 }
 0x27e   :  { %v2581_v44 = vperm.slane %v2545_v57, 0  ;;  %v2546_v17 = vmax.f32 %v2514_v10, 0.0 }
 0x27f   :  { %v2547_v52 = vmax.f32 %v2515_v26, 0.0  ;;  %v2548_v23 = vmax.f32 %v2516_v33, 0.0 }
 0x280   :  { %v2588_v21 = vsel %vm1370_vm8, %v2581_v44, %v2587_v18  ;;  %v2646_v31 = vperm.slane %v2546_v17, 0 }
 0x281   :  { %2606 = vmatmul.f32.vlgmr.msrb.gmra.mxu0 %v2588_v21  ;;  %v2708_v54 = vperm.slane %v2547_v52, 0  ;;  %v2770_v35 = vperm.slane %v2548_v23, 0 }
 0x282   :  { %v2653_v1 = vsel %vm1370_vm8, %v2646_v31, %v2652_v62 }
 0x283   :  { %2671 = vmatmul.f32.vlgmr.msrb.gmra.mxu2 %v2653_v1  ;;  %v2715_v0 = vsel %vm1370_vm8, %v2708_v54, %v2714_v37  ;;  %v2777_v28 = vsel %vm1370_vm8, %v2770_v35, %v2776_v14 }
 0x289   :  { %2733 = vmatmul.f32.vlgmr.msra.gmra.mxu0 %v2715_v0 }
 0x28b   :  { %2795 = vmatmul.f32.vlgmr.msra.gmra.mxu2 %v2777_v28 }
 0x2fe   :  { %v2607_v55 = vpop.f32.mrf.mxu0 }
 0x2ff   :  { %v2613_v63 = vadd.f32 %v3080_v2, %v2607_v55 }
 0x306   :  { %v2672_v40 = vpop.f32.mrf.mxu2  ;;  %v2734_v11 = vpop.f32.mrf.mxu0 }
 0x307   :  { %v2675_v51 = vadd.f32 %v2672_v40, %v2613_v63 }
 0x309   :  { %v2737_v16 = vadd.f32 %v2734_v11, %v2675_v51 }
 0x30e   :  { %v2796_v58 = vpop.f32.mrf.mxu2 }
 0x30f   :  { %v2799_v22 = vadd.f32 %v2796_v58, %v2737_v16 }
 0x311   :  { %v2800_v3 = vmax.f32 %v2799_v22, 0.0 }
 0x313   :  { %3079 = vmatmul.msk.f32.vlgmr.msra.gmra.mxu1 %vm2813_vm9, %v2800_v3 }
 0x390   :  { %v2834_v12 = vpop.f32.mrf.mxu1 }
 0x391   :  { %v2835_v43 = vadd.f32 %v3081_v36, %v2834_v12 }
 0x393   :  { %2837 = vmax.xlane.f32.xlu0 %v2835_v43 }
 0x406   :  { %v2838_v34 = vpop.xlane.xlu0 %2837 }
 0x407   :  { %v2839_v60 = vsub.f32 %v2835_v43, %v2838_v34 }
 0x409   :  { %v2840_v25 = vmul.f32 1.442695, %v2839_v60 }
 0x40b   :  { %3082 = vpow2.f32 %v2840_v25 }
 0x411   :  { %v3083_v39 = vpop.eup %3082 }
 0x412   :  { %2842 = vadd.xlane.f32.xlu0 %v3083_v39 }
 0x485   :  { %v2843_v5 = vpop.xlane.xlu0 %2842 }
 0x486   :  { %3084 = vlog2.f32 %v2843_v5 }
 0x48c   :  { %v3085_v19 = vpop.eup %3084 }
 0x48d   :  { %v2845_v49 = vmul.f32 0.6931472, %v3085_v19 }
 0x48f   :  { %v2846_v20 = vadd.f32 %v2845_v49, %v2838_v34 }
 0x491   :  { %v2847_v6 = vsub.f32 %v2835_v43, %v2846_v20 }
 0x493   :  { %2848 = vst [vmem:[%s5468_s9] sm:$0xff] %v2847_v6 }

</bundles_post_ra>
